<compile_context>
chip_gen: v5e
topology: v5e:2x2
jax: 0.10.0
libtpu: 0.0.40
codegen_flags: <defaults>
</compile_context>

<pallas_src>
import functools
import math

import jax
import jax.numpy as jnp
from jax.experimental import pallas as pl
from jax.experimental.pallas import tpu as pltpu

LN_EPS = 1e-5
BN_EPS = 1e-5

# ----------------------------- model hyper-params ---------------------------
N_NODES = 16
IN_CHANNELS = 8
HIDDEN_CHANNELS = 32
OUT_CHANNELS = 16
GNN_EMB_DIM = 64
D_MODEL = 64
NUM_TRANS_LAYERS = 3
NUM_HEADS = 4
HEAD_DIM = D_MODEL // NUM_HEADS
DIM_FEEDFORWARD = 256


# ------------------------------- kernel helpers -----------------------------
def _layer_norm(x, g, b):
    mu = jnp.mean(x, axis=-1, keepdims=True)
    xc = x - mu
    var = jnp.mean(xc * xc, axis=-1, keepdims=True)
    return xc * jax.lax.rsqrt(var + LN_EPS) * g + b


# --------------------------------- fused kernel ------------------------------
def fused_forward_kernel(x_ref, a_ref, fw_ref, aw_ref, bq_ref, w1_ref, w2_ref,
                         b1_ref, vt_ref, o_ref, *, num_heads, num_layers):
    f32 = jnp.float32
    bf16 = jnp.bfloat16
    dg_tt = (((1,), (1,)), ((), ()))          # contract last dims (A @ B^T form)

    x = x_ref[...].astype(bf16)               # (N, in_ch)
    a = a_ref[...].astype(bf16)               # (N, N) normalized adjacency

    # ---- GCN layer 0: A_hat @ (X W0), folded bias+BatchNorm (eval), ReLU ----
    gw0 = fw_ref[0][:IN_CHANNELS, :]          # (in_ch, 64); cols >= hidden are zero pad
    h = jnp.dot(x, gw0, preferred_element_type=f32)
    h = jnp.dot(a, h.astype(bf16), preferred_element_type=f32)
    h = h * vt_ref[0] + vt_ref[1]             # BN scale / shift (GCN-0 bias folded in)
    h = jnp.maximum(h, 0.0)                   # dropout == identity (eval)

    # ---- GCN layer 1: A_hat @ (H W1)  (bias folded into gnn2transformer bias) ----
    h = jnp.dot(h.astype(bf16), fw_ref[1], preferred_element_type=f32)
    node_emb = jnp.dot(a, h.astype(bf16), preferred_element_type=f32)

    # ---- gnn2transformer Linear + input LayerNorm ----------------------------
    z = jnp.dot(node_emb.astype(bf16), fw_ref[2], preferred_element_type=f32) + vt_ref[2]
    z = _layer_norm(z, vt_ref[3], vt_ref[4])

    # ---- post-norm TransformerEncoder layers (static unroll) -----------------
    for l in range(num_layers):
        vb = 8 + 6 * l                        # base row in the packed vector table
        wb = l * 4 * num_heads                # base slab in the packed attention weights
        zb = z.astype(bf16)
        attn = vt_ref[vb + 0]                 # accumulator seeded with folded out-proj bias
        for hh in range(num_heads):           # static loop; per-head weights pre-split
            q = (jnp.dot(zb, aw_ref[wb + hh], preferred_element_type=f32)
                 + bq_ref[l * num_heads + hh])                       # scale folded into wq/bq
            k = jnp.dot(zb, aw_ref[wb + num_heads + hh], preferred_element_type=f32)
            v = jnp.dot(zb, aw_ref[wb + 2 * num_heads + hh], preferred_element_type=f32)
            s = jax.lax.dot_general(q.astype(bf16), k.astype(bf16), dg_tt,
                                    preferred_element_type=f32)
            p = jnp.exp(s)                    # logits bounded (LN'd inputs) -> no max shift
            p = p * pl.reciprocal(jnp.sum(p, axis=-1, keepdims=True), approx=True)
            hv = jnp.dot(p.astype(bf16), v.astype(bf16), preferred_element_type=f32)
            # accumulate head @ Wo_h via wo stored transposed -> no concat, no slices
            attn = attn + jax.lax.dot_general(hv.astype(bf16),
                                              aw_ref[wb + 3 * num_heads + hh],
                                              dg_tt, preferred_element_type=f32)

        z = _layer_norm(z + attn, vt_ref[vb + 1], vt_ref[vb + 2])

        ff = jnp.dot(z.astype(bf16), w1_ref[l], preferred_element_type=f32) + b1_ref[l]
        ff = jnp.maximum(ff, 0.0)
        ff = jnp.dot(ff.astype(bf16), w2_ref[l], preferred_element_type=f32) + vt_ref[vb + 3]
        z = _layer_norm(z + ff, vt_ref[vb + 4], vt_ref[vb + 5])

    # ---- final encoder LayerNorm + output Linear ------------------------------
    z = _layer_norm(z, vt_ref[5], vt_ref[6])
    wout = fw_ref[3][:, :OUT_CHANNELS]
    o_ref[...] = (jnp.dot(z.astype(bf16), wout, preferred_element_type=f32)
                  + vt_ref[7][:, :OUT_CHANNELS])


# ---------------------------------- glue -------------------------------------
def gcn_norm_adj(edge_index, num_nodes):
    """Dense  D^-1/2 (A + I) D^-1/2  matching PyG GCNConv normalization."""
    src = edge_index[0]
    dst = edge_index[1]
    A = jnp.zeros((num_nodes, num_nodes), jnp.float32)
    A = A.at[dst, src].add(1.0)                       # message src -> dst
    A = A + jnp.eye(num_nodes, dtype=jnp.float32)     # add self loops
    deg = jnp.sum(A, axis=1)
    dinv = jnp.where(deg > 0, jax.lax.rsqrt(deg), 0.0)
    return dinv[:, None] * A * dinv[None, :]


def init_params(key):
    def nrm(k, shape, s=0.1):
        return s * jax.random.normal(k, shape, jnp.float32)

    keys = iter(jax.random.split(key, 64))
    p = {
        "gcn_w0": nrm(next(keys), (IN_CHANNELS, HIDDEN_CHANNELS)),
        "gcn_b0": nrm(next(keys), (HIDDEN_CHANNELS,)),
        "bn0_gamma": 1.0 + nrm(next(keys), (HIDDEN_CHANNELS,)),
        "bn0_beta": nrm(next(keys), (HIDDEN_CHANNELS,)),
        "bn0_rmean": jnp.zeros((HIDDEN_CHANNELS,), jnp.float32),
        "bn0_rvar": jnp.ones((HIDDEN_CHANNELS,), jnp.float32),
        "gcn_w1": nrm(next(keys), (HIDDEN_CHANNELS, GNN_EMB_DIM)),
        "gcn_b1": nrm(next(keys), (GNN_EMB_DIM,)),
        "wt": nrm(next(keys), (GNN_EMB_DIM, D_MODEL)),
        "bt": nrm(next(keys), (D_MODEL,)),
        "ln_in_g": 1.0 + nrm(next(keys), (D_MODEL,)),
        "ln_in_b": nrm(next(keys), (D_MODEL,)),
        "ln_f_g": 1.0 + nrm(next(keys), (D_MODEL,)),
        "ln_f_b": nrm(next(keys), (D_MODEL,)),
        "w_out": nrm(next(keys), (D_MODEL, OUT_CHANNELS)),
        "b_out": nrm(next(keys), (OUT_CHANNELS,)),
        "trans_layers": [],
    }
    for _ in range(NUM_TRANS_LAYERS):
        p["trans_layers"].append({
            "wqkv": nrm(next(keys), (D_MODEL, 3 * D_MODEL)),
            "bqkv": nrm(next(keys), (3 * D_MODEL,)),
            "wo": nrm(next(keys), (D_MODEL, D_MODEL)),
            "bo": nrm(next(keys), (D_MODEL,)),
            "ln1_g": 1.0 + nrm(next(keys), (D_MODEL,)),
            "ln1_b": nrm(next(keys), (D_MODEL,)),
            "w1": nrm(next(keys), (D_MODEL, DIM_FEEDFORWARD)),
            "b1": nrm(next(keys), (DIM_FEEDFORWARD,)),
            "w2": nrm(next(keys), (DIM_FEEDFORWARD, D_MODEL)),
            "b2": nrm(next(keys), (D_MODEL,)),
            "ln2_g": 1.0 + nrm(next(keys), (D_MODEL,)),
            "ln2_b": nrm(next(keys), (D_MODEL,)),
        })
    return p


def pack_params(p):
    """One-time packing: fold BN/biases/scales, pre-split per-head weights, pre-broadcast
    all 1-D vectors, pre-cast matmul weights to bf16, and collapse everything into a
    handful of arrays (one DMA each)."""
    f32 = jnp.float32
    bf16 = jnp.bfloat16
    D, H, HD, L, N, F = D_MODEL, NUM_HEADS, HEAD_DIM, NUM_TRANS_LAYERS, N_NODES, DIM_FEEDFORWARD
    scale = 1.0 / math.sqrt(HD)

    def pad_row(v, width=D):
        v = jnp.asarray(v, f32)
        return jnp.zeros((width,), f32).at[: v.shape[0]].set(v)

    def bcast(v, width=D):
        return jnp.broadcast_to(pad_row(v, width)[None, :], (N, width))

    # ---- front / back matmul weights, one homogeneous bf16 slab --------------
    fw = jnp.zeros((4, D, D), f32)
    fw = fw.at[0, :IN_CHANNELS, :HIDDEN_CHANNELS].set(p["gcn_w0"])
    fw = fw.at[1, :HIDDEN_CHANNELS, :].set(p["gcn_w1"])
    fw = fw.at[2].set(p["wt"])
    fw = fw.at[3, :, :OUT_CHANNELS].set(p["w_out"])
    fw = fw.astype(bf16)

    # ---- vector folds ---------------------------------------------------------
    bn_scale = p["bn0_gamma"] / jnp.sqrt(p["bn0_rvar"] + BN_EPS)
    bn_shift = p["bn0_beta"] - p["bn0_rmean"] * bn_scale
    bnb_fold = p["gcn_b0"] * bn_scale + bn_shift            # GCN-0 bias folded into BN shift
    bt_fold = p["bt"] + p["gcn_b1"] @ p["wt"]               # GCN-1 bias folded into Wt bias

    vec_rows = [
        bcast(bn_scale), bcast(bnb_fold), bcast(bt_fold),
        bcast(p["ln_in_g"]), bcast(p["ln_in_b"]),
        bcast(p["ln_f_g"]), bcast(p["ln_f_b"]),
        bcast(p["b_out"]),
    ]

    aw_slabs, bq_slabs, w1_list, w2_list, b1_list = [], [], [], [], []
    for lyr in p["trans_layers"]:
        wqkv = lyr["wqkv"]
        wq = wqkv[:, :D] * scale                            # fold 1/sqrt(hd) into wq
        wk = wqkv[:, D:2 * D]
        wv = wqkv[:, 2 * D:]
        wo = lyr["wo"]
        bqkv = lyr["bqkv"]
        bq = bqkv[:D] * scale                               # scale folded into bq too
        bv = bqkv[2 * D:]
        # key bias dropped (softmax row-constant shift); value bias folded into bo:
        bo_fold = lyr["bo"] + bv @ wo

        for w in (wq, wk, wv):                              # per-head (D, HD) projections
            for hh in range(H):
                aw_slabs.append(w[:, hh * HD:(hh + 1) * HD])
        for hh in range(H):                                 # wo stored transposed per head
            aw_slabs.append(wo[hh * HD:(hh + 1) * HD, :].T)
        for hh in range(H):
            bq_slabs.append(jnp.broadcast_to(bq[hh * HD:(hh + 1) * HD][None, :], (N, HD)))

        w1_list.append(lyr["w1"])
        w2_list.append(lyr["w2"])
        b1_list.append(jnp.broadcast_to(jnp.asarray(lyr["b1"], f32)[None, :], (N, F)))
        vec_rows += [bcast(bo_fold), bcast(lyr["ln1_g"]), bcast(lyr["ln1_b"]),
                     bcast(lyr["b2"]), bcast(lyr["ln2_g"]), bcast(lyr["ln2_b"])]

    return {
        "fw": fw,                                            # (4, D, D)        bf16
        "aw": jnp.stack(aw_slabs).astype(bf16),              # (L*4*H, D, HD)   bf16
        "bq": jnp.stack(bq_slabs).astype(f32),               # (L*H, N, HD)     f32
        "w1": jnp.stack(w1_list).astype(bf16),               # (L, D, F)        bf16
        "w2": jnp.stack(w2_list).astype(bf16),               # (L, F, D)        bf16
        "b1": jnp.stack(b1_list).astype(f32),                # (L, N, F)        f32
        "vt": jnp.stack(vec_rows).astype(f32),               # (8+6L, N, D)     f32
    }


@jax.jit
def graph_trans_forward(packed, x, a_hat):
    kernel = functools.partial(fused_forward_kernel,
                               num_heads=NUM_HEADS,
                               num_layers=NUM_TRANS_LAYERS)
    args = (x, a_hat, packed["fw"], packed["aw"], packed["bq"],
            packed["w1"], packed["w2"], packed["b1"], packed["vt"])
    return pl.pallas_call(
        kernel,
        out_shape=jax.ShapeDtypeStruct((x.shape[0], OUT_CHANNELS), jnp.float32),
        in_specs=[pl.BlockSpec(memory_space=pltpu.MemorySpace.VMEM)] * len(args),
        out_specs=pl.BlockSpec(memory_space=pltpu.MemorySpace.VMEM),
        cost_estimate=pl.CostEstimate(flops=12_000_000,
                                      transcendentals=10_000,
                                      bytes_accessed=700_000),
    )(*args)


# ----------------------------------- main ------------------------------------
if __name__ == "__main__":
    key = jax.random.PRNGKey(0)
    k_x, k_off, k_params = jax.random.split(key, 3)

    # node features
    x = jax.random.normal(k_x, (N_NODES, IN_CHANNELS), jnp.float32)

    # edge_index: bidirectional ring + random chords (no self loops)
    idx = jnp.arange(N_NODES)
    ring_src = jnp.concatenate([idx, (idx + 1) % N_NODES])
    ring_dst = jnp.concatenate([(idx + 1) % N_NODES, idx])
    offsets = jax.random.randint(k_off, (N_NODES,), 2, N_NODES - 1)
    chord_src = idx
    chord_dst = (idx + offsets) % N_NODES
    edge_index = jnp.stack([jnp.concatenate([ring_src, chord_src]),
                            jnp.concatenate([ring_dst, chord_dst])]).astype(jnp.int32)

    params = init_params(k_params)
    packed = pack_params(params)                       # one-time weight packing / folding
    a_hat = gcn_norm_adj(edge_index, N_NODES)          # hoisted off the hot path (static graph)

    out = graph_trans_forward(packed, x, a_hat)
    out = jax.block_until_ready(out)
    assert out.shape == (N_NODES, OUT_CHANNELS)
    assert bool(jnp.all(jnp.isfinite(out)))
    print("KERNEL_OK")
</pallas_src>

<mosaic_0001>
module attributes {stable_mosaic.version = 11 : i64} {
  func.func @fused_forward_kernel(%arg0: memref<16x8xf32, #tpu.memory_space<vmem>>, %arg1: memref<16x16xf32, #tpu.memory_space<vmem>>, %arg2: memref<4x64x64xbf16, #tpu.memory_space<vmem>>, %arg3: memref<48x64x16xbf16, #tpu.memory_space<vmem>>, %arg4: memref<12x16x16xf32, #tpu.memory_space<vmem>>, %arg5: memref<3x64x256xbf16, #tpu.memory_space<vmem>>, %arg6: memref<3x256x64xbf16, #tpu.memory_space<vmem>>, %arg7: memref<3x16x256xf32, #tpu.memory_space<vmem>>, %arg8: memref<26x16x64xf32, #tpu.memory_space<vmem>>, %arg9: memref<16x16xf32, #tpu.memory_space<vmem>>) attributes {dimension_semantics = [], scalar_prefetch = 0 : i64, scratch_operands = 0 : i64, tpu.core_type = #tpu.core_type<tc>} {
    %c0 = arith.constant 0 : index
    %c0_0 = arith.constant 0 : index
    %0 = vector.load %arg0[%c0, %c0_0] : memref<16x8xf32, #tpu.memory_space<vmem>>, vector<16x8xf32>
    %1 = arith.truncf %0 : vector<16x8xf32> to vector<16x8xbf16>
    %c0_1 = arith.constant 0 : index
    %c0_2 = arith.constant 0 : index
    %2 = vector.load %arg1[%c0_1, %c0_2] : memref<16x16xf32, #tpu.memory_space<vmem>>, vector<16x16xf32>
    %3 = arith.truncf %2 : vector<16x16xf32> to vector<16x16xbf16>
    %c0_3 = arith.constant 0 : index
    %c0_4 = arith.constant 0 : index
    %c0_5 = arith.constant 0 : index
    %4 = vector.load %arg2[%c0_3, %c0_4, %c0_5] : memref<4x64x64xbf16, #tpu.memory_space<vmem>>, vector<1x64x64xbf16>
    %5 = vector.shape_cast %4 : vector<1x64x64xbf16> to vector<64x64xbf16>
    %6 = vector.extract_strided_slice %5 {offsets = [0, 0], sizes = [8, 64], strides = [1, 1]} : vector<64x64xbf16> to vector<8x64xbf16>
    %cst = arith.constant dense<0.000000e+00> : vector<16x64xf32>
    %7 = tpu.matmul %1, %6, %cst {dimension_numbers = #tpu.dot_dimension_numbers<[1], [0], [0], [1], [0, 0, 1, 1], [], []>} : vector<16x8xbf16>, vector<8x64xbf16>, vector<16x64xf32> -> vector<16x64xf32>
    %8 = arith.truncf %7 : vector<16x64xf32> to vector<16x64xbf16>
    %cst_6 = arith.constant dense<0.000000e+00> : vector<16x64xf32>
    %9 = tpu.matmul %3, %8, %cst_6 {dimension_numbers = #tpu.dot_dimension_numbers<[1], [0], [0], [1], [0, 0, 1, 1], [], []>} : vector<16x16xbf16>, vector<16x64xbf16>, vector<16x64xf32> -> vector<16x64xf32>
    %c0_7 = arith.constant 0 : index
    %c0_8 = arith.constant 0 : index
    %c0_9 = arith.constant 0 : index
    %10 = vector.load %arg8[%c0_7, %c0_8, %c0_9] : memref<26x16x64xf32, #tpu.memory_space<vmem>>, vector<1x16x64xf32>
    %11 = vector.shape_cast %10 : vector<1x16x64xf32> to vector<16x64xf32>
    %12 = arith.mulf %9, %11 : vector<16x64xf32>
    %c1 = arith.constant 1 : index
    %c0_10 = arith.constant 0 : index
    %c0_11 = arith.constant 0 : index
    %13 = vector.load %arg8[%c1, %c0_10, %c0_11] : memref<26x16x64xf32, #tpu.memory_space<vmem>>, vector<1x16x64xf32>
    %14 = vector.shape_cast %13 : vector<1x16x64xf32> to vector<16x64xf32>
    %15 = arith.addf %12, %14 : vector<16x64xf32>
    %cst_12 = arith.constant 0.000000e+00 : f32
    %16 = vector.broadcast %cst_12 : f32 to vector<16x64xf32>
    %17 = arith.maximumf %15, %16 : vector<16x64xf32>
    %18 = arith.truncf %17 : vector<16x64xf32> to vector<16x64xbf16>
    %c1_13 = arith.constant 1 : index
    %c0_14 = arith.constant 0 : index
    %c0_15 = arith.constant 0 : index
    %19 = vector.load %arg2[%c1_13, %c0_14, %c0_15] : memref<4x64x64xbf16, #tpu.memory_space<vmem>>, vector<1x64x64xbf16>
    %20 = vector.shape_cast %19 : vector<1x64x64xbf16> to vector<64x64xbf16>
    %cst_16 = arith.constant dense<0.000000e+00> : vector<16x64xf32>
    %21 = tpu.matmul %18, %20, %cst_16 {dimension_numbers = #tpu.dot_dimension_numbers<[1], [0], [0], [1], [0, 0, 1, 1], [], []>} : vector<16x64xbf16>, vector<64x64xbf16>, vector<16x64xf32> -> vector<16x64xf32>
    %22 = arith.truncf %21 : vector<16x64xf32> to vector<16x64xbf16>
    %cst_17 = arith.constant dense<0.000000e+00> : vector<16x64xf32>
    %23 = tpu.matmul %3, %22, %cst_17 {dimension_numbers = #tpu.dot_dimension_numbers<[1], [0], [0], [1], [0, 0, 1, 1], [], []>} : vector<16x16xbf16>, vector<16x64xbf16>, vector<16x64xf32> -> vector<16x64xf32>
    %24 = arith.truncf %23 : vector<16x64xf32> to vector<16x64xbf16>
    %c2 = arith.constant 2 : index
    %c0_18 = arith.constant 0 : index
    %c0_19 = arith.constant 0 : index
    %25 = vector.load %arg2[%c2, %c0_18, %c0_19] : memref<4x64x64xbf16, #tpu.memory_space<vmem>>, vector<1x64x64xbf16>
    %26 = vector.shape_cast %25 : vector<1x64x64xbf16> to vector<64x64xbf16>
    %cst_20 = arith.constant dense<0.000000e+00> : vector<16x64xf32>
    %27 = tpu.matmul %24, %26, %cst_20 {dimension_numbers = #tpu.dot_dimension_numbers<[1], [0], [0], [1], [0, 0, 1, 1], [], []>} : vector<16x64xbf16>, vector<64x64xbf16>, vector<16x64xf32> -> vector<16x64xf32>
    %c2_21 = arith.constant 2 : index
    %c0_22 = arith.constant 0 : index
    %c0_23 = arith.constant 0 : index
    %28 = vector.load %arg8[%c2_21, %c0_22, %c0_23] : memref<26x16x64xf32, #tpu.memory_space<vmem>>, vector<1x16x64xf32>
    %29 = vector.shape_cast %28 : vector<1x16x64xf32> to vector<16x64xf32>
    %30 = arith.addf %27, %29 : vector<16x64xf32>
    %c3 = arith.constant 3 : index
    %c0_24 = arith.constant 0 : index
    %c0_25 = arith.constant 0 : index
    %31 = vector.load %arg8[%c3, %c0_24, %c0_25] : memref<26x16x64xf32, #tpu.memory_space<vmem>>, vector<1x16x64xf32>
    %32 = vector.shape_cast %31 : vector<1x16x64xf32> to vector<16x64xf32>
    %c4 = arith.constant 4 : index
    %c0_26 = arith.constant 0 : index
    %c0_27 = arith.constant 0 : index
    %33 = vector.load %arg8[%c4, %c0_26, %c0_27] : memref<26x16x64xf32, #tpu.memory_space<vmem>>, vector<1x16x64xf32>
    %34 = vector.shape_cast %33 : vector<1x16x64xf32> to vector<16x64xf32>
    %cst_28 = arith.constant dense<0.000000e+00> : vector<16xf32>
    %35 = vector.multi_reduction <add>, %30, %cst_28 [1] : vector<16x64xf32> to vector<16xf32>
    %36 = vector.shape_cast %35 : vector<16xf32> to vector<16x1xf32>
    %cst_29 = arith.constant 6.400000e+01 : f32
    %37 = vector.broadcast %cst_29 : f32 to vector<16x1xf32>
    %38 = arith.divf %36, %37 : vector<16x1xf32>
    %39 = vector.broadcast %38 : vector<16x1xf32> to vector<16x64xf32>
    %40 = arith.subf %30, %39 : vector<16x64xf32>
    %41 = arith.mulf %40, %40 : vector<16x64xf32>
    %cst_30 = arith.constant dense<0.000000e+00> : vector<16xf32>
    %42 = vector.multi_reduction <add>, %41, %cst_30 [1] : vector<16x64xf32> to vector<16xf32>
    %43 = vector.shape_cast %42 : vector<16xf32> to vector<16x1xf32>
    %cst_31 = arith.constant 6.400000e+01 : f32
    %44 = vector.broadcast %cst_31 : f32 to vector<16x1xf32>
    %45 = arith.divf %43, %44 : vector<16x1xf32>
    %cst_32 = arith.constant 9.99999974E-6 : f32
    %46 = vector.broadcast %cst_32 : f32 to vector<16x1xf32>
    %47 = arith.addf %45, %46 : vector<16x1xf32>
    %48 = math.rsqrt %47 : vector<16x1xf32>
    %49 = vector.broadcast %48 : vector<16x1xf32> to vector<16x64xf32>
    %50 = arith.mulf %40, %49 : vector<16x64xf32>
    %51 = arith.mulf %50, %32 : vector<16x64xf32>
    %52 = arith.addf %51, %34 : vector<16x64xf32>
    %53 = arith.truncf %52 : vector<16x64xf32> to vector<16x64xbf16>
    %c8 = arith.constant 8 : index
    %c0_33 = arith.constant 0 : index
    %c0_34 = arith.constant 0 : index
    %54 = vector.load %arg8[%c8, %c0_33, %c0_34] : memref<26x16x64xf32, #tpu.memory_space<vmem>>, vector<1x16x64xf32>
    %55 = vector.shape_cast %54 : vector<1x16x64xf32> to vector<16x64xf32>
    %c0_35 = arith.constant 0 : index
    %c0_36 = arith.constant 0 : index
    %c0_37 = arith.constant 0 : index
    %56 = vector.load %arg3[%c0_35, %c0_36, %c0_37] : memref<48x64x16xbf16, #tpu.memory_space<vmem>>, vector<1x64x16xbf16>
    %57 = vector.shape_cast %56 : vector<1x64x16xbf16> to vector<64x16xbf16>
    %cst_38 = arith.constant dense<0.000000e+00> : vector<16x16xf32>
    %58 = tpu.matmul %53, %57, %cst_38 {dimension_numbers = #tpu.dot_dimension_numbers<[1], [0], [0], [1], [0, 0, 1, 1], [], []>} : vector<16x64xbf16>, vector<64x16xbf16>, vector<16x16xf32> -> vector<16x16xf32>
    %c0_39 = arith.constant 0 : index
    %c0_40 = arith.constant 0 : index
    %c0_41 = arith.constant 0 : index
    %59 = vector.load %arg4[%c0_39, %c0_40, %c0_41] : memref<12x16x16xf32, #tpu.memory_space<vmem>>, vector<1x16x16xf32>
    %60 = vector.shape_cast %59 : vector<1x16x16xf32> to vector<16x16xf32>
    %61 = arith.addf %58, %60 : vector<16x16xf32>
    %c4_42 = arith.constant 4 : index
    %c0_43 = arith.constant 0 : index
    %c0_44 = arith.constant 0 : index
    %62 = vector.load %arg3[%c4_42, %c0_43, %c0_44] : memref<48x64x16xbf16, #tpu.memory_space<vmem>>, vector<1x64x16xbf16>
    %63 = vector.shape_cast %62 : vector<1x64x16xbf16> to vector<64x16xbf16>
    %cst_45 = arith.constant dense<0.000000e+00> : vector<16x16xf32>
    %64 = tpu.matmul %53, %63, %cst_45 {dimension_numbers = #tpu.dot_dimension_numbers<[1], [0], [0], [1], [0, 0, 1, 1], [], []>} : vector<16x64xbf16>, vector<64x16xbf16>, vector<16x16xf32> -> vector<16x16xf32>
    %c8_46 = arith.constant 8 : index
    %c0_47 = arith.constant 0 : index
    %c0_48 = arith.constant 0 : index
    %65 = vector.load %arg3[%c8_46, %c0_47, %c0_48] : memref<48x64x16xbf16, #tpu.memory_space<vmem>>, vector<1x64x16xbf16>
    %66 = vector.shape_cast %65 : vector<1x64x16xbf16> to vector<64x16xbf16>
    %cst_49 = arith.constant dense<0.000000e+00> : vector<16x16xf32>
    %67 = tpu.matmul %53, %66, %cst_49 {dimension_numbers = #tpu.dot_dimension_numbers<[1], [0], [0], [1], [0, 0, 1, 1], [], []>} : vector<16x64xbf16>, vector<64x16xbf16>, vector<16x16xf32> -> vector<16x16xf32>
    %68 = arith.truncf %61 : vector<16x16xf32> to vector<16x16xbf16>
    %69 = arith.truncf %64 : vector<16x16xf32> to vector<16x16xbf16>
    %cst_50 = arith.constant dense<0.000000e+00> : vector<16x16xf32>
    %70 = tpu.matmul %68, %69, %cst_50 {dimension_numbers = #tpu.dot_dimension_numbers<[1], [1], [0], [0], [0, 0, 1, 0], [], []>} : vector<16x16xbf16>, vector<16x16xbf16>, vector<16x16xf32> -> vector<16x16xf32>
    %71 = math.exp %70 : vector<16x16xf32>
    %cst_51 = arith.constant dense<0.000000e+00> : vector<16xf32>
    %72 = vector.multi_reduction <add>, %71, %cst_51 [1] : vector<16x16xf32> to vector<16xf32>
    %73 = vector.shape_cast %72 : vector<16xf32> to vector<16x1xf32>
    %74 = tpu.reciprocal %73 {approx = true} : vector<16x1xf32> -> vector<16x1xf32>
    %75 = vector.broadcast %74 : vector<16x1xf32> to vector<16x16xf32>
    %76 = arith.mulf %71, %75 : vector<16x16xf32>
    %77 = arith.truncf %76 : vector<16x16xf32> to vector<16x16xbf16>
    %78 = arith.truncf %67 : vector<16x16xf32> to vector<16x16xbf16>
    %cst_52 = arith.constant dense<0.000000e+00> : vector<16x16xf32>
    %79 = tpu.matmul %77, %78, %cst_52 {dimension_numbers = #tpu.dot_dimension_numbers<[1], [0], [0], [1], [0, 0, 1, 1], [], []>} : vector<16x16xbf16>, vector<16x16xbf16>, vector<16x16xf32> -> vector<16x16xf32>
    %80 = arith.truncf %79 : vector<16x16xf32> to vector<16x16xbf16>
    %c12 = arith.constant 12 : index
    %c0_53 = arith.constant 0 : index
    %c0_54 = arith.constant 0 : index
    %81 = vector.load %arg3[%c12, %c0_53, %c0_54] : memref<48x64x16xbf16, #tpu.memory_space<vmem>>, vector<1x64x16xbf16>
    %82 = vector.shape_cast %81 : vector<1x64x16xbf16> to vector<64x16xbf16>
    %cst_55 = arith.constant dense<0.000000e+00> : vector<16x64xf32>
    %83 = tpu.matmul %80, %82, %cst_55 {dimension_numbers = #tpu.dot_dimension_numbers<[1], [1], [0], [0], [0, 0, 1, 0], [], []>} : vector<16x16xbf16>, vector<64x16xbf16>, vector<16x64xf32> -> vector<16x64xf32>
    %84 = arith.addf %55, %83 : vector<16x64xf32>
    %c1_56 = arith.constant 1 : index
    %c0_57 = arith.constant 0 : index
    %c0_58 = arith.constant 0 : index
    %85 = vector.load %arg3[%c1_56, %c0_57, %c0_58] : memref<48x64x16xbf16, #tpu.memory_space<vmem>>, vector<1x64x16xbf16>
    %86 = vector.shape_cast %85 : vector<1x64x16xbf16> to vector<64x16xbf16>
    %cst_59 = arith.constant dense<0.000000e+00> : vector<16x16xf32>
    %87 = tpu.matmul %53, %86, %cst_59 {dimension_numbers = #tpu.dot_dimension_numbers<[1], [0], [0], [1], [0, 0, 1, 1], [], []>} : vector<16x64xbf16>, vector<64x16xbf16>, vector<16x16xf32> -> vector<16x16xf32>
    %c1_60 = arith.constant 1 : index
    %c0_61 = arith.constant 0 : index
    %c0_62 = arith.constant 0 : index
    %88 = vector.load %arg4[%c1_60, %c0_61, %c0_62] : memref<12x16x16xf32, #tpu.memory_space<vmem>>, vector<1x16x16xf32>
    %89 = vector.shape_cast %88 : vector<1x16x16xf32> to vector<16x16xf32>
    %90 = arith.addf %87, %89 : vector<16x16xf32>
    %c5 = arith.constant 5 : index
    %c0_63 = arith.constant 0 : index
    %c0_64 = arith.constant 0 : index
    %91 = vector.load %arg3[%c5, %c0_63, %c0_64] : memref<48x64x16xbf16, #tpu.memory_space<vmem>>, vector<1x64x16xbf16>
    %92 = vector.shape_cast %91 : vector<1x64x16xbf16> to vector<64x16xbf16>
    %cst_65 = arith.constant dense<0.000000e+00> : vector<16x16xf32>
    %93 = tpu.matmul %53, %92, %cst_65 {dimension_numbers = #tpu.dot_dimension_numbers<[1], [0], [0], [1], [0, 0, 1, 1], [], []>} : vector<16x64xbf16>, vector<64x16xbf16>, vector<16x16xf32> -> vector<16x16xf32>
    %c9 = arith.constant 9 : index
    %c0_66 = arith.constant 0 : index
    %c0_67 = arith.constant 0 : index
    %94 = vector.load %arg3[%c9, %c0_66, %c0_67] : memref<48x64x16xbf16, #tpu.memory_space<vmem>>, vector<1x64x16xbf16>
    %95 = vector.shape_cast %94 : vector<1x64x16xbf16> to vector<64x16xbf16>
    %cst_68 = arith.constant dense<0.000000e+00> : vector<16x16xf32>
    %96 = tpu.matmul %53, %95, %cst_68 {dimension_numbers = #tpu.dot_dimension_numbers<[1], [0], [0], [1], [0, 0, 1, 1], [], []>} : vector<16x64xbf16>, vector<64x16xbf16>, vector<16x16xf32> -> vector<16x16xf32>
    %97 = arith.truncf %90 : vector<16x16xf32> to vector<16x16xbf16>
    %98 = arith.truncf %93 : vector<16x16xf32> to vector<16x16xbf16>
    %cst_69 = arith.constant dense<0.000000e+00> : vector<16x16xf32>
    %99 = tpu.matmul %97, %98, %cst_69 {dimension_numbers = #tpu.dot_dimension_numbers<[1], [1], [0], [0], [0, 0, 1, 0], [], []>} : vector<16x16xbf16>, vector<16x16xbf16>, vector<16x16xf32> -> vector<16x16xf32>
    %100 = math.exp %99 : vector<16x16xf32>
    %cst_70 = arith.constant dense<0.000000e+00> : vector<16xf32>
    %101 = vector.multi_reduction <add>, %100, %cst_70 [1] : vector<16x16xf32> to vector<16xf32>
    %102 = vector.shape_cast %101 : vector<16xf32> to vector<16x1xf32>
    %103 = tpu.reciprocal %102 {approx = true} : vector<16x1xf32> -> vector<16x1xf32>
    %104 = vector.broadcast %103 : vector<16x1xf32> to vector<16x16xf32>
    %105 = arith.mulf %100, %104 : vector<16x16xf32>
    %106 = arith.truncf %105 : vector<16x16xf32> to vector<16x16xbf16>
    %107 = arith.truncf %96 : vector<16x16xf32> to vector<16x16xbf16>
    %cst_71 = arith.constant dense<0.000000e+00> : vector<16x16xf32>
    %108 = tpu.matmul %106, %107, %cst_71 {dimension_numbers = #tpu.dot_dimension_numbers<[1], [0], [0], [1], [0, 0, 1, 1], [], []>} : vector<16x16xbf16>, vector<16x16xbf16>, vector<16x16xf32> -> vector<16x16xf32>
    %109 = arith.truncf %108 : vector<16x16xf32> to vector<16x16xbf16>
    %c13 = arith.constant 13 : index
    %c0_72 = arith.constant 0 : index
    %c0_73 = arith.constant 0 : index
    %110 = vector.load %arg3[%c13, %c0_72, %c0_73] : memref<48x64x16xbf16, #tpu.memory_space<vmem>>, vector<1x64x16xbf16>
    %111 = vector.shape_cast %110 : vector<1x64x16xbf16> to vector<64x16xbf16>
    %cst_74 = arith.constant dense<0.000000e+00> : vector<16x64xf32>
    %112 = tpu.matmul %109, %111, %cst_74 {dimension_numbers = #tpu.dot_dimension_numbers<[1], [1], [0], [0], [0, 0, 1, 0], [], []>} : vector<16x16xbf16>, vector<64x16xbf16>, vector<16x64xf32> -> vector<16x64xf32>
    %113 = arith.addf %84, %112 : vector<16x64xf32>
    %c2_75 = arith.constant 2 : index
    %c0_76 = arith.constant 0 : index
    %c0_77 = arith.constant 0 : index
    %114 = vector.load %arg3[%c2_75, %c0_76, %c0_77] : memref<48x64x16xbf16, #tpu.memory_space<vmem>>, vector<1x64x16xbf16>
    %115 = vector.shape_cast %114 : vector<1x64x16xbf16> to vector<64x16xbf16>
    %cst_78 = arith.constant dense<0.000000e+00> : vector<16x16xf32>
    %116 = tpu.matmul %53, %115, %cst_78 {dimension_numbers = #tpu.dot_dimension_numbers<[1], [0], [0], [1], [0, 0, 1, 1], [], []>} : vector<16x64xbf16>, vector<64x16xbf16>, vector<16x16xf32> -> vector<16x16xf32>
    %c2_79 = arith.constant 2 : index
    %c0_80 = arith.constant 0 : index
    %c0_81 = arith.constant 0 : index
    %117 = vector.load %arg4[%c2_79, %c0_80, %c0_81] : memref<12x16x16xf32, #tpu.memory_space<vmem>>, vector<1x16x16xf32>
    %118 = vector.shape_cast %117 : vector<1x16x16xf32> to vector<16x16xf32>
    %119 = arith.addf %116, %118 : vector<16x16xf32>
    %c6 = arith.constant 6 : index
    %c0_82 = arith.constant 0 : index
    %c0_83 = arith.constant 0 : index
    %120 = vector.load %arg3[%c6, %c0_82, %c0_83] : memref<48x64x16xbf16, #tpu.memory_space<vmem>>, vector<1x64x16xbf16>
    %121 = vector.shape_cast %120 : vector<1x64x16xbf16> to vector<64x16xbf16>
    %cst_84 = arith.constant dense<0.000000e+00> : vector<16x16xf32>
    %122 = tpu.matmul %53, %121, %cst_84 {dimension_numbers = #tpu.dot_dimension_numbers<[1], [0], [0], [1], [0, 0, 1, 1], [], []>} : vector<16x64xbf16>, vector<64x16xbf16>, vector<16x16xf32> -> vector<16x16xf32>
    %c10 = arith.constant 10 : index
    %c0_85 = arith.constant 0 : index
    %c0_86 = arith.constant 0 : index
    %123 = vector.load %arg3[%c10, %c0_85, %c0_86] : memref<48x64x16xbf16, #tpu.memory_space<vmem>>, vector<1x64x16xbf16>
    %124 = vector.shape_cast %123 : vector<1x64x16xbf16> to vector<64x16xbf16>
    %cst_87 = arith.constant dense<0.000000e+00> : vector<16x16xf32>
    %125 = tpu.matmul %53, %124, %cst_87 {dimension_numbers = #tpu.dot_dimension_numbers<[1], [0], [0], [1], [0, 0, 1, 1], [], []>} : vector<16x64xbf16>, vector<64x16xbf16>, vector<16x16xf32> -> vector<16x16xf32>
    %126 = arith.truncf %119 : vector<16x16xf32> to vector<16x16xbf16>
    %127 = arith.truncf %122 : vector<16x16xf32> to vector<16x16xbf16>
    %cst_88 = arith.constant dense<0.000000e+00> : vector<16x16xf32>
    %128 = tpu.matmul %126, %127, %cst_88 {dimension_numbers = #tpu.dot_dimension_numbers<[1], [1], [0], [0], [0, 0, 1, 0], [], []>} : vector<16x16xbf16>, vector<16x16xbf16>, vector<16x16xf32> -> vector<16x16xf32>
    %129 = math.exp %128 : vector<16x16xf32>
    %cst_89 = arith.constant dense<0.000000e+00> : vector<16xf32>
    %130 = vector.multi_reduction <add>, %129, %cst_89 [1] : vector<16x16xf32> to vector<16xf32>
    %131 = vector.shape_cast %130 : vector<16xf32> to vector<16x1xf32>
    %132 = tpu.reciprocal %131 {approx = true} : vector<16x1xf32> -> vector<16x1xf32>
    %133 = vector.broadcast %132 : vector<16x1xf32> to vector<16x16xf32>
    %134 = arith.mulf %129, %133 : vector<16x16xf32>
    %135 = arith.truncf %134 : vector<16x16xf32> to vector<16x16xbf16>
    %136 = arith.truncf %125 : vector<16x16xf32> to vector<16x16xbf16>
    %cst_90 = arith.constant dense<0.000000e+00> : vector<16x16xf32>
    %137 = tpu.matmul %135, %136, %cst_90 {dimension_numbers = #tpu.dot_dimension_numbers<[1], [0], [0], [1], [0, 0, 1, 1], [], []>} : vector<16x16xbf16>, vector<16x16xbf16>, vector<16x16xf32> -> vector<16x16xf32>
    %138 = arith.truncf %137 : vector<16x16xf32> to vector<16x16xbf16>
    %c14 = arith.constant 14 : index
    %c0_91 = arith.constant 0 : index
    %c0_92 = arith.constant 0 : index
    %139 = vector.load %arg3[%c14, %c0_91, %c0_92] : memref<48x64x16xbf16, #tpu.memory_space<vmem>>, vector<1x64x16xbf16>
    %140 = vector.shape_cast %139 : vector<1x64x16xbf16> to vector<64x16xbf16>
    %cst_93 = arith.constant dense<0.000000e+00> : vector<16x64xf32>
    %141 = tpu.matmul %138, %140, %cst_93 {dimension_numbers = #tpu.dot_dimension_numbers<[1], [1], [0], [0], [0, 0, 1, 0], [], []>} : vector<16x16xbf16>, vector<64x16xbf16>, vector<16x64xf32> -> vector<16x64xf32>
    %142 = arith.addf %113, %141 : vector<16x64xf32>
    %c3_94 = arith.constant 3 : index
    %c0_95 = arith.constant 0 : index
    %c0_96 = arith.constant 0 : index
    %143 = vector.load %arg3[%c3_94, %c0_95, %c0_96] : memref<48x64x16xbf16, #tpu.memory_space<vmem>>, vector<1x64x16xbf16>
    %144 = vector.shape_cast %143 : vector<1x64x16xbf16> to vector<64x16xbf16>
    %cst_97 = arith.constant dense<0.000000e+00> : vector<16x16xf32>
    %145 = tpu.matmul %53, %144, %cst_97 {dimension_numbers = #tpu.dot_dimension_numbers<[1], [0], [0], [1], [0, 0, 1, 1], [], []>} : vector<16x64xbf16>, vector<64x16xbf16>, vector<16x16xf32> -> vector<16x16xf32>
    %c3_98 = arith.constant 3 : index
    %c0_99 = arith.constant 0 : index
    %c0_100 = arith.constant 0 : index
    %146 = vector.load %arg4[%c3_98, %c0_99, %c0_100] : memref<12x16x16xf32, #tpu.memory_space<vmem>>, vector<1x16x16xf32>
    %147 = vector.shape_cast %146 : vector<1x16x16xf32> to vector<16x16xf32>
    %148 = arith.addf %145, %147 : vector<16x16xf32>
    %c7 = arith.constant 7 : index
    %c0_101 = arith.constant 0 : index
    %c0_102 = arith.constant 0 : index
    %149 = vector.load %arg3[%c7, %c0_101, %c0_102] : memref<48x64x16xbf16, #tpu.memory_space<vmem>>, vector<1x64x16xbf16>
    %150 = vector.shape_cast %149 : vector<1x64x16xbf16> to vector<64x16xbf16>
    %cst_103 = arith.constant dense<0.000000e+00> : vector<16x16xf32>
    %151 = tpu.matmul %53, %150, %cst_103 {dimension_numbers = #tpu.dot_dimension_numbers<[1], [0], [0], [1], [0, 0, 1, 1], [], []>} : vector<16x64xbf16>, vector<64x16xbf16>, vector<16x16xf32> -> vector<16x16xf32>
    %c11 = arith.constant 11 : index
    %c0_104 = arith.constant 0 : index
    %c0_105 = arith.constant 0 : index
    %152 = vector.load %arg3[%c11, %c0_104, %c0_105] : memref<48x64x16xbf16, #tpu.memory_space<vmem>>, vector<1x64x16xbf16>
    %153 = vector.shape_cast %152 : vector<1x64x16xbf16> to vector<64x16xbf16>
    %cst_106 = arith.constant dense<0.000000e+00> : vector<16x16xf32>
    %154 = tpu.matmul %53, %153, %cst_106 {dimension_numbers = #tpu.dot_dimension_numbers<[1], [0], [0], [1], [0, 0, 1, 1], [], []>} : vector<16x64xbf16>, vector<64x16xbf16>, vector<16x16xf32> -> vector<16x16xf32>
    %155 = arith.truncf %148 : vector<16x16xf32> to vector<16x16xbf16>
    %156 = arith.truncf %151 : vector<16x16xf32> to vector<16x16xbf16>
    %cst_107 = arith.constant dense<0.000000e+00> : vector<16x16xf32>
    %157 = tpu.matmul %155, %156, %cst_107 {dimension_numbers = #tpu.dot_dimension_numbers<[1], [1], [0], [0], [0, 0, 1, 0], [], []>} : vector<16x16xbf16>, vector<16x16xbf16>, vector<16x16xf32> -> vector<16x16xf32>
    %158 = math.exp %157 : vector<16x16xf32>
    %cst_108 = arith.constant dense<0.000000e+00> : vector<16xf32>
    %159 = vector.multi_reduction <add>, %158, %cst_108 [1] : vector<16x16xf32> to vector<16xf32>
    %160 = vector.shape_cast %159 : vector<16xf32> to vector<16x1xf32>
    %161 = tpu.reciprocal %160 {approx = true} : vector<16x1xf32> -> vector<16x1xf32>
    %162 = vector.broadcast %161 : vector<16x1xf32> to vector<16x16xf32>
    %163 = arith.mulf %158, %162 : vector<16x16xf32>
    %164 = arith.truncf %163 : vector<16x16xf32> to vector<16x16xbf16>
    %165 = arith.truncf %154 : vector<16x16xf32> to vector<16x16xbf16>
    %cst_109 = arith.constant dense<0.000000e+00> : vector<16x16xf32>
    %166 = tpu.matmul %164, %165, %cst_109 {dimension_numbers = #tpu.dot_dimension_numbers<[1], [0], [0], [1], [0, 0, 1, 1], [], []>} : vector<16x16xbf16>, vector<16x16xbf16>, vector<16x16xf32> -> vector<16x16xf32>
    %167 = arith.truncf %166 : vector<16x16xf32> to vector<16x16xbf16>
    %c15 = arith.constant 15 : index
    %c0_110 = arith.constant 0 : index
    %c0_111 = arith.constant 0 : index
    %168 = vector.load %arg3[%c15, %c0_110, %c0_111] : memref<48x64x16xbf16, #tpu.memory_space<vmem>>, vector<1x64x16xbf16>
    %169 = vector.shape_cast %168 : vector<1x64x16xbf16> to vector<64x16xbf16>
    %cst_112 = arith.constant dense<0.000000e+00> : vector<16x64xf32>
    %170 = tpu.matmul %167, %169, %cst_112 {dimension_numbers = #tpu.dot_dimension_numbers<[1], [1], [0], [0], [0, 0, 1, 0], [], []>} : vector<16x16xbf16>, vector<64x16xbf16>, vector<16x64xf32> -> vector<16x64xf32>
    %171 = arith.addf %142, %170 : vector<16x64xf32>
    %172 = arith.addf %52, %171 : vector<16x64xf32>
    %c9_113 = arith.constant 9 : index
    %c0_114 = arith.constant 0 : index
    %c0_115 = arith.constant 0 : index
    %173 = vector.load %arg8[%c9_113, %c0_114, %c0_115] : memref<26x16x64xf32, #tpu.memory_space<vmem>>, vector<1x16x64xf32>
    %174 = vector.shape_cast %173 : vector<1x16x64xf32> to vector<16x64xf32>
    %c10_116 = arith.constant 10 : index
    %c0_117 = arith.constant 0 : index
    %c0_118 = arith.constant 0 : index
    %175 = vector.load %arg8[%c10_116, %c0_117, %c0_118] : memref<26x16x64xf32, #tpu.memory_space<vmem>>, vector<1x16x64xf32>
    %176 = vector.shape_cast %175 : vector<1x16x64xf32> to vector<16x64xf32>
    %cst_119 = arith.constant dense<0.000000e+00> : vector<16xf32>
    %177 = vector.multi_reduction <add>, %172, %cst_119 [1] : vector<16x64xf32> to vector<16xf32>
    %178 = vector.shape_cast %177 : vector<16xf32> to vector<16x1xf32>
    %cst_120 = arith.constant 6.400000e+01 : f32
    %179 = vector.broadcast %cst_120 : f32 to vector<16x1xf32>
    %180 = arith.divf %178, %179 : vector<16x1xf32>
    %181 = vector.broadcast %180 : vector<16x1xf32> to vector<16x64xf32>
    %182 = arith.subf %172, %181 : vector<16x64xf32>
    %183 = arith.mulf %182, %182 : vector<16x64xf32>
    %cst_121 = arith.constant dense<0.000000e+00> : vector<16xf32>
    %184 = vector.multi_reduction <add>, %183, %cst_121 [1] : vector<16x64xf32> to vector<16xf32>
    %185 = vector.shape_cast %184 : vector<16xf32> to vector<16x1xf32>
    %cst_122 = arith.constant 6.400000e+01 : f32
    %186 = vector.broadcast %cst_122 : f32 to vector<16x1xf32>
    %187 = arith.divf %185, %186 : vector<16x1xf32>
    %cst_123 = arith.constant 9.99999974E-6 : f32
    %188 = vector.broadcast %cst_123 : f32 to vector<16x1xf32>
    %189 = arith.addf %187, %188 : vector<16x1xf32>
    %190 = math.rsqrt %189 : vector<16x1xf32>
    %191 = vector.broadcast %190 : vector<16x1xf32> to vector<16x64xf32>
    %192 = arith.mulf %182, %191 : vector<16x64xf32>
    %193 = arith.mulf %192, %174 : vector<16x64xf32>
    %194 = arith.addf %193, %176 : vector<16x64xf32>
    %195 = arith.truncf %194 : vector<16x64xf32> to vector<16x64xbf16>
    %c0_124 = arith.constant 0 : index
    %c0_125 = arith.constant 0 : index
    %c0_126 = arith.constant 0 : index
    %196 = vector.load %arg5[%c0_124, %c0_125, %c0_126] : memref<3x64x256xbf16, #tpu.memory_space<vmem>>, vector<1x64x256xbf16>
    %197 = vector.shape_cast %196 : vector<1x64x256xbf16> to vector<64x256xbf16>
    %cst_127 = arith.constant dense<0.000000e+00> : vector<16x256xf32>
    %198 = tpu.matmul %195, %197, %cst_127 {dimension_numbers = #tpu.dot_dimension_numbers<[1], [0], [0], [1], [0, 0, 1, 1], [], []>} : vector<16x64xbf16>, vector<64x256xbf16>, vector<16x256xf32> -> vector<16x256xf32>
    %c0_128 = arith.constant 0 : index
    %c0_129 = arith.constant 0 : index
    %c0_130 = arith.constant 0 : index
    %199 = vector.load %arg7[%c0_128, %c0_129, %c0_130] : memref<3x16x256xf32, #tpu.memory_space<vmem>>, vector<1x16x256xf32>
    %200 = vector.shape_cast %199 : vector<1x16x256xf32> to vector<16x256xf32>
    %201 = arith.addf %198, %200 : vector<16x256xf32>
    %cst_131 = arith.constant 0.000000e+00 : f32
    %202 = vector.broadcast %cst_131 : f32 to vector<16x256xf32>
    %203 = arith.maximumf %201, %202 : vector<16x256xf32>
    %204 = arith.truncf %203 : vector<16x256xf32> to vector<16x256xbf16>
    %c0_132 = arith.constant 0 : index
    %c0_133 = arith.constant 0 : index
    %c0_134 = arith.constant 0 : index
    %205 = vector.load %arg6[%c0_132, %c0_133, %c0_134] : memref<3x256x64xbf16, #tpu.memory_space<vmem>>, vector<1x256x64xbf16>
    %206 = vector.shape_cast %205 : vector<1x256x64xbf16> to vector<256x64xbf16>
    %cst_135 = arith.constant dense<0.000000e+00> : vector<16x64xf32>
    %207 = tpu.matmul %204, %206, %cst_135 {dimension_numbers = #tpu.dot_dimension_numbers<[1], [0], [0], [1], [0, 0, 1, 1], [], []>} : vector<16x256xbf16>, vector<256x64xbf16>, vector<16x64xf32> -> vector<16x64xf32>
    %c11_136 = arith.constant 11 : index
    %c0_137 = arith.constant 0 : index
    %c0_138 = arith.constant 0 : index
    %208 = vector.load %arg8[%c11_136, %c0_137, %c0_138] : memref<26x16x64xf32, #tpu.memory_space<vmem>>, vector<1x16x64xf32>
    %209 = vector.shape_cast %208 : vector<1x16x64xf32> to vector<16x64xf32>
    %210 = arith.addf %207, %209 : vector<16x64xf32>
    %211 = arith.addf %194, %210 : vector<16x64xf32>
    %c12_139 = arith.constant 12 : index
    %c0_140 = arith.constant 0 : index
    %c0_141 = arith.constant 0 : index
    %212 = vector.load %arg8[%c12_139, %c0_140, %c0_141] : memref<26x16x64xf32, #tpu.memory_space<vmem>>, vector<1x16x64xf32>
    %213 = vector.shape_cast %212 : vector<1x16x64xf32> to vector<16x64xf32>
    %c13_142 = arith.constant 13 : index
    %c0_143 = arith.constant 0 : index
    %c0_144 = arith.constant 0 : index
    %214 = vector.load %arg8[%c13_142, %c0_143, %c0_144] : memref<26x16x64xf32, #tpu.memory_space<vmem>>, vector<1x16x64xf32>
    %215 = vector.shape_cast %214 : vector<1x16x64xf32> to vector<16x64xf32>
    %cst_145 = arith.constant dense<0.000000e+00> : vector<16xf32>
    %216 = vector.multi_reduction <add>, %211, %cst_145 [1] : vector<16x64xf32> to vector<16xf32>
    %217 = vector.shape_cast %216 : vector<16xf32> to vector<16x1xf32>
    %cst_146 = arith.constant 6.400000e+01 : f32
    %218 = vector.broadcast %cst_146 : f32 to vector<16x1xf32>
    %219 = arith.divf %217, %218 : vector<16x1xf32>
    %220 = vector.broadcast %219 : vector<16x1xf32> to vector<16x64xf32>
    %221 = arith.subf %211, %220 : vector<16x64xf32>
    %222 = arith.mulf %221, %221 : vector<16x64xf32>
    %cst_147 = arith.constant dense<0.000000e+00> : vector<16xf32>
    %223 = vector.multi_reduction <add>, %222, %cst_147 [1] : vector<16x64xf32> to vector<16xf32>
    %224 = vector.shape_cast %223 : vector<16xf32> to vector<16x1xf32>
    %cst_148 = arith.constant 6.400000e+01 : f32
    %225 = vector.broadcast %cst_148 : f32 to vector<16x1xf32>
    %226 = arith.divf %224, %225 : vector<16x1xf32>
    %cst_149 = arith.constant 9.99999974E-6 : f32
    %227 = vector.broadcast %cst_149 : f32 to vector<16x1xf32>
    %228 = arith.addf %226, %227 : vector<16x1xf32>
    %229 = math.rsqrt %228 : vector<16x1xf32>
    %230 = vector.broadcast %229 : vector<16x1xf32> to vector<16x64xf32>
    %231 = arith.mulf %221, %230 : vector<16x64xf32>
    %232 = arith.mulf %231, %213 : vector<16x64xf32>
    %233 = arith.addf %232, %215 : vector<16x64xf32>
    %234 = arith.truncf %233 : vector<16x64xf32> to vector<16x64xbf16>
    %c14_150 = arith.constant 14 : index
    %c0_151 = arith.constant 0 : index
    %c0_152 = arith.constant 0 : index
    %235 = vector.load %arg8[%c14_150, %c0_151, %c0_152] : memref<26x16x64xf32, #tpu.memory_space<vmem>>, vector<1x16x64xf32>
    %236 = vector.shape_cast %235 : vector<1x16x64xf32> to vector<16x64xf32>
    %c16 = arith.constant 16 : index
    %c0_153 = arith.constant 0 : index
    %c0_154 = arith.constant 0 : index
    %237 = vector.load %arg3[%c16, %c0_153, %c0_154] : memref<48x64x16xbf16, #tpu.memory_space<vmem>>, vector<1x64x16xbf16>
    %238 = vector.shape_cast %237 : vector<1x64x16xbf16> to vector<64x16xbf16>
    %cst_155 = arith.constant dense<0.000000e+00> : vector<16x16xf32>
    %239 = tpu.matmul %234, %238, %cst_155 {dimension_numbers = #tpu.dot_dimension_numbers<[1], [0], [0], [1], [0, 0, 1, 1], [], []>} : vector<16x64xbf16>, vector<64x16xbf16>, vector<16x16xf32> -> vector<16x16xf32>
    %c4_156 = arith.constant 4 : index
    %c0_157 = arith.constant 0 : index
    %c0_158 = arith.constant 0 : index
    %240 = vector.load %arg4[%c4_156, %c0_157, %c0_158] : memref<12x16x16xf32, #tpu.memory_space<vmem>>, vector<1x16x16xf32>
    %241 = vector.shape_cast %240 : vector<1x16x16xf32> to vector<16x16xf32>
    %242 = arith.addf %239, %241 : vector<16x16xf32>
    %c20 = arith.constant 20 : index
    %c0_159 = arith.constant 0 : index
    %c0_160 = arith.constant 0 : index
    %243 = vector.load %arg3[%c20, %c0_159, %c0_160] : memref<48x64x16xbf16, #tpu.memory_space<vmem>>, vector<1x64x16xbf16>
    %244 = vector.shape_cast %243 : vector<1x64x16xbf16> to vector<64x16xbf16>
    %cst_161 = arith.constant dense<0.000000e+00> : vector<16x16xf32>
    %245 = tpu.matmul %234, %244, %cst_161 {dimension_numbers = #tpu.dot_dimension_numbers<[1], [0], [0], [1], [0, 0, 1, 1], [], []>} : vector<16x64xbf16>, vector<64x16xbf16>, vector<16x16xf32> -> vector<16x16xf32>
    %c24 = arith.constant 24 : index
    %c0_162 = arith.constant 0 : index
    %c0_163 = arith.constant 0 : index
    %246 = vector.load %arg3[%c24, %c0_162, %c0_163] : memref<48x64x16xbf16, #tpu.memory_space<vmem>>, vector<1x64x16xbf16>
    %247 = vector.shape_cast %246 : vector<1x64x16xbf16> to vector<64x16xbf16>
    %cst_164 = arith.constant dense<0.000000e+00> : vector<16x16xf32>
    %248 = tpu.matmul %234, %247, %cst_164 {dimension_numbers = #tpu.dot_dimension_numbers<[1], [0], [0], [1], [0, 0, 1, 1], [], []>} : vector<16x64xbf16>, vector<64x16xbf16>, vector<16x16xf32> -> vector<16x16xf32>
    %249 = arith.truncf %242 : vector<16x16xf32> to vector<16x16xbf16>
    %250 = arith.truncf %245 : vector<16x16xf32> to vector<16x16xbf16>
    %cst_165 = arith.constant dense<0.000000e+00> : vector<16x16xf32>
    %251 = tpu.matmul %249, %250, %cst_165 {dimension_numbers = #tpu.dot_dimension_numbers<[1], [1], [0], [0], [0, 0, 1, 0], [], []>} : vector<16x16xbf16>, vector<16x16xbf16>, vector<16x16xf32> -> vector<16x16xf32>
    %252 = math.exp %251 : vector<16x16xf32>
    %cst_166 = arith.constant dense<0.000000e+00> : vector<16xf32>
    %253 = vector.multi_reduction <add>, %252, %cst_166 [1] : vector<16x16xf32> to vector<16xf32>
    %254 = vector.shape_cast %253 : vector<16xf32> to vector<16x1xf32>
    %255 = tpu.reciprocal %254 {approx = true} : vector<16x1xf32> -> vector<16x1xf32>
    %256 = vector.broadcast %255 : vector<16x1xf32> to vector<16x16xf32>
    %257 = arith.mulf %252, %256 : vector<16x16xf32>
    %258 = arith.truncf %257 : vector<16x16xf32> to vector<16x16xbf16>
    %259 = arith.truncf %248 : vector<16x16xf32> to vector<16x16xbf16>
    %cst_167 = arith.constant dense<0.000000e+00> : vector<16x16xf32>
    %260 = tpu.matmul %258, %259, %cst_167 {dimension_numbers = #tpu.dot_dimension_numbers<[1], [0], [0], [1], [0, 0, 1, 1], [], []>} : vector<16x16xbf16>, vector<16x16xbf16>, vector<16x16xf32> -> vector<16x16xf32>
    %261 = arith.truncf %260 : vector<16x16xf32> to vector<16x16xbf16>
    %c28 = arith.constant 28 : index
    %c0_168 = arith.constant 0 : index
    %c0_169 = arith.constant 0 : index
    %262 = vector.load %arg3[%c28, %c0_168, %c0_169] : memref<48x64x16xbf16, #tpu.memory_space<vmem>>, vector<1x64x16xbf16>
    %263 = vector.shape_cast %262 : vector<1x64x16xbf16> to vector<64x16xbf16>
    %cst_170 = arith.constant dense<0.000000e+00> : vector<16x64xf32>
    %264 = tpu.matmul %261, %263, %cst_170 {dimension_numbers = #tpu.dot_dimension_numbers<[1], [1], [0], [0], [0, 0, 1, 0], [], []>} : vector<16x16xbf16>, vector<64x16xbf16>, vector<16x64xf32> -> vector<16x64xf32>
    %265 = arith.addf %236, %264 : vector<16x64xf32>
    %c17 = arith.constant 17 : index
    %c0_171 = arith.constant 0 : index
    %c0_172 = arith.constant 0 : index
    %266 = vector.load %arg3[%c17, %c0_171, %c0_172] : memref<48x64x16xbf16, #tpu.memory_space<vmem>>, vector<1x64x16xbf16>
    %267 = vector.shape_cast %266 : vector<1x64x16xbf16> to vector<64x16xbf16>
    %cst_173 = arith.constant dense<0.000000e+00> : vector<16x16xf32>
    %268 = tpu.matmul %234, %267, %cst_173 {dimension_numbers = #tpu.dot_dimension_numbers<[1], [0], [0], [1], [0, 0, 1, 1], [], []>} : vector<16x64xbf16>, vector<64x16xbf16>, vector<16x16xf32> -> vector<16x16xf32>
    %c5_174 = arith.constant 5 : index
    %c0_175 = arith.constant 0 : index
    %c0_176 = arith.constant 0 : index
    %269 = vector.load %arg4[%c5_174, %c0_175, %c0_176] : memref<12x16x16xf32, #tpu.memory_space<vmem>>, vector<1x16x16xf32>
    %270 = vector.shape_cast %269 : vector<1x16x16xf32> to vector<16x16xf32>
    %271 = arith.addf %268, %270 : vector<16x16xf32>
    %c21 = arith.constant 21 : index
    %c0_177 = arith.constant 0 : index
    %c0_178 = arith.constant 0 : index
    %272 = vector.load %arg3[%c21, %c0_177, %c0_178] : memref<48x64x16xbf16, #tpu.memory_space<vmem>>, vector<1x64x16xbf16>
    %273 = vector.shape_cast %272 : vector<1x64x16xbf16> to vector<64x16xbf16>
    %cst_179 = arith.constant dense<0.000000e+00> : vector<16x16xf32>
    %274 = tpu.matmul %234, %273, %cst_179 {dimension_numbers = #tpu.dot_dimension_numbers<[1], [0], [0], [1], [0, 0, 1, 1], [], []>} : vector<16x64xbf16>, vector<64x16xbf16>, vector<16x16xf32> -> vector<16x16xf32>
    %c25 = arith.constant 25 : index
    %c0_180 = arith.constant 0 : index
    %c0_181 = arith.constant 0 : index
    %275 = vector.load %arg3[%c25, %c0_180, %c0_181] : memref<48x64x16xbf16, #tpu.memory_space<vmem>>, vector<1x64x16xbf16>
    %276 = vector.shape_cast %275 : vector<1x64x16xbf16> to vector<64x16xbf16>
    %cst_182 = arith.constant dense<0.000000e+00> : vector<16x16xf32>
    %277 = tpu.matmul %234, %276, %cst_182 {dimension_numbers = #tpu.dot_dimension_numbers<[1], [0], [0], [1], [0, 0, 1, 1], [], []>} : vector<16x64xbf16>, vector<64x16xbf16>, vector<16x16xf32> -> vector<16x16xf32>
    %278 = arith.truncf %271 : vector<16x16xf32> to vector<16x16xbf16>
    %279 = arith.truncf %274 : vector<16x16xf32> to vector<16x16xbf16>
    %cst_183 = arith.constant dense<0.000000e+00> : vector<16x16xf32>
    %280 = tpu.matmul %278, %279, %cst_183 {dimension_numbers = #tpu.dot_dimension_numbers<[1], [1], [0], [0], [0, 0, 1, 0], [], []>} : vector<16x16xbf16>, vector<16x16xbf16>, vector<16x16xf32> -> vector<16x16xf32>
    %281 = math.exp %280 : vector<16x16xf32>
    %cst_184 = arith.constant dense<0.000000e+00> : vector<16xf32>
    %282 = vector.multi_reduction <add>, %281, %cst_184 [1] : vector<16x16xf32> to vector<16xf32>
    %283 = vector.shape_cast %282 : vector<16xf32> to vector<16x1xf32>
    %284 = tpu.reciprocal %283 {approx = true} : vector<16x1xf32> -> vector<16x1xf32>
    %285 = vector.broadcast %284 : vector<16x1xf32> to vector<16x16xf32>
    %286 = arith.mulf %281, %285 : vector<16x16xf32>
    %287 = arith.truncf %286 : vector<16x16xf32> to vector<16x16xbf16>
    %288 = arith.truncf %277 : vector<16x16xf32> to vector<16x16xbf16>
    %cst_185 = arith.constant dense<0.000000e+00> : vector<16x16xf32>
    %289 = tpu.matmul %287, %288, %cst_185 {dimension_numbers = #tpu.dot_dimension_numbers<[1], [0], [0], [1], [0, 0, 1, 1], [], []>} : vector<16x16xbf16>, vector<16x16xbf16>, vector<16x16xf32> -> vector<16x16xf32>
    %290 = arith.truncf %289 : vector<16x16xf32> to vector<16x16xbf16>
    %c29 = arith.constant 29 : index
    %c0_186 = arith.constant 0 : index
    %c0_187 = arith.constant 0 : index
    %291 = vector.load %arg3[%c29, %c0_186, %c0_187] : memref<48x64x16xbf16, #tpu.memory_space<vmem>>, vector<1x64x16xbf16>
    %292 = vector.shape_cast %291 : vector<1x64x16xbf16> to vector<64x16xbf16>
    %cst_188 = arith.constant dense<0.000000e+00> : vector<16x64xf32>
    %293 = tpu.matmul %290, %292, %cst_188 {dimension_numbers = #tpu.dot_dimension_numbers<[1], [1], [0], [0], [0, 0, 1, 0], [], []>} : vector<16x16xbf16>, vector<64x16xbf16>, vector<16x64xf32> -> vector<16x64xf32>
    %294 = arith.addf %265, %293 : vector<16x64xf32>
    %c18 = arith.constant 18 : index
    %c0_189 = arith.constant 0 : index
    %c0_190 = arith.constant 0 : index
    %295 = vector.load %arg3[%c18, %c0_189, %c0_190] : memref<48x64x16xbf16, #tpu.memory_space<vmem>>, vector<1x64x16xbf16>
    %296 = vector.shape_cast %295 : vector<1x64x16xbf16> to vector<64x16xbf16>
    %cst_191 = arith.constant dense<0.000000e+00> : vector<16x16xf32>
    %297 = tpu.matmul %234, %296, %cst_191 {dimension_numbers = #tpu.dot_dimension_numbers<[1], [0], [0], [1], [0, 0, 1, 1], [], []>} : vector<16x64xbf16>, vector<64x16xbf16>, vector<16x16xf32> -> vector<16x16xf32>
    %c6_192 = arith.constant 6 : index
    %c0_193 = arith.constant 0 : index
    %c0_194 = arith.constant 0 : index
    %298 = vector.load %arg4[%c6_192, %c0_193, %c0_194] : memref<12x16x16xf32, #tpu.memory_space<vmem>>, vector<1x16x16xf32>
    %299 = vector.shape_cast %298 : vector<1x16x16xf32> to vector<16x16xf32>
    %300 = arith.addf %297, %299 : vector<16x16xf32>
    %c22 = arith.constant 22 : index
    %c0_195 = arith.constant 0 : index
    %c0_196 = arith.constant 0 : index
    %301 = vector.load %arg3[%c22, %c0_195, %c0_196] : memref<48x64x16xbf16, #tpu.memory_space<vmem>>, vector<1x64x16xbf16>
    %302 = vector.shape_cast %301 : vector<1x64x16xbf16> to vector<64x16xbf16>
    %cst_197 = arith.constant dense<0.000000e+00> : vector<16x16xf32>
    %303 = tpu.matmul %234, %302, %cst_197 {dimension_numbers = #tpu.dot_dimension_numbers<[1], [0], [0], [1], [0, 0, 1, 1], [], []>} : vector<16x64xbf16>, vector<64x16xbf16>, vector<16x16xf32> -> vector<16x16xf32>
    %c26 = arith.constant 26 : index
    %c0_198 = arith.constant 0 : index
    %c0_199 = arith.constant 0 : index
    %304 = vector.load %arg3[%c26, %c0_198, %c0_199] : memref<48x64x16xbf16, #tpu.memory_space<vmem>>, vector<1x64x16xbf16>
    %305 = vector.shape_cast %304 : vector<1x64x16xbf16> to vector<64x16xbf16>
    %cst_200 = arith.constant dense<0.000000e+00> : vector<16x16xf32>
    %306 = tpu.matmul %234, %305, %cst_200 {dimension_numbers = #tpu.dot_dimension_numbers<[1], [0], [0], [1], [0, 0, 1, 1], [], []>} : vector<16x64xbf16>, vector<64x16xbf16>, vector<16x16xf32> -> vector<16x16xf32>
    %307 = arith.truncf %300 : vector<16x16xf32> to vector<16x16xbf16>
    %308 = arith.truncf %303 : vector<16x16xf32> to vector<16x16xbf16>
    %cst_201 = arith.constant dense<0.000000e+00> : vector<16x16xf32>
    %309 = tpu.matmul %307, %308, %cst_201 {dimension_numbers = #tpu.dot_dimension_numbers<[1], [1], [0], [0], [0, 0, 1, 0], [], []>} : vector<16x16xbf16>, vector<16x16xbf16>, vector<16x16xf32> -> vector<16x16xf32>
    %310 = math.exp %309 : vector<16x16xf32>
    %cst_202 = arith.constant dense<0.000000e+00> : vector<16xf32>
    %311 = vector.multi_reduction <add>, %310, %cst_202 [1] : vector<16x16xf32> to vector<16xf32>
    %312 = vector.shape_cast %311 : vector<16xf32> to vector<16x1xf32>
    %313 = tpu.reciprocal %312 {approx = true} : vector<16x1xf32> -> vector<16x1xf32>
    %314 = vector.broadcast %313 : vector<16x1xf32> to vector<16x16xf32>
    %315 = arith.mulf %310, %314 : vector<16x16xf32>
    %316 = arith.truncf %315 : vector<16x16xf32> to vector<16x16xbf16>
    %317 = arith.truncf %306 : vector<16x16xf32> to vector<16x16xbf16>
    %cst_203 = arith.constant dense<0.000000e+00> : vector<16x16xf32>
    %318 = tpu.matmul %316, %317, %cst_203 {dimension_numbers = #tpu.dot_dimension_numbers<[1], [0], [0], [1], [0, 0, 1, 1], [], []>} : vector<16x16xbf16>, vector<16x16xbf16>, vector<16x16xf32> -> vector<16x16xf32>
    %319 = arith.truncf %318 : vector<16x16xf32> to vector<16x16xbf16>
    %c30 = arith.constant 30 : index
    %c0_204 = arith.constant 0 : index
    %c0_205 = arith.constant 0 : index
    %320 = vector.load %arg3[%c30, %c0_204, %c0_205] : memref<48x64x16xbf16, #tpu.memory_space<vmem>>, vector<1x64x16xbf16>
    %321 = vector.shape_cast %320 : vector<1x64x16xbf16> to vector<64x16xbf16>
    %cst_206 = arith.constant dense<0.000000e+00> : vector<16x64xf32>
    %322 = tpu.matmul %319, %321, %cst_206 {dimension_numbers = #tpu.dot_dimension_numbers<[1], [1], [0], [0], [0, 0, 1, 0], [], []>} : vector<16x16xbf16>, vector<64x16xbf16>, vector<16x64xf32> -> vector<16x64xf32>
    %323 = arith.addf %294, %322 : vector<16x64xf32>
    %c19 = arith.constant 19 : index
    %c0_207 = arith.constant 0 : index
    %c0_208 = arith.constant 0 : index
    %324 = vector.load %arg3[%c19, %c0_207, %c0_208] : memref<48x64x16xbf16, #tpu.memory_space<vmem>>, vector<1x64x16xbf16>
    %325 = vector.shape_cast %324 : vector<1x64x16xbf16> to vector<64x16xbf16>
    %cst_209 = arith.constant dense<0.000000e+00> : vector<16x16xf32>
    %326 = tpu.matmul %234, %325, %cst_209 {dimension_numbers = #tpu.dot_dimension_numbers<[1], [0], [0], [1], [0, 0, 1, 1], [], []>} : vector<16x64xbf16>, vector<64x16xbf16>, vector<16x16xf32> -> vector<16x16xf32>
    %c7_210 = arith.constant 7 : index
    %c0_211 = arith.constant 0 : index
    %c0_212 = arith.constant 0 : index
    %327 = vector.load %arg4[%c7_210, %c0_211, %c0_212] : memref<12x16x16xf32, #tpu.memory_space<vmem>>, vector<1x16x16xf32>
    %328 = vector.shape_cast %327 : vector<1x16x16xf32> to vector<16x16xf32>
    %329 = arith.addf %326, %328 : vector<16x16xf32>
    %c23 = arith.constant 23 : index
    %c0_213 = arith.constant 0 : index
    %c0_214 = arith.constant 0 : index
    %330 = vector.load %arg3[%c23, %c0_213, %c0_214] : memref<48x64x16xbf16, #tpu.memory_space<vmem>>, vector<1x64x16xbf16>
    %331 = vector.shape_cast %330 : vector<1x64x16xbf16> to vector<64x16xbf16>
    %cst_215 = arith.constant dense<0.000000e+00> : vector<16x16xf32>
    %332 = tpu.matmul %234, %331, %cst_215 {dimension_numbers = #tpu.dot_dimension_numbers<[1], [0], [0], [1], [0, 0, 1, 1], [], []>} : vector<16x64xbf16>, vector<64x16xbf16>, vector<16x16xf32> -> vector<16x16xf32>
    %c27 = arith.constant 27 : index
    %c0_216 = arith.constant 0 : index
    %c0_217 = arith.constant 0 : index
    %333 = vector.load %arg3[%c27, %c0_216, %c0_217] : memref<48x64x16xbf16, #tpu.memory_space<vmem>>, vector<1x64x16xbf16>
    %334 = vector.shape_cast %333 : vector<1x64x16xbf16> to vector<64x16xbf16>
    %cst_218 = arith.constant dense<0.000000e+00> : vector<16x16xf32>
    %335 = tpu.matmul %234, %334, %cst_218 {dimension_numbers = #tpu.dot_dimension_numbers<[1], [0], [0], [1], [0, 0, 1, 1], [], []>} : vector<16x64xbf16>, vector<64x16xbf16>, vector<16x16xf32> -> vector<16x16xf32>
    %336 = arith.truncf %329 : vector<16x16xf32> to vector<16x16xbf16>
    %337 = arith.truncf %332 : vector<16x16xf32> to vector<16x16xbf16>
    %cst_219 = arith.constant dense<0.000000e+00> : vector<16x16xf32>
    %338 = tpu.matmul %336, %337, %cst_219 {dimension_numbers = #tpu.dot_dimension_numbers<[1], [1], [0], [0], [0, 0, 1, 0], [], []>} : vector<16x16xbf16>, vector<16x16xbf16>, vector<16x16xf32> -> vector<16x16xf32>
    %339 = math.exp %338 : vector<16x16xf32>
    %cst_220 = arith.constant dense<0.000000e+00> : vector<16xf32>
    %340 = vector.multi_reduction <add>, %339, %cst_220 [1] : vector<16x16xf32> to vector<16xf32>
    %341 = vector.shape_cast %340 : vector<16xf32> to vector<16x1xf32>
    %342 = tpu.reciprocal %341 {approx = true} : vector<16x1xf32> -> vector<16x1xf32>
    %343 = vector.broadcast %342 : vector<16x1xf32> to vector<16x16xf32>
    %344 = arith.mulf %339, %343 : vector<16x16xf32>
    %345 = arith.truncf %344 : vector<16x16xf32> to vector<16x16xbf16>
    %346 = arith.truncf %335 : vector<16x16xf32> to vector<16x16xbf16>
    %cst_221 = arith.constant dense<0.000000e+00> : vector<16x16xf32>
    %347 = tpu.matmul %345, %346, %cst_221 {dimension_numbers = #tpu.dot_dimension_numbers<[1], [0], [0], [1], [0, 0, 1, 1], [], []>} : vector<16x16xbf16>, vector<16x16xbf16>, vector<16x16xf32> -> vector<16x16xf32>
    %348 = arith.truncf %347 : vector<16x16xf32> to vector<16x16xbf16>
    %c31 = arith.constant 31 : index
    %c0_222 = arith.constant 0 : index
    %c0_223 = arith.constant 0 : index
    %349 = vector.load %arg3[%c31, %c0_222, %c0_223] : memref<48x64x16xbf16, #tpu.memory_space<vmem>>, vector<1x64x16xbf16>
    %350 = vector.shape_cast %349 : vector<1x64x16xbf16> to vector<64x16xbf16>
    %cst_224 = arith.constant dense<0.000000e+00> : vector<16x64xf32>
    %351 = tpu.matmul %348, %350, %cst_224 {dimension_numbers = #tpu.dot_dimension_numbers<[1], [1], [0], [0], [0, 0, 1, 0], [], []>} : vector<16x16xbf16>, vector<64x16xbf16>, vector<16x64xf32> -> vector<16x64xf32>
    %352 = arith.addf %323, %351 : vector<16x64xf32>
    %353 = arith.addf %233, %352 : vector<16x64xf32>
    %c15_225 = arith.constant 15 : index
    %c0_226 = arith.constant 0 : index
    %c0_227 = arith.constant 0 : index
    %354 = vector.load %arg8[%c15_225, %c0_226, %c0_227] : memref<26x16x64xf32, #tpu.memory_space<vmem>>, vector<1x16x64xf32>
    %355 = vector.shape_cast %354 : vector<1x16x64xf32> to vector<16x64xf32>
    %c16_228 = arith.constant 16 : index
    %c0_229 = arith.constant 0 : index
    %c0_230 = arith.constant 0 : index
    %356 = vector.load %arg8[%c16_228, %c0_229, %c0_230] : memref<26x16x64xf32, #tpu.memory_space<vmem>>, vector<1x16x64xf32>
    %357 = vector.shape_cast %356 : vector<1x16x64xf32> to vector<16x64xf32>
    %cst_231 = arith.constant dense<0.000000e+00> : vector<16xf32>
    %358 = vector.multi_reduction <add>, %353, %cst_231 [1] : vector<16x64xf32> to vector<16xf32>
    %359 = vector.shape_cast %358 : vector<16xf32> to vector<16x1xf32>
    %cst_232 = arith.constant 6.400000e+01 : f32
    %360 = vector.broadcast %cst_232 : f32 to vector<16x1xf32>
    %361 = arith.divf %359, %360 : vector<16x1xf32>
    %362 = vector.broadcast %361 : vector<16x1xf32> to vector<16x64xf32>
    %363 = arith.subf %353, %362 : vector<16x64xf32>
    %364 = arith.mulf %363, %363 : vector<16x64xf32>
    %cst_233 = arith.constant dense<0.000000e+00> : vector<16xf32>
    %365 = vector.multi_reduction <add>, %364, %cst_233 [1] : vector<16x64xf32> to vector<16xf32>
    %366 = vector.shape_cast %365 : vector<16xf32> to vector<16x1xf32>
    %cst_234 = arith.constant 6.400000e+01 : f32
    %367 = vector.broadcast %cst_234 : f32 to vector<16x1xf32>
    %368 = arith.divf %366, %367 : vector<16x1xf32>
    %cst_235 = arith.constant 9.99999974E-6 : f32
    %369 = vector.broadcast %cst_235 : f32 to vector<16x1xf32>
    %370 = arith.addf %368, %369 : vector<16x1xf32>
    %371 = math.rsqrt %370 : vector<16x1xf32>
    %372 = vector.broadcast %371 : vector<16x1xf32> to vector<16x64xf32>
    %373 = arith.mulf %363, %372 : vector<16x64xf32>
    %374 = arith.mulf %373, %355 : vector<16x64xf32>
    %375 = arith.addf %374, %357 : vector<16x64xf32>
    %376 = arith.truncf %375 : vector<16x64xf32> to vector<16x64xbf16>
    %c1_236 = arith.constant 1 : index
    %c0_237 = arith.constant 0 : index
    %c0_238 = arith.constant 0 : index
    %377 = vector.load %arg5[%c1_236, %c0_237, %c0_238] : memref<3x64x256xbf16, #tpu.memory_space<vmem>>, vector<1x64x256xbf16>
    %378 = vector.shape_cast %377 : vector<1x64x256xbf16> to vector<64x256xbf16>
    %cst_239 = arith.constant dense<0.000000e+00> : vector<16x256xf32>
    %379 = tpu.matmul %376, %378, %cst_239 {dimension_numbers = #tpu.dot_dimension_numbers<[1], [0], [0], [1], [0, 0, 1, 1], [], []>} : vector<16x64xbf16>, vector<64x256xbf16>, vector<16x256xf32> -> vector<16x256xf32>
    %c1_240 = arith.constant 1 : index
    %c0_241 = arith.constant 0 : index
    %c0_242 = arith.constant 0 : index
    %380 = vector.load %arg7[%c1_240, %c0_241, %c0_242] : memref<3x16x256xf32, #tpu.memory_space<vmem>>, vector<1x16x256xf32>
    %381 = vector.shape_cast %380 : vector<1x16x256xf32> to vector<16x256xf32>
    %382 = arith.addf %379, %381 : vector<16x256xf32>
    %cst_243 = arith.constant 0.000000e+00 : f32
    %383 = vector.broadcast %cst_243 : f32 to vector<16x256xf32>
    %384 = arith.maximumf %382, %383 : vector<16x256xf32>
    %385 = arith.truncf %384 : vector<16x256xf32> to vector<16x256xbf16>
    %c1_244 = arith.constant 1 : index
    %c0_245 = arith.constant 0 : index
    %c0_246 = arith.constant 0 : index
    %386 = vector.load %arg6[%c1_244, %c0_245, %c0_246] : memref<3x256x64xbf16, #tpu.memory_space<vmem>>, vector<1x256x64xbf16>
    %387 = vector.shape_cast %386 : vector<1x256x64xbf16> to vector<256x64xbf16>
    %cst_247 = arith.constant dense<0.000000e+00> : vector<16x64xf32>
    %388 = tpu.matmul %385, %387, %cst_247 {dimension_numbers = #tpu.dot_dimension_numbers<[1], [0], [0], [1], [0, 0, 1, 1], [], []>} : vector<16x256xbf16>, vector<256x64xbf16>, vector<16x64xf32> -> vector<16x64xf32>
    %c17_248 = arith.constant 17 : index
    %c0_249 = arith.constant 0 : index
    %c0_250 = arith.constant 0 : index
    %389 = vector.load %arg8[%c17_248, %c0_249, %c0_250] : memref<26x16x64xf32, #tpu.memory_space<vmem>>, vector<1x16x64xf32>
    %390 = vector.shape_cast %389 : vector<1x16x64xf32> to vector<16x64xf32>
    %391 = arith.addf %388, %390 : vector<16x64xf32>
    %392 = arith.addf %375, %391 : vector<16x64xf32>
    %c18_251 = arith.constant 18 : index
    %c0_252 = arith.constant 0 : index
    %c0_253 = arith.constant 0 : index
    %393 = vector.load %arg8[%c18_251, %c0_252, %c0_253] : memref<26x16x64xf32, #tpu.memory_space<vmem>>, vector<1x16x64xf32>
    %394 = vector.shape_cast %393 : vector<1x16x64xf32> to vector<16x64xf32>
    %c19_254 = arith.constant 19 : index
    %c0_255 = arith.constant 0 : index
    %c0_256 = arith.constant 0 : index
    %395 = vector.load %arg8[%c19_254, %c0_255, %c0_256] : memref<26x16x64xf32, #tpu.memory_space<vmem>>, vector<1x16x64xf32>
    %396 = vector.shape_cast %395 : vector<1x16x64xf32> to vector<16x64xf32>
    %cst_257 = arith.constant dense<0.000000e+00> : vector<16xf32>
    %397 = vector.multi_reduction <add>, %392, %cst_257 [1] : vector<16x64xf32> to vector<16xf32>
    %398 = vector.shape_cast %397 : vector<16xf32> to vector<16x1xf32>
    %cst_258 = arith.constant 6.400000e+01 : f32
    %399 = vector.broadcast %cst_258 : f32 to vector<16x1xf32>
    %400 = arith.divf %398, %399 : vector<16x1xf32>
    %401 = vector.broadcast %400 : vector<16x1xf32> to vector<16x64xf32>
    %402 = arith.subf %392, %401 : vector<16x64xf32>
    %403 = arith.mulf %402, %402 : vector<16x64xf32>
    %cst_259 = arith.constant dense<0.000000e+00> : vector<16xf32>
    %404 = vector.multi_reduction <add>, %403, %cst_259 [1] : vector<16x64xf32> to vector<16xf32>
    %405 = vector.shape_cast %404 : vector<16xf32> to vector<16x1xf32>
    %cst_260 = arith.constant 6.400000e+01 : f32
    %406 = vector.broadcast %cst_260 : f32 to vector<16x1xf32>
    %407 = arith.divf %405, %406 : vector<16x1xf32>
    %cst_261 = arith.constant 9.99999974E-6 : f32
    %408 = vector.broadcast %cst_261 : f32 to vector<16x1xf32>
    %409 = arith.addf %407, %408 : vector<16x1xf32>
    %410 = math.rsqrt %409 : vector<16x1xf32>
    %411 = vector.broadcast %410 : vector<16x1xf32> to vector<16x64xf32>
    %412 = arith.mulf %402, %411 : vector<16x64xf32>
    %413 = arith.mulf %412, %394 : vector<16x64xf32>
    %414 = arith.addf %413, %396 : vector<16x64xf32>
    %415 = arith.truncf %414 : vector<16x64xf32> to vector<16x64xbf16>
    %c20_262 = arith.constant 20 : index
    %c0_263 = arith.constant 0 : index
    %c0_264 = arith.constant 0 : index
    %416 = vector.load %arg8[%c20_262, %c0_263, %c0_264] : memref<26x16x64xf32, #tpu.memory_space<vmem>>, vector<1x16x64xf32>
    %417 = vector.shape_cast %416 : vector<1x16x64xf32> to vector<16x64xf32>
    %c32 = arith.constant 32 : index
    %c0_265 = arith.constant 0 : index
    %c0_266 = arith.constant 0 : index
    %418 = vector.load %arg3[%c32, %c0_265, %c0_266] : memref<48x64x16xbf16, #tpu.memory_space<vmem>>, vector<1x64x16xbf16>
    %419 = vector.shape_cast %418 : vector<1x64x16xbf16> to vector<64x16xbf16>
    %cst_267 = arith.constant dense<0.000000e+00> : vector<16x16xf32>
    %420 = tpu.matmul %415, %419, %cst_267 {dimension_numbers = #tpu.dot_dimension_numbers<[1], [0], [0], [1], [0, 0, 1, 1], [], []>} : vector<16x64xbf16>, vector<64x16xbf16>, vector<16x16xf32> -> vector<16x16xf32>
    %c8_268 = arith.constant 8 : index
    %c0_269 = arith.constant 0 : index
    %c0_270 = arith.constant 0 : index
    %421 = vector.load %arg4[%c8_268, %c0_269, %c0_270] : memref<12x16x16xf32, #tpu.memory_space<vmem>>, vector<1x16x16xf32>
    %422 = vector.shape_cast %421 : vector<1x16x16xf32> to vector<16x16xf32>
    %423 = arith.addf %420, %422 : vector<16x16xf32>
    %c36 = arith.constant 36 : index
    %c0_271 = arith.constant 0 : index
    %c0_272 = arith.constant 0 : index
    %424 = vector.load %arg3[%c36, %c0_271, %c0_272] : memref<48x64x16xbf16, #tpu.memory_space<vmem>>, vector<1x64x16xbf16>
    %425 = vector.shape_cast %424 : vector<1x64x16xbf16> to vector<64x16xbf16>
    %cst_273 = arith.constant dense<0.000000e+00> : vector<16x16xf32>
    %426 = tpu.matmul %415, %425, %cst_273 {dimension_numbers = #tpu.dot_dimension_numbers<[1], [0], [0], [1], [0, 0, 1, 1], [], []>} : vector<16x64xbf16>, vector<64x16xbf16>, vector<16x16xf32> -> vector<16x16xf32>
    %c40 = arith.constant 40 : index
    %c0_274 = arith.constant 0 : index
    %c0_275 = arith.constant 0 : index
    %427 = vector.load %arg3[%c40, %c0_274, %c0_275] : memref<48x64x16xbf16, #tpu.memory_space<vmem>>, vector<1x64x16xbf16>
    %428 = vector.shape_cast %427 : vector<1x64x16xbf16> to vector<64x16xbf16>
    %cst_276 = arith.constant dense<0.000000e+00> : vector<16x16xf32>
    %429 = tpu.matmul %415, %428, %cst_276 {dimension_numbers = #tpu.dot_dimension_numbers<[1], [0], [0], [1], [0, 0, 1, 1], [], []>} : vector<16x64xbf16>, vector<64x16xbf16>, vector<16x16xf32> -> vector<16x16xf32>
    %430 = arith.truncf %423 : vector<16x16xf32> to vector<16x16xbf16>
    %431 = arith.truncf %426 : vector<16x16xf32> to vector<16x16xbf16>
    %cst_277 = arith.constant dense<0.000000e+00> : vector<16x16xf32>
    %432 = tpu.matmul %430, %431, %cst_277 {dimension_numbers = #tpu.dot_dimension_numbers<[1], [1], [0], [0], [0, 0, 1, 0], [], []>} : vector<16x16xbf16>, vector<16x16xbf16>, vector<16x16xf32> -> vector<16x16xf32>
    %433 = math.exp %432 : vector<16x16xf32>
    %cst_278 = arith.constant dense<0.000000e+00> : vector<16xf32>
    %434 = vector.multi_reduction <add>, %433, %cst_278 [1] : vector<16x16xf32> to vector<16xf32>
    %435 = vector.shape_cast %434 : vector<16xf32> to vector<16x1xf32>
    %436 = tpu.reciprocal %435 {approx = true} : vector<16x1xf32> -> vector<16x1xf32>
    %437 = vector.broadcast %436 : vector<16x1xf32> to vector<16x16xf32>
    %438 = arith.mulf %433, %437 : vector<16x16xf32>
    %439 = arith.truncf %438 : vector<16x16xf32> to vector<16x16xbf16>
    %440 = arith.truncf %429 : vector<16x16xf32> to vector<16x16xbf16>
    %cst_279 = arith.constant dense<0.000000e+00> : vector<16x16xf32>
    %441 = tpu.matmul %439, %440, %cst_279 {dimension_numbers = #tpu.dot_dimension_numbers<[1], [0], [0], [1], [0, 0, 1, 1], [], []>} : vector<16x16xbf16>, vector<16x16xbf16>, vector<16x16xf32> -> vector<16x16xf32>
    %442 = arith.truncf %441 : vector<16x16xf32> to vector<16x16xbf16>
    %c44 = arith.constant 44 : index
    %c0_280 = arith.constant 0 : index
    %c0_281 = arith.constant 0 : index
    %443 = vector.load %arg3[%c44, %c0_280, %c0_281] : memref<48x64x16xbf16, #tpu.memory_space<vmem>>, vector<1x64x16xbf16>
    %444 = vector.shape_cast %443 : vector<1x64x16xbf16> to vector<64x16xbf16>
    %cst_282 = arith.constant dense<0.000000e+00> : vector<16x64xf32>
    %445 = tpu.matmul %442, %444, %cst_282 {dimension_numbers = #tpu.dot_dimension_numbers<[1], [1], [0], [0], [0, 0, 1, 0], [], []>} : vector<16x16xbf16>, vector<64x16xbf16>, vector<16x64xf32> -> vector<16x64xf32>
    %446 = arith.addf %417, %445 : vector<16x64xf32>
    %c33 = arith.constant 33 : index
    %c0_283 = arith.constant 0 : index
    %c0_284 = arith.constant 0 : index
    %447 = vector.load %arg3[%c33, %c0_283, %c0_284] : memref<48x64x16xbf16, #tpu.memory_space<vmem>>, vector<1x64x16xbf16>
    %448 = vector.shape_cast %447 : vector<1x64x16xbf16> to vector<64x16xbf16>
    %cst_285 = arith.constant dense<0.000000e+00> : vector<16x16xf32>
    %449 = tpu.matmul %415, %448, %cst_285 {dimension_numbers = #tpu.dot_dimension_numbers<[1], [0], [0], [1], [0, 0, 1, 1], [], []>} : vector<16x64xbf16>, vector<64x16xbf16>, vector<16x16xf32> -> vector<16x16xf32>
    %c9_286 = arith.constant 9 : index
    %c0_287 = arith.constant 0 : index
    %c0_288 = arith.constant 0 : index
    %450 = vector.load %arg4[%c9_286, %c0_287, %c0_288] : memref<12x16x16xf32, #tpu.memory_space<vmem>>, vector<1x16x16xf32>
    %451 = vector.shape_cast %450 : vector<1x16x16xf32> to vector<16x16xf32>
    %452 = arith.addf %449, %451 : vector<16x16xf32>
    %c37 = arith.constant 37 : index
    %c0_289 = arith.constant 0 : index
    %c0_290 = arith.constant 0 : index
    %453 = vector.load %arg3[%c37, %c0_289, %c0_290] : memref<48x64x16xbf16, #tpu.memory_space<vmem>>, vector<1x64x16xbf16>
    %454 = vector.shape_cast %453 : vector<1x64x16xbf16> to vector<64x16xbf16>
    %cst_291 = arith.constant dense<0.000000e+00> : vector<16x16xf32>
    %455 = tpu.matmul %415, %454, %cst_291 {dimension_numbers = #tpu.dot_dimension_numbers<[1], [0], [0], [1], [0, 0, 1, 1], [], []>} : vector<16x64xbf16>, vector<64x16xbf16>, vector<16x16xf32> -> vector<16x16xf32>
    %c41 = arith.constant 41 : index
    %c0_292 = arith.constant 0 : index
    %c0_293 = arith.constant 0 : index
    %456 = vector.load %arg3[%c41, %c0_292, %c0_293] : memref<48x64x16xbf16, #tpu.memory_space<vmem>>, vector<1x64x16xbf16>
    %457 = vector.shape_cast %456 : vector<1x64x16xbf16> to vector<64x16xbf16>
    %cst_294 = arith.constant dense<0.000000e+00> : vector<16x16xf32>
    %458 = tpu.matmul %415, %457, %cst_294 {dimension_numbers = #tpu.dot_dimension_numbers<[1], [0], [0], [1], [0, 0, 1, 1], [], []>} : vector<16x64xbf16>, vector<64x16xbf16>, vector<16x16xf32> -> vector<16x16xf32>
    %459 = arith.truncf %452 : vector<16x16xf32> to vector<16x16xbf16>
    %460 = arith.truncf %455 : vector<16x16xf32> to vector<16x16xbf16>
    %cst_295 = arith.constant dense<0.000000e+00> : vector<16x16xf32>
    %461 = tpu.matmul %459, %460, %cst_295 {dimension_numbers = #tpu.dot_dimension_numbers<[1], [1], [0], [0], [0, 0, 1, 0], [], []>} : vector<16x16xbf16>, vector<16x16xbf16>, vector<16x16xf32> -> vector<16x16xf32>
    %462 = math.exp %461 : vector<16x16xf32>
    %cst_296 = arith.constant dense<0.000000e+00> : vector<16xf32>
    %463 = vector.multi_reduction <add>, %462, %cst_296 [1] : vector<16x16xf32> to vector<16xf32>
    %464 = vector.shape_cast %463 : vector<16xf32> to vector<16x1xf32>
    %465 = tpu.reciprocal %464 {approx = true} : vector<16x1xf32> -> vector<16x1xf32>
    %466 = vector.broadcast %465 : vector<16x1xf32> to vector<16x16xf32>
    %467 = arith.mulf %462, %466 : vector<16x16xf32>
    %468 = arith.truncf %467 : vector<16x16xf32> to vector<16x16xbf16>
    %469 = arith.truncf %458 : vector<16x16xf32> to vector<16x16xbf16>
    %cst_297 = arith.constant dense<0.000000e+00> : vector<16x16xf32>
    %470 = tpu.matmul %468, %469, %cst_297 {dimension_numbers = #tpu.dot_dimension_numbers<[1], [0], [0], [1], [0, 0, 1, 1], [], []>} : vector<16x16xbf16>, vector<16x16xbf16>, vector<16x16xf32> -> vector<16x16xf32>
    %471 = arith.truncf %470 : vector<16x16xf32> to vector<16x16xbf16>
    %c45 = arith.constant 45 : index
    %c0_298 = arith.constant 0 : index
    %c0_299 = arith.constant 0 : index
    %472 = vector.load %arg3[%c45, %c0_298, %c0_299] : memref<48x64x16xbf16, #tpu.memory_space<vmem>>, vector<1x64x16xbf16>
    %473 = vector.shape_cast %472 : vector<1x64x16xbf16> to vector<64x16xbf16>
    %cst_300 = arith.constant dense<0.000000e+00> : vector<16x64xf32>
    %474 = tpu.matmul %471, %473, %cst_300 {dimension_numbers = #tpu.dot_dimension_numbers<[1], [1], [0], [0], [0, 0, 1, 0], [], []>} : vector<16x16xbf16>, vector<64x16xbf16>, vector<16x64xf32> -> vector<16x64xf32>
    %475 = arith.addf %446, %474 : vector<16x64xf32>
    %c34 = arith.constant 34 : index
    %c0_301 = arith.constant 0 : index
    %c0_302 = arith.constant 0 : index
    %476 = vector.load %arg3[%c34, %c0_301, %c0_302] : memref<48x64x16xbf16, #tpu.memory_space<vmem>>, vector<1x64x16xbf16>
    %477 = vector.shape_cast %476 : vector<1x64x16xbf16> to vector<64x16xbf16>
    %cst_303 = arith.constant dense<0.000000e+00> : vector<16x16xf32>
    %478 = tpu.matmul %415, %477, %cst_303 {dimension_numbers = #tpu.dot_dimension_numbers<[1], [0], [0], [1], [0, 0, 1, 1], [], []>} : vector<16x64xbf16>, vector<64x16xbf16>, vector<16x16xf32> -> vector<16x16xf32>
    %c10_304 = arith.constant 10 : index
    %c0_305 = arith.constant 0 : index
    %c0_306 = arith.constant 0 : index
    %479 = vector.load %arg4[%c10_304, %c0_305, %c0_306] : memref<12x16x16xf32, #tpu.memory_space<vmem>>, vector<1x16x16xf32>
    %480 = vector.shape_cast %479 : vector<1x16x16xf32> to vector<16x16xf32>
    %481 = arith.addf %478, %480 : vector<16x16xf32>
    %c38 = arith.constant 38 : index
    %c0_307 = arith.constant 0 : index
    %c0_308 = arith.constant 0 : index
    %482 = vector.load %arg3[%c38, %c0_307, %c0_308] : memref<48x64x16xbf16, #tpu.memory_space<vmem>>, vector<1x64x16xbf16>
    %483 = vector.shape_cast %482 : vector<1x64x16xbf16> to vector<64x16xbf16>
    %cst_309 = arith.constant dense<0.000000e+00> : vector<16x16xf32>
    %484 = tpu.matmul %415, %483, %cst_309 {dimension_numbers = #tpu.dot_dimension_numbers<[1], [0], [0], [1], [0, 0, 1, 1], [], []>} : vector<16x64xbf16>, vector<64x16xbf16>, vector<16x16xf32> -> vector<16x16xf32>
    %c42 = arith.constant 42 : index
    %c0_310 = arith.constant 0 : index
    %c0_311 = arith.constant 0 : index
    %485 = vector.load %arg3[%c42, %c0_310, %c0_311] : memref<48x64x16xbf16, #tpu.memory_space<vmem>>, vector<1x64x16xbf16>
    %486 = vector.shape_cast %485 : vector<1x64x16xbf16> to vector<64x16xbf16>
    %cst_312 = arith.constant dense<0.000000e+00> : vector<16x16xf32>
    %487 = tpu.matmul %415, %486, %cst_312 {dimension_numbers = #tpu.dot_dimension_numbers<[1], [0], [0], [1], [0, 0, 1, 1], [], []>} : vector<16x64xbf16>, vector<64x16xbf16>, vector<16x16xf32> -> vector<16x16xf32>
    %488 = arith.truncf %481 : vector<16x16xf32> to vector<16x16xbf16>
    %489 = arith.truncf %484 : vector<16x16xf32> to vector<16x16xbf16>
    %cst_313 = arith.constant dense<0.000000e+00> : vector<16x16xf32>
    %490 = tpu.matmul %488, %489, %cst_313 {dimension_numbers = #tpu.dot_dimension_numbers<[1], [1], [0], [0], [0, 0, 1, 0], [], []>} : vector<16x16xbf16>, vector<16x16xbf16>, vector<16x16xf32> -> vector<16x16xf32>
    %491 = math.exp %490 : vector<16x16xf32>
    %cst_314 = arith.constant dense<0.000000e+00> : vector<16xf32>
    %492 = vector.multi_reduction <add>, %491, %cst_314 [1] : vector<16x16xf32> to vector<16xf32>
    %493 = vector.shape_cast %492 : vector<16xf32> to vector<16x1xf32>
    %494 = tpu.reciprocal %493 {approx = true} : vector<16x1xf32> -> vector<16x1xf32>
    %495 = vector.broadcast %494 : vector<16x1xf32> to vector<16x16xf32>
    %496 = arith.mulf %491, %495 : vector<16x16xf32>
    %497 = arith.truncf %496 : vector<16x16xf32> to vector<16x16xbf16>
    %498 = arith.truncf %487 : vector<16x16xf32> to vector<16x16xbf16>
    %cst_315 = arith.constant dense<0.000000e+00> : vector<16x16xf32>
    %499 = tpu.matmul %497, %498, %cst_315 {dimension_numbers = #tpu.dot_dimension_numbers<[1], [0], [0], [1], [0, 0, 1, 1], [], []>} : vector<16x16xbf16>, vector<16x16xbf16>, vector<16x16xf32> -> vector<16x16xf32>
    %500 = arith.truncf %499 : vector<16x16xf32> to vector<16x16xbf16>
    %c46 = arith.constant 46 : index
    %c0_316 = arith.constant 0 : index
    %c0_317 = arith.constant 0 : index
    %501 = vector.load %arg3[%c46, %c0_316, %c0_317] : memref<48x64x16xbf16, #tpu.memory_space<vmem>>, vector<1x64x16xbf16>
    %502 = vector.shape_cast %501 : vector<1x64x16xbf16> to vector<64x16xbf16>
    %cst_318 = arith.constant dense<0.000000e+00> : vector<16x64xf32>
    %503 = tpu.matmul %500, %502, %cst_318 {dimension_numbers = #tpu.dot_dimension_numbers<[1], [1], [0], [0], [0, 0, 1, 0], [], []>} : vector<16x16xbf16>, vector<64x16xbf16>, vector<16x64xf32> -> vector<16x64xf32>
    %504 = arith.addf %475, %503 : vector<16x64xf32>
    %c35 = arith.constant 35 : index
    %c0_319 = arith.constant 0 : index
    %c0_320 = arith.constant 0 : index
    %505 = vector.load %arg3[%c35, %c0_319, %c0_320] : memref<48x64x16xbf16, #tpu.memory_space<vmem>>, vector<1x64x16xbf16>
    %506 = vector.shape_cast %505 : vector<1x64x16xbf16> to vector<64x16xbf16>
    %cst_321 = arith.constant dense<0.000000e+00> : vector<16x16xf32>
    %507 = tpu.matmul %415, %506, %cst_321 {dimension_numbers = #tpu.dot_dimension_numbers<[1], [0], [0], [1], [0, 0, 1, 1], [], []>} : vector<16x64xbf16>, vector<64x16xbf16>, vector<16x16xf32> -> vector<16x16xf32>
    %c11_322 = arith.constant 11 : index
    %c0_323 = arith.constant 0 : index
    %c0_324 = arith.constant 0 : index
    %508 = vector.load %arg4[%c11_322, %c0_323, %c0_324] : memref<12x16x16xf32, #tpu.memory_space<vmem>>, vector<1x16x16xf32>
    %509 = vector.shape_cast %508 : vector<1x16x16xf32> to vector<16x16xf32>
    %510 = arith.addf %507, %509 : vector<16x16xf32>
    %c39 = arith.constant 39 : index
    %c0_325 = arith.constant 0 : index
    %c0_326 = arith.constant 0 : index
    %511 = vector.load %arg3[%c39, %c0_325, %c0_326] : memref<48x64x16xbf16, #tpu.memory_space<vmem>>, vector<1x64x16xbf16>
    %512 = vector.shape_cast %511 : vector<1x64x16xbf16> to vector<64x16xbf16>
    %cst_327 = arith.constant dense<0.000000e+00> : vector<16x16xf32>
    %513 = tpu.matmul %415, %512, %cst_327 {dimension_numbers = #tpu.dot_dimension_numbers<[1], [0], [0], [1], [0, 0, 1, 1], [], []>} : vector<16x64xbf16>, vector<64x16xbf16>, vector<16x16xf32> -> vector<16x16xf32>
    %c43 = arith.constant 43 : index
    %c0_328 = arith.constant 0 : index
    %c0_329 = arith.constant 0 : index
    %514 = vector.load %arg3[%c43, %c0_328, %c0_329] : memref<48x64x16xbf16, #tpu.memory_space<vmem>>, vector<1x64x16xbf16>
    %515 = vector.shape_cast %514 : vector<1x64x16xbf16> to vector<64x16xbf16>
    %cst_330 = arith.constant dense<0.000000e+00> : vector<16x16xf32>
    %516 = tpu.matmul %415, %515, %cst_330 {dimension_numbers = #tpu.dot_dimension_numbers<[1], [0], [0], [1], [0, 0, 1, 1], [], []>} : vector<16x64xbf16>, vector<64x16xbf16>, vector<16x16xf32> -> vector<16x16xf32>
    %517 = arith.truncf %510 : vector<16x16xf32> to vector<16x16xbf16>
    %518 = arith.truncf %513 : vector<16x16xf32> to vector<16x16xbf16>
    %cst_331 = arith.constant dense<0.000000e+00> : vector<16x16xf32>
    %519 = tpu.matmul %517, %518, %cst_331 {dimension_numbers = #tpu.dot_dimension_numbers<[1], [1], [0], [0], [0, 0, 1, 0], [], []>} : vector<16x16xbf16>, vector<16x16xbf16>, vector<16x16xf32> -> vector<16x16xf32>
    %520 = math.exp %519 : vector<16x16xf32>
    %cst_332 = arith.constant dense<0.000000e+00> : vector<16xf32>
    %521 = vector.multi_reduction <add>, %520, %cst_332 [1] : vector<16x16xf32> to vector<16xf32>
    %522 = vector.shape_cast %521 : vector<16xf32> to vector<16x1xf32>
    %523 = tpu.reciprocal %522 {approx = true} : vector<16x1xf32> -> vector<16x1xf32>
    %524 = vector.broadcast %523 : vector<16x1xf32> to vector<16x16xf32>
    %525 = arith.mulf %520, %524 : vector<16x16xf32>
    %526 = arith.truncf %525 : vector<16x16xf32> to vector<16x16xbf16>
    %527 = arith.truncf %516 : vector<16x16xf32> to vector<16x16xbf16>
    %cst_333 = arith.constant dense<0.000000e+00> : vector<16x16xf32>
    %528 = tpu.matmul %526, %527, %cst_333 {dimension_numbers = #tpu.dot_dimension_numbers<[1], [0], [0], [1], [0, 0, 1, 1], [], []>} : vector<16x16xbf16>, vector<16x16xbf16>, vector<16x16xf32> -> vector<16x16xf32>
    %529 = arith.truncf %528 : vector<16x16xf32> to vector<16x16xbf16>
    %c47 = arith.constant 47 : index
    %c0_334 = arith.constant 0 : index
    %c0_335 = arith.constant 0 : index
    %530 = vector.load %arg3[%c47, %c0_334, %c0_335] : memref<48x64x16xbf16, #tpu.memory_space<vmem>>, vector<1x64x16xbf16>
    %531 = vector.shape_cast %530 : vector<1x64x16xbf16> to vector<64x16xbf16>
    %cst_336 = arith.constant dense<0.000000e+00> : vector<16x64xf32>
    %532 = tpu.matmul %529, %531, %cst_336 {dimension_numbers = #tpu.dot_dimension_numbers<[1], [1], [0], [0], [0, 0, 1, 0], [], []>} : vector<16x16xbf16>, vector<64x16xbf16>, vector<16x64xf32> -> vector<16x64xf32>
    %533 = arith.addf %504, %532 : vector<16x64xf32>
    %534 = arith.addf %414, %533 : vector<16x64xf32>
    %c21_337 = arith.constant 21 : index
    %c0_338 = arith.constant 0 : index
    %c0_339 = arith.constant 0 : index
    %535 = vector.load %arg8[%c21_337, %c0_338, %c0_339] : memref<26x16x64xf32, #tpu.memory_space<vmem>>, vector<1x16x64xf32>
    %536 = vector.shape_cast %535 : vector<1x16x64xf32> to vector<16x64xf32>
    %c22_340 = arith.constant 22 : index
    %c0_341 = arith.constant 0 : index
    %c0_342 = arith.constant 0 : index
    %537 = vector.load %arg8[%c22_340, %c0_341, %c0_342] : memref<26x16x64xf32, #tpu.memory_space<vmem>>, vector<1x16x64xf32>
    %538 = vector.shape_cast %537 : vector<1x16x64xf32> to vector<16x64xf32>
    %cst_343 = arith.constant dense<0.000000e+00> : vector<16xf32>
    %539 = vector.multi_reduction <add>, %534, %cst_343 [1] : vector<16x64xf32> to vector<16xf32>
    %540 = vector.shape_cast %539 : vector<16xf32> to vector<16x1xf32>
    %cst_344 = arith.constant 6.400000e+01 : f32
    %541 = vector.broadcast %cst_344 : f32 to vector<16x1xf32>
    %542 = arith.divf %540, %541 : vector<16x1xf32>
    %543 = vector.broadcast %542 : vector<16x1xf32> to vector<16x64xf32>
    %544 = arith.subf %534, %543 : vector<16x64xf32>
    %545 = arith.mulf %544, %544 : vector<16x64xf32>
    %cst_345 = arith.constant dense<0.000000e+00> : vector<16xf32>
    %546 = vector.multi_reduction <add>, %545, %cst_345 [1] : vector<16x64xf32> to vector<16xf32>
    %547 = vector.shape_cast %546 : vector<16xf32> to vector<16x1xf32>
    %cst_346 = arith.constant 6.400000e+01 : f32
    %548 = vector.broadcast %cst_346 : f32 to vector<16x1xf32>
    %549 = arith.divf %547, %548 : vector<16x1xf32>
    %cst_347 = arith.constant 9.99999974E-6 : f32
    %550 = vector.broadcast %cst_347 : f32 to vector<16x1xf32>
    %551 = arith.addf %549, %550 : vector<16x1xf32>
    %552 = math.rsqrt %551 : vector<16x1xf32>
    %553 = vector.broadcast %552 : vector<16x1xf32> to vector<16x64xf32>
    %554 = arith.mulf %544, %553 : vector<16x64xf32>
    %555 = arith.mulf %554, %536 : vector<16x64xf32>
    %556 = arith.addf %555, %538 : vector<16x64xf32>
    %557 = arith.truncf %556 : vector<16x64xf32> to vector<16x64xbf16>
    %c2_348 = arith.constant 2 : index
    %c0_349 = arith.constant 0 : index
    %c0_350 = arith.constant 0 : index
    %558 = vector.load %arg5[%c2_348, %c0_349, %c0_350] : memref<3x64x256xbf16, #tpu.memory_space<vmem>>, vector<1x64x256xbf16>
    %559 = vector.shape_cast %558 : vector<1x64x256xbf16> to vector<64x256xbf16>
    %cst_351 = arith.constant dense<0.000000e+00> : vector<16x256xf32>
    %560 = tpu.matmul %557, %559, %cst_351 {dimension_numbers = #tpu.dot_dimension_numbers<[1], [0], [0], [1], [0, 0, 1, 1], [], []>} : vector<16x64xbf16>, vector<64x256xbf16>, vector<16x256xf32> -> vector<16x256xf32>
    %c2_352 = arith.constant 2 : index
    %c0_353 = arith.constant 0 : index
    %c0_354 = arith.constant 0 : index
    %561 = vector.load %arg7[%c2_352, %c0_353, %c0_354] : memref<3x16x256xf32, #tpu.memory_space<vmem>>, vector<1x16x256xf32>
    %562 = vector.shape_cast %561 : vector<1x16x256xf32> to vector<16x256xf32>
    %563 = arith.addf %560, %562 : vector<16x256xf32>
    %cst_355 = arith.constant 0.000000e+00 : f32
    %564 = vector.broadcast %cst_355 : f32 to vector<16x256xf32>
    %565 = arith.maximumf %563, %564 : vector<16x256xf32>
    %566 = arith.truncf %565 : vector<16x256xf32> to vector<16x256xbf16>
    %c2_356 = arith.constant 2 : index
    %c0_357 = arith.constant 0 : index
    %c0_358 = arith.constant 0 : index
    %567 = vector.load %arg6[%c2_356, %c0_357, %c0_358] : memref<3x256x64xbf16, #tpu.memory_space<vmem>>, vector<1x256x64xbf16>
    %568 = vector.shape_cast %567 : vector<1x256x64xbf16> to vector<256x64xbf16>
    %cst_359 = arith.constant dense<0.000000e+00> : vector<16x64xf32>
    %569 = tpu.matmul %566, %568, %cst_359 {dimension_numbers = #tpu.dot_dimension_numbers<[1], [0], [0], [1], [0, 0, 1, 1], [], []>} : vector<16x256xbf16>, vector<256x64xbf16>, vector<16x64xf32> -> vector<16x64xf32>
    %c23_360 = arith.constant 23 : index
    %c0_361 = arith.constant 0 : index
    %c0_362 = arith.constant 0 : index
    %570 = vector.load %arg8[%c23_360, %c0_361, %c0_362] : memref<26x16x64xf32, #tpu.memory_space<vmem>>, vector<1x16x64xf32>
    %571 = vector.shape_cast %570 : vector<1x16x64xf32> to vector<16x64xf32>
    %572 = arith.addf %569, %571 : vector<16x64xf32>
    %573 = arith.addf %556, %572 : vector<16x64xf32>
    %c24_363 = arith.constant 24 : index
    %c0_364 = arith.constant 0 : index
    %c0_365 = arith.constant 0 : index
    %574 = vector.load %arg8[%c24_363, %c0_364, %c0_365] : memref<26x16x64xf32, #tpu.memory_space<vmem>>, vector<1x16x64xf32>
    %575 = vector.shape_cast %574 : vector<1x16x64xf32> to vector<16x64xf32>
    %c25_366 = arith.constant 25 : index
    %c0_367 = arith.constant 0 : index
    %c0_368 = arith.constant 0 : index
    %576 = vector.load %arg8[%c25_366, %c0_367, %c0_368] : memref<26x16x64xf32, #tpu.memory_space<vmem>>, vector<1x16x64xf32>
    %577 = vector.shape_cast %576 : vector<1x16x64xf32> to vector<16x64xf32>
    %cst_369 = arith.constant dense<0.000000e+00> : vector<16xf32>
    %578 = vector.multi_reduction <add>, %573, %cst_369 [1] : vector<16x64xf32> to vector<16xf32>
    %579 = vector.shape_cast %578 : vector<16xf32> to vector<16x1xf32>
    %cst_370 = arith.constant 6.400000e+01 : f32
    %580 = vector.broadcast %cst_370 : f32 to vector<16x1xf32>
    %581 = arith.divf %579, %580 : vector<16x1xf32>
    %582 = vector.broadcast %581 : vector<16x1xf32> to vector<16x64xf32>
    %583 = arith.subf %573, %582 : vector<16x64xf32>
    %584 = arith.mulf %583, %583 : vector<16x64xf32>
    %cst_371 = arith.constant dense<0.000000e+00> : vector<16xf32>
    %585 = vector.multi_reduction <add>, %584, %cst_371 [1] : vector<16x64xf32> to vector<16xf32>
    %586 = vector.shape_cast %585 : vector<16xf32> to vector<16x1xf32>
    %cst_372 = arith.constant 6.400000e+01 : f32
    %587 = vector.broadcast %cst_372 : f32 to vector<16x1xf32>
    %588 = arith.divf %586, %587 : vector<16x1xf32>
    %cst_373 = arith.constant 9.99999974E-6 : f32
    %589 = vector.broadcast %cst_373 : f32 to vector<16x1xf32>
    %590 = arith.addf %588, %589 : vector<16x1xf32>
    %591 = math.rsqrt %590 : vector<16x1xf32>
    %592 = vector.broadcast %591 : vector<16x1xf32> to vector<16x64xf32>
    %593 = arith.mulf %583, %592 : vector<16x64xf32>
    %594 = arith.mulf %593, %575 : vector<16x64xf32>
    %595 = arith.addf %594, %577 : vector<16x64xf32>
    %c5_374 = arith.constant 5 : index
    %c0_375 = arith.constant 0 : index
    %c0_376 = arith.constant 0 : index
    %596 = vector.load %arg8[%c5_374, %c0_375, %c0_376] : memref<26x16x64xf32, #tpu.memory_space<vmem>>, vector<1x16x64xf32>
    %597 = vector.shape_cast %596 : vector<1x16x64xf32> to vector<16x64xf32>
    %c6_377 = arith.constant 6 : index
    %c0_378 = arith.constant 0 : index
    %c0_379 = arith.constant 0 : index
    %598 = vector.load %arg8[%c6_377, %c0_378, %c0_379] : memref<26x16x64xf32, #tpu.memory_space<vmem>>, vector<1x16x64xf32>
    %599 = vector.shape_cast %598 : vector<1x16x64xf32> to vector<16x64xf32>
    %cst_380 = arith.constant dense<0.000000e+00> : vector<16xf32>
    %600 = vector.multi_reduction <add>, %595, %cst_380 [1] : vector<16x64xf32> to vector<16xf32>
    %601 = vector.shape_cast %600 : vector<16xf32> to vector<16x1xf32>
    %cst_381 = arith.constant 6.400000e+01 : f32
    %602 = vector.broadcast %cst_381 : f32 to vector<16x1xf32>
    %603 = arith.divf %601, %602 : vector<16x1xf32>
    %604 = vector.broadcast %603 : vector<16x1xf32> to vector<16x64xf32>
    %605 = arith.subf %595, %604 : vector<16x64xf32>
    %606 = arith.mulf %605, %605 : vector<16x64xf32>
    %cst_382 = arith.constant dense<0.000000e+00> : vector<16xf32>
    %607 = vector.multi_reduction <add>, %606, %cst_382 [1] : vector<16x64xf32> to vector<16xf32>
    %608 = vector.shape_cast %607 : vector<16xf32> to vector<16x1xf32>
    %cst_383 = arith.constant 6.400000e+01 : f32
    %609 = vector.broadcast %cst_383 : f32 to vector<16x1xf32>
    %610 = arith.divf %608, %609 : vector<16x1xf32>
    %cst_384 = arith.constant 9.99999974E-6 : f32
    %611 = vector.broadcast %cst_384 : f32 to vector<16x1xf32>
    %612 = arith.addf %610, %611 : vector<16x1xf32>
    %613 = math.rsqrt %612 : vector<16x1xf32>
    %614 = vector.broadcast %613 : vector<16x1xf32> to vector<16x64xf32>
    %615 = arith.mulf %605, %614 : vector<16x64xf32>
    %616 = arith.mulf %615, %597 : vector<16x64xf32>
    %617 = arith.addf %616, %599 : vector<16x64xf32>
    %c3_385 = arith.constant 3 : index
    %c0_386 = arith.constant 0 : index
    %c0_387 = arith.constant 0 : index
    %618 = vector.load %arg2[%c3_385, %c0_386, %c0_387] : memref<4x64x64xbf16, #tpu.memory_space<vmem>>, vector<1x64x64xbf16>
    %619 = vector.shape_cast %618 : vector<1x64x64xbf16> to vector<64x64xbf16>
    %620 = vector.extract_strided_slice %619 {offsets = [0, 0], sizes = [64, 16], strides = [1, 1]} : vector<64x64xbf16> to vector<64x16xbf16>
    %621 = arith.truncf %617 : vector<16x64xf32> to vector<16x64xbf16>
    %cst_388 = arith.constant dense<0.000000e+00> : vector<16x16xf32>
    %622 = tpu.matmul %621, %620, %cst_388 {dimension_numbers = #tpu.dot_dimension_numbers<[1], [0], [0], [1], [0, 0, 1, 1], [], []>} : vector<16x64xbf16>, vector<64x16xbf16>, vector<16x16xf32> -> vector<16x16xf32>
    %c7_389 = arith.constant 7 : index
    %c0_390 = arith.constant 0 : index
    %c0_391 = arith.constant 0 : index
    %623 = vector.load %arg8[%c7_389, %c0_390, %c0_391] : memref<26x16x64xf32, #tpu.memory_space<vmem>>, vector<1x16x64xf32>
    %624 = vector.shape_cast %623 : vector<1x16x64xf32> to vector<16x64xf32>
    %625 = vector.extract_strided_slice %624 {offsets = [0, 0], sizes = [16, 16], strides = [1, 1]} : vector<16x64xf32> to vector<16x16xf32>
    %626 = arith.addf %622, %625 : vector<16x16xf32>
    %c0_392 = arith.constant 0 : index
    %c0_393 = arith.constant 0 : index
    %627 = vector.load %arg9[%c0_392, %c0_393] : memref<16x16xf32, #tpu.memory_space<vmem>>, vector<16x16xf32>
    tpu.vector_store %arg9[%c0_392, %c0_393], %626 {strides = array<i32>} : memref<16x16xf32, #tpu.memory_space<vmem>>, vector<16x16xf32>,
    return
  }
}

</mosaic_0001>

<bundles_post_ra>
// kernel: graph_trans_forward.1
= control target key start
LH: loop header
LB: loop body
LE: loop exit
PB: predicated region body
PF: predicated region fallthrough
CT: control target
= control target key end

     0   :  { %vm45_vm0 = vcmask 1043456   ;;  %s8416_s0 = inlined_call_operand.vmem [shape: f32[16,8], index: 0, kind: input, shape index: {}]   ;;  %s8417_s1 = inlined_call_operand.vmem [shape: f32[16,16], index: 1, kind: input, shape index: {}]   ;;  %s8418_s2 = inlined_call_operand.vmem [shape: bf16[4,64,64], index: 2, kind: input, shape index: {}]   ;;  %s8419_s3 = inlined_call_operand.vmem [shape: bf16[48,64,16], index: 3, kind: input, shape index: {}]   ;;  %s8420_s4 = inlined_call_operand.vmem [shape: f32[12,16,16], index: 4, kind: input, shape index: {}]   ;;  %s8421_s5 = inlined_call_operand.vmem [shape: bf16[3,64,256], index: 5, kind: input, shape index: {}]   ;;  %s8422_s6 = inlined_call_operand.vmem [shape: bf16[3,256,64], index: 6, kind: input, shape index: {}]   ;;  %s8423_s7 = inlined_call_operand.vmem [shape: f32[3,16,256], index: 7, kind: input, shape index: {}]   ;;  %s8424_s8 = inlined_call_operand.vmem [shape: f32[26,16,64], index: 8, kind: input, shape index: {}]   ;;  %s8425_s9 = inlined_call_operand.hbm [shape: f32[16,16], index: 9, kind: output, shape index: {}]  }
   0x1   :  { %v40_v0 = vld [vmem:[%s8418_s2] sm:$0xf]  ;;  %v35_v2 = vld [vmem:[%s8416_s0 + $0x8] sm:$0xff] }
   0x2   :  { %v34_v1 = vld [vmem:[%s8416_s0] sm:$0xff]  ;;  %v47_v3 = vsel %vm45_vm0, %v40_v0, 0 }
   0x3   :  { %v36_v4 = vpack.c.bf16 %v35_v2, %v34_v1 }
   0x4   :  { %14 = vsyncpa [#allocation3], 0  ;;  %56 = vmatpush.bf16.msra.mxu2 %v47_v3  ;;  %vm41_vm1 = vcmask 64512   ;;  %v37_v6 = vld [vmem:[%s8417_s1] sm:$0xff]  ;;  %v38_v7 = vld [vmem:[%s8417_s1 + $0x8] sm:$0xff]  ;;  %vm64_vm2 = vcmask 130048  }
   0x5   :  { %v39_v10 = vpack.c.bf16 %v38_v7, %v37_v6  ;;  %v6382_v11 = vld [vmem:[%s8418_s2 + $0x38] sm:$0xff]  ;;  %v6381_v12 = vld [vmem:[%s8418_s2 + $0x30] sm:$0xff]  ;;  %v6380_v13 = vld [vmem:[%s8418_s2 + $0x28] sm:$0xff]  ;;  %vm127_vm3 = vcmask 523264   ;;  %v6815_v46 = vmov 64.0   ;;  %s6816_s17 = smov [#allocation2]  }
   0x6   :  { %v6379_v14 = vld [vmem:[%s8418_s2 + $0x20] sm:$0xff]  ;;  %v4633_v18 = vld [vmem:[%s8424_s8 + $0x10] sm:$0xff]  ;;  %v83_v19 = vld [vmem:[%s8424_s8 + $0x8] sm:$0xff]  ;;  %6659 = vrcp.f32 %v6815_v46  ;;  %s4619_s19 = sshll.u32 %s8425_s9, 4  ;;  %s6817_s21 = smov 128   ;;  %s4620_s19 = int_to_ptr.hbm [resolvable:$true] %s4619_s19 }
   0x7   :  { %4631 = vmatmul.msk.bf16.vlgmr.msra.gmra.mxu2 %vm41_vm1, %v36_v4  ;;  %v82_v16 = vld [vmem:[%s8424_s8] sm:$0xff]  ;;  %v4634_v21 = vld [vmem:[%s8424_s8 + $0x18] sm:$0xff]  ;;  %v6385_v32 = vld [vmem:[%s8418_s2 + $0x50] sm:$0xff]  ;;  %s6818_s22 = smov 8  }
   0x8   :  { %135 = vmatpush.bf16.msrb.mxu2 %v6382_v11  ;;  %v6386_v28 = vld [vmem:[%s8418_s2 + $0x58] sm:$0xff]  ;;  %v6384_v33 = vld [vmem:[%s8418_s2 + $0x48] sm:$0xff]  ;;  %v6383_v34 = vld [vmem:[%s8418_s2 + $0x40] sm:$0xff] }
   0x9   :  { %204 = vmatpush.bf16.msra.mxu0 %v6386_v28  ;;  %v4669_v38 = vld [vmem:[%s8424_s8 + $0x20] sm:$0xff]  ;;  %v4670_v42 = vld [vmem:[%s8424_s8 + $0x28] sm:$0xff]  ;;  %v6390_v63 = vld [vmem:[%s8419_s3 + $0x18] sm:$0xff] }
   0xa   :  { %v6394_v0 = vld [vmem:[%s8419_s3 + $0x98] sm:$0xff]  ;;  %v6389_v2 = vld [vmem:[%s8419_s3 + $0x10] sm:$0xff]  ;;  %v6392_v6 = vld [vmem:[%s8419_s3 + $0x88] sm:$0xff] }
   0xb   :  { %v6398_v1 = vld [vmem:[%s8419_s3 + $0x118] sm:$0xff]  ;;  %v6393_v3 = vld [vmem:[%s8419_s3 + $0x90] sm:$0xff]  ;;  %v6396_v7 = vld [vmem:[%s8419_s3 + $0x108] sm:$0xff] }
   0xc   :  { %136 = vmatpush.bf16.msrb.mxu2 %v6381_v12  ;;  %v6660_v47 = vpop.eup %6659  ;;  %v6397_v4 = vld [vmem:[%s8419_s3 + $0x110] sm:$0xff]  ;;  %v6391_v11 = vld [vmem:[%s8419_s3 + $0x80] sm:$0xff] }
   0xd   :  { %205 = vmatpush.bf16.msra.mxu0 %v6385_v32  ;;  %v227_v48 = vmul.f32 64.0, %v6660_v47  ;;  %vm231_vm4 = vweird.f32 %v6660_v47  ;;  %v6395_v12 = vld [vmem:[%s8419_s3 + $0x100] sm:$0xff] }
   0xf   :  { %v228_v49 = vsub.f32 1.0, %v227_v48 }
  0x10   :  { %137 = vmatpush.bf16.msrb.mxu2 %v6380_v13 }
  0x11   :  { %206 = vmatpush.bf16.msra.mxu0 %v6384_v33  ;;  %v229_v50 = vmul.f32 %v6660_v47, %v228_v49 }
  0x13   :  { %v230_v51 = vadd.f32 %v6660_v47, %v229_v50 }
  0x14   :  { %138 = vmatpush.bf16.msrb.mxu2 %v6379_v14  ;;  %v6406_v14 = vld [vmem:[%s8419_s3 + $0x38] sm:$0xff] }
  0x15   :  { %207 = vmatpush.bf16.msra.mxu0 %v6383_v34  ;;  %v6932_v52 = vsel %vm231_vm4, %v6660_v47, %v230_v51  ;;  %v4688_v34 = vld [vmem:[%s8424_s8 + $0x30] sm:$0xff] }
  0x18   :  { %414 = vmatpush.bf16.msra.mxu2 %v6398_v1 }
  0x1c   :  { %415 = vmatpush.bf16.msra.mxu2 %v6397_v4 }
  0x20   :  { %416 = vmatpush.bf16.msra.mxu2 %v6396_v7 }
  0x24   :  { %417 = vmatpush.bf16.msra.mxu2 %v6395_v12 }
  0x8a   :  { %v58_v5 = vpop.f32.mrf.mxu2 }
  0x92   :  { %v60_v8 = vpop.f32.mrf.mxu2 }
  0x93   :  { %v63_v9 = vpack.c.bf16 %v60_v8, %v58_v5  ;;  %v6388_v5 = vld [vmem:[%s8419_s3 + $0x8] sm:$0xff] }
  0x95   :  { %75 = vmatpush.bf16.msra.mxu1 %v63_v9 }
  0x98   :  { %4632 = vmatmul.msk.bf16.vlgmr.msra.gmra.mxu1 %vm64_vm2, %v39_v10 }
  0x99   :  { %320 = vmatpush.bf16.msrb.mxu1 %v6390_v63  ;;  %v6408_v63 = vld [vmem:[%s8419_s3 + $0xa8] sm:$0xff] }
  0x9d   :  { %321 = vmatpush.bf16.msrb.mxu1 %v6389_v2 }
  0xa1   :  { %322 = vmatpush.bf16.msrb.mxu1 %v6388_v5 }
 0x115   :  { %v77_v15 = vpop.f32.mrf.mxu1 }
 0x116   :  { %v84_v17 = vmul.f32 %v82_v16, %v77_v15 }
 0x118   :  { %v89_v22 = vadd.f32 %v4633_v18, %v84_v17  ;;  %v6405_v17 = vld [vmem:[%s8419_s3 + $0x30] sm:$0xff] }
 0x11a   :  { %v91_v25 = vmax.f32 %v89_v22, 0.0 }
 0x11d   :  { %v79_v20 = vpop.f32.mrf.mxu1 }
 0x11e   :  { %v85_v23 = vmul.f32 %v83_v19, %v79_v20 }
 0x120   :  { %v90_v24 = vadd.f32 %v4634_v21, %v85_v23  ;;  %v6404_v21 = vld [vmem:[%s8419_s3 + $0x28] sm:$0xff] }
 0x122   :  { %v92_v26 = vmax.f32 %v90_v24, 0.0  ;;  %v6403_v24 = vld [vmem:[%s8419_s3 + $0x20] sm:$0xff] }
 0x124   :  { %v93_v27 = vpack.c.bf16 %v92_v26, %v91_v25 }
 0x126   :  { %4659 = vmatmul.msk.bf16.vlgmr.msrb.gmra.mxu2 %vm127_vm3, %v93_v27 }
 0x127   :  { %580 = vmatpush.bf16.msrb.mxu2 %v6406_v14  ;;  %v4797_v14 = vld [vmem:[%s8420_s4 + $0x18] sm:$0xff] }
 0x12b   :  { %581 = vmatpush.bf16.msrb.mxu2 %v6405_v17  ;;  %v4796_v17 = vld [vmem:[%s8420_s4 + $0x10] sm:$0xff] }
 0x12f   :  { %582 = vmatpush.bf16.msrb.mxu2 %v6404_v21 }
 0x133   :  { %583 = vmatpush.bf16.msrb.mxu2 %v6403_v24  ;;  %v6414_v24 = vld [vmem:[%s8419_s3 + $0x138] sm:$0xff] }
 0x1a9   :  { %v140_v29 = vpop.f32.mrf.mxu2 }
 0x1b1   :  { %v142_v30 = vpop.f32.mrf.mxu2 }
 0x1b2   :  { %v145_v31 = vpack.c.bf16 %v142_v30, %v140_v29 }
 0x1b4   :  { %153 = vmatpush.bf16.msra.mxu3 %v145_v31 }
 0x1b7   :  { %4660 = vmatmul.msk.bf16.vlgmr.msra.gmra.mxu3 %vm64_vm2, %v39_v10  ;;  %v6387_v10 = vld [vmem:[%s8419_s3] sm:$0xff] }
 0x1b8   :  { %367 = vmatpush.bf16.msrb.mxu3 %v6394_v0  ;;  %323 = vmatpush.bf16.msrb.mxu1 %v6387_v10  ;;  %v6407_v0 = vld [vmem:[%s8419_s3 + $0xa0] sm:$0xff] }
 0x1bc   :  { %368 = vmatpush.bf16.msrb.mxu3 %v6393_v3 }
 0x1c0   :  { %369 = vmatpush.bf16.msrb.mxu3 %v6392_v6 }
 0x1c4   :  { %370 = vmatpush.bf16.msrb.mxu3 %v6391_v11 }
 0x23a   :  { %v155_v35 = vpop.f32.mrf.mxu3 }
 0x242   :  { %v157_v36 = vpop.f32.mrf.mxu3 }
 0x243   :  { %v160_v37 = vpack.c.bf16 %v157_v36, %v155_v35  ;;  %v4689_v36 = vld [vmem:[%s8424_s8 + $0x38] sm:$0xff] }
 0x245   :  { %4687 = vmatmul.msk.bf16.vlgmr.msra.gmra.mxu0 %vm127_vm3, %v160_v37 }
 0x2c2   :  { %v209_v39 = vpop.f32.mrf.mxu0 }
 0x2c3   :  { %v210_v40 = vadd.f32 %v4669_v38, %v209_v39 }
 0x2c5   :  { %v220_v41 = vsel %vm127_vm3, %v210_v40, 0.0 }
 0x2c6   :  { %221 = vadd.xlane.f32.xlu0 %v220_v41  ;;  %v4691_v41 = vld [vmem:[%s8424_s8 + $0x48] sm:$0xff] }
 0x2ca   :  { %v211_v43 = vpop.f32.mrf.mxu0 }
 0x2cb   :  { %v212_v44 = vadd.f32 %v4670_v42, %v211_v43 }
 0x2cd   :  { %v223_v45 = vsel %vm127_vm3, %v212_v44, 0.0 }
 0x2ce   :  { %224 = vadd.xlane.f32.xlu0 %v223_v45 }
 0x339   :  { %v222_v53 = vpop.xlane.xlu0 %221 }
 0x33a   :  { %v233_v54 = vmul.f32 %v6932_v52, %v222_v53  ;;  %v6410_v53 = vld [vmem:[%s8419_s3 + $0xb8] sm:$0xff] }
 0x33c   :  { %v6935_v55 = vsub.f32 %v210_v40, %v233_v54  ;;  %v4690_v40 = vld [vmem:[%s8424_s8 + $0x40] sm:$0xff]  ;;  %v288_v54 = vld [vmem:[%s8420_s4 + $0x8] sm:$0xff] }
 0x33e   :  { %v237_v56 = vmul.f32 %v6935_v55, %v6935_v55 }
 0x340   :  { %v239_v57 = vsel %vm127_vm3, %v237_v56, 0.0 }
 0x341   :  { %240 = vadd.xlane.f32.xlu1 %v239_v57  ;;  %v225_v58 = vpop.xlane.xlu0 %224 }
 0x342   :  { %v234_v59 = vmul.f32 %v6932_v52, %v225_v58  ;;  %v287_v58 = vld [vmem:[%s8420_s4] sm:$0xff] }
 0x344   :  { %v6941_v60 = vsub.f32 %v212_v44, %v234_v59 }
 0x346   :  { %v238_v61 = vmul.f32 %v6941_v60, %v6941_v60 }
 0x348   :  { %v242_v62 = vsel %vm127_vm3, %v238_v61, 0.0 }
 0x349   :  { %243 = vadd.xlane.f32.xlu1 %v242_v62 }
 0x3b4   :  { %v241_v8 = vpop.xlane.xlu1 %240 }
 0x3b5   :  { %v245_v9 = vmul.f32 %v241_v8, %v6932_v52 }
 0x3b7   :  { %v247_v13 = vadd.f32 1e-05, %v245_v9 }
 0x3b9   :  { %6661 = vrsqrt.f32 %v247_v13  ;;  %vm255_vm6 = vweird.f32 %v247_v13 }
 0x3bc   :  { %v244_v15 = vpop.xlane.xlu1 %243 }
 0x3bd   :  { %v246_v16 = vmul.f32 %v244_v15, %v6932_v52 }
 0x3bf   :  { %v6662_v18 = vpop.eup %6661  ;;  %v248_v19 = vadd.f32 1e-05, %v246_v16 }
 0x3c0   :  { %v250_v20 = vmul.f32 %v6662_v18, %v247_v13  ;;  %vm256_vm5 = vweird.f32 %v6662_v18  ;;  %v6426_v13 = vld [vmem:[%s8419_s3 + $0xd8] sm:$0xff] }
 0x3c1   :  { %6663 = vrsqrt.f32 %v248_v19  ;;  %vm257_vm7 = vmor %vm255_vm6, %vm256_vm5  ;;  %vm265_vm9 = vweird.f32 %v248_v19 }
 0x3c2   :  { %v251_v22 = vmul.f32 %v6662_v18, %v250_v20 }
 0x3c4   :  { %v252_v23 = vmul.f32 0.5, %v251_v22  ;;  %v6424_v22 = vld [vmem:[%s8419_s3 + $0xc8] sm:$0xff] }
 0x3c6   :  { %v253_v25 = vsub.f32 1.5, %v252_v23  ;;  %v6423_v23 = vld [vmem:[%s8419_s3 + $0xc0] sm:$0xff] }
 0x3c7   :  { %v6664_v26 = vpop.eup %6663 }
 0x3c8   :  { %v254_v27 = vmul.f32 %v6662_v18, %v253_v25  ;;  %v260_v28 = vmul.f32 %v6664_v26, %v248_v19  ;;  %vm266_vm8 = vweird.f32 %v6664_v26  ;;  %v6425_v19 = vld [vmem:[%s8419_s3 + $0xd0] sm:$0xff] }
 0x3c9   :  { %vm267_vm10 = vmor %vm265_vm9, %vm266_vm8  ;;  %v6413_v25 = vld [vmem:[%s8419_s3 + $0x130] sm:$0xff] }
 0x3ca   :  { %v261_v29 = vmul.f32 %v6664_v26, %v260_v28  ;;  %v258_v30 = vsel %vm257_vm7, %v6662_v18, %v254_v27  ;;  %v6411_v27 = vld [vmem:[%s8419_s3 + $0x120] sm:$0xff] }
 0x3cb   :  { %v269_v33 = vmul.f32 %v258_v30, %v6935_v55 }
 0x3cc   :  { %v262_v31 = vmul.f32 0.5, %v261_v29 }
 0x3cd   :  { %v271_v38 = vmul.f32 %v4688_v34, %v269_v33 }
 0x3ce   :  { %v263_v32 = vsub.f32 1.5, %v262_v31 }
 0x3cf   :  { %v7010_v43 = vadd.f32 %v4690_v40, %v271_v38 }
 0x3d0   :  { %v264_v35 = vmul.f32 %v6664_v26, %v263_v32 }
 0x3d2   :  { %v268_v37 = vsel %vm267_vm10, %v6664_v26, %v264_v35  ;;  %v6412_v26 = vld [vmem:[%s8419_s3 + $0x128] sm:$0xff]  ;;  %v6402_v35 = vld [vmem:[%s8419_s3 + $0x198] sm:$0xff] }
 0x3d3   :  { %v270_v39 = vmul.f32 %v268_v37, %v6941_v60  ;;  %v6409_v60 = vld [vmem:[%s8419_s3 + $0xb0] sm:$0xff] }
 0x3d4   :  { %v6401_v37 = vld [vmem:[%s8419_s3 + $0x190] sm:$0xff] }
 0x3d5   :  { %v272_v42 = vmul.f32 %v4689_v36, %v270_v39  ;;  %v522_v36 = vsel %vm64_vm2, %v6402_v35, 0  ;;  %v519_v40 = vsel %vm64_vm2, %v6401_v37, 0  ;;  %v4900_v35 = vld [vmem:[%s8420_s4 + $0x20] sm:$0xff] }
 0x3d6   :  { %528 = vmatpush.bf16.xpose.msra.mxu3 %v522_v36  ;;  %v4901_v36 = vld [vmem:[%s8420_s4 + $0x28] sm:$0xff] }
 0x3d7   :  { %v7012_v44 = vadd.f32 %v4691_v41, %v272_v42  ;;  %v6400_v41 = vld [vmem:[%s8419_s3 + $0x188] sm:$0xff] }
 0x3d9   :  { %v7016_v45 = vpack.c.bf16 %v7012_v44, %v7010_v43 }
 0x3db   :  { %4710 = vmatmul.msk.bf16.vlgmr.msrb.gmra.mxu1 %vm127_vm3, %v7016_v45  ;;  %4735 = vmatmul.msk.bf16.vlgmr.msrb.gmra.mxu3 %vm127_vm3, %v7016_v45 }
 0x3dc   :  { %4760 = vmatmul.msk.bf16.vlgmr.msra.gmra.mxu2 %vm127_vm3, %v7016_v45 }
 0x3de   :  { %529 = vmatpush.bf16.xpose.msra.mxu3 %v519_v40 }
 0x3ec   :  { %4814 = vmatmul.msk.bf16.vlgmr.msrb.gmra.mxu2 %vm127_vm3, %v7016_v45 }
 0x458   :  { %v325_v46 = vpop.f32.mrf.mxu1 }
 0x459   :  { %v326_v61 = vadd.f32 %v325_v46, %v287_v58  ;;  %v6419_v58 = vld [vmem:[%s8419_s3 + $0x40] sm:$0xff] }
 0x45e   :  { %v372_v47 = vpop.f32.mrf.mxu3 }
 0x45f   :  { %v419_v48 = vpop.f32.mrf.mxu2 }
 0x460   :  { %v327_v55 = vpop.f32.mrf.mxu1 }
 0x461   :  { %v328_v59 = vadd.f32 %v327_v55, %v288_v54  ;;  %v6422_v54 = vld [vmem:[%s8419_s3 + $0x58] sm:$0xff] }
 0x463   :  { %v424_v62 = vpack.c.bf16 %v328_v59, %v326_v61 }
 0x466   :  { %v374_v49 = vpop.f32.mrf.mxu3 }
 0x467   :  { %v425_v50 = vpack.c.bf16 %v374_v49, %v372_v47  ;;  %v421_v51 = vpop.f32.mrf.mxu2 }
 0x468   :  { %v461_v56 = vpack.c.bf16 %v421_v51, %v419_v48  ;;  %v516_v48 = vsel %vm64_vm2, %v6400_v41, 0 }
 0x469   :  { %v430_v57 = vsel %vm64_vm2, %v425_v50, 0  ;;  %530 = vmatpush.bf16.xpose.msra.mxu3 %v516_v48  ;;  %v6399_v50 = vld [vmem:[%s8419_s3 + $0x180] sm:$0xff] }
 0x46a   :  { %472 = vmatpush.bf16.msra.mxu1 %v461_v56  ;;  %439 = vmatpush.bf16.xpose.msrb.mxu0 %v430_v57  ;;  %v6421_v56 = vld [vmem:[%s8419_s3 + $0x50] sm:$0xff]  ;;  %v6420_v57 = vld [vmem:[%s8419_s3 + $0x48] sm:$0xff] }
 0x46e   :  { %674 = vmatpush.bf16.msrb.mxu1 %v6414_v24  ;;  %v6442_v24 = vld [vmem:[%s8419_s3 + $0xf8] sm:$0xff] }
 0x46f   :  { %v585_v7 = vpop.f32.mrf.mxu2 }
 0x470   :  { %v586_v20 = vadd.f32 %v4796_v17, %v585_v7  ;;  %v6429_v7 = vld [vmem:[%s8419_s3 + $0x150] sm:$0xff] }
 0x471   :  { %4761 = vmatmul.msk.bf16.vlgmr.msrb.gmra.mxu0 %vm64_vm2, %v424_v62 }
 0x472   :  { %627 = vmatpush.bf16.msra.mxu0 %v6410_v53  ;;  %675 = vmatpush.bf16.msrb.mxu1 %v6413_v25  ;;  %v513_v53 = vsel %vm64_vm2, %v6399_v50, 0  ;;  %v4692_v50 = vld [vmem:[%s8424_s8 + $0x80] sm:$0xff] }
 0x473   :  { %531 = vmatpush.bf16.xpose.msra.mxu3 %v513_v53 }
 0x476   :  { %628 = vmatpush.bf16.msra.mxu0 %v6409_v60  ;;  %676 = vmatpush.bf16.msrb.mxu1 %v6412_v26  ;;  %v6441_v26 = vld [vmem:[%s8419_s3 + $0xf0] sm:$0xff] }
 0x477   :  { %v587_v15 = vpop.f32.mrf.mxu2 }
 0x478   :  { %v588_v18 = vadd.f32 %v4797_v14, %v587_v15 }
 0x47a   :  { %629 = vmatpush.bf16.msra.mxu0 %v6408_v63  ;;  %v684_v21 = vpack.c.bf16 %v588_v18, %v586_v20  ;;  %677 = vmatpush.bf16.msrb.mxu1 %v6411_v27  ;;  %v6417_v18 = vld [vmem:[%s8419_s3 + $0x1b0] sm:$0xff]  ;;  %v6416_v20 = vld [vmem:[%s8419_s3 + $0x1a8] sm:$0xff]  ;;  %v6438_v27 = vld [vmem:[%s8419_s3 + $0x78] sm:$0xff] }
 0x47b   :  { %840 = vmatpush.bf16.msrb.mxu3 %v6422_v54 }
 0x47e   :  { %630 = vmatpush.bf16.msra.mxu0 %v6407_v0 }
 0x47f   :  { %841 = vmatpush.bf16.msrb.mxu3 %v6421_v56 }
 0x481   :  { %4839 = vmatmul.msk.bf16.vlgmr.msra.gmra.mxu0 %vm127_vm3, %v7016_v45 }
 0x483   :  { %842 = vmatpush.bf16.msrb.mxu3 %v6420_v57 }
 0x487   :  { %843 = vmatpush.bf16.msrb.mxu3 %v6419_v58 }
 0x4ee   :  { %v441_v1 = vpop.f32.mrf.mxu0 }
 0x4ef   :  { %v446_v2 = vmul.f32 1.442695, %v441_v1 }
 0x4f1   :  { %6665 = vpow2.f32 %v446_v2 }
 0x4f6   :  { %v443_v3 = vpop.f32.mrf.mxu0 }
 0x4f7   :  { %v6666_v4 = vpop.eup %6665  ;;  %v448_v5 = vmul.f32 1.442695, %v443_v3 }
 0x4f8   :  { %v450_v6 = vsel %vm64_vm2, %v6666_v4, 0.0 }
 0x4f9   :  { %6667 = vpow2.f32 %v448_v5  ;;  %451 = vadd.xlane.f32.xlu2 %v450_v6 }
 0x4fe   :  { %v632_v8 = vpop.f32.mrf.mxu0 }
 0x4ff   :  { %v6668_v9 = vpop.eup %6667 }
 0x500   :  { %v453_v10 = vsel %vm64_vm2, %v6668_v9, 0.0 }
 0x501   :  { %454 = vadd.xlane.f32.xlu2 %v453_v10 }
 0x506   :  { %v634_v11 = vpop.f32.mrf.mxu0 }
 0x507   :  { %v685_v12 = vpack.c.bf16 %v634_v11, %v632_v8 }
 0x509   :  { %v690_v16 = vsel %vm64_vm2, %v685_v12, 0  ;;  %v6427_v12 = vld [vmem:[%s8419_s3 + $0x140] sm:$0xff] }
 0x50a   :  { %699 = vmatpush.bf16.xpose.msra.mxu2 %v690_v16  ;;  %v6418_v16 = vld [vmem:[%s8419_s3 + $0x1b8] sm:$0xff] }
 0x50b   :  { %v782_v17 = vsel %vm64_vm2, %v6418_v16, 0 }
 0x511   :  { %4865 = vmatmul.msk.bf16.vlgmr.msra.gmra.mxu2 %vm64_vm2, %v684_v21  ;;  %v776_v21 = vsel %vm64_vm2, %v6416_v20, 0 }
 0x512   :  { %887 = vmatpush.bf16.msrb.mxu2 %v6426_v13 }
 0x516   :  { %888 = vmatpush.bf16.msrb.mxu2 %v6425_v19  ;;  %v779_v19 = vsel %vm64_vm2, %v6417_v18, 0 }
 0x51a   :  { %889 = vmatpush.bf16.msrb.mxu2 %v6424_v22  ;;  %v6415_v22 = vld [vmem:[%s8419_s3 + $0x1a0] sm:$0xff] }
 0x51e   :  { %890 = vmatpush.bf16.msrb.mxu2 %v6423_v23  ;;  %v773_v23 = vsel %vm64_vm2, %v6415_v22, 0  ;;  %v6434_v22 = vld [vmem:[%s8419_s3 + $0x1d8] sm:$0xff] }
 0x521   :  { %4943 = vmatmul.msk.bf16.vlgmr.msrb.gmra.mxu2 %vm127_vm3, %v7016_v45 }
 0x56c   :  { %v452_v28 = vpop.xlane.xlu2 %451 }
 0x56d   :  { %6669 = vrcp.f32 %v452_v28  ;;  %v6440_v28 = vld [vmem:[%s8419_s3 + $0xe8] sm:$0xff] }
 0x573   :  { %v6670_v30 = vpop.eup %6669 }
 0x574   :  { %v455_v29 = vpop.xlane.xlu2 %454  ;;  %v458_v32 = vmul.f32 %v6670_v30, %v6666_v4  ;;  %v6430_v4 = vld [vmem:[%s8419_s3 + $0x158] sm:$0xff] }
 0x575   :  { %6671 = vrcp.f32 %v455_v29  ;;  %v6437_v29 = vld [vmem:[%s8419_s3 + $0x70] sm:$0xff] }
 0x57b   :  { %v6672_v31 = vpop.eup %6671 }
 0x57c   :  { %v459_v33 = vmul.f32 %v6672_v31, %v6668_v9  ;;  %v6428_v9 = vld [vmem:[%s8419_s3 + $0x148] sm:$0xff]  ;;  %v6439_v31 = vld [vmem:[%s8419_s3 + $0xe0] sm:$0xff] }
 0x57e   :  { %v460_v34 = vpack.c.bf16 %v459_v33, %v458_v32  ;;  %v6436_v32 = vld [vmem:[%s8419_s3 + $0x68] sm:$0xff]  ;;  %v6435_v33 = vld [vmem:[%s8419_s3 + $0x60] sm:$0xff] }
 0x580   :  { %4762 = vmatmul.msk.bf16.vlgmr.msra.gmra.mxu1 %vm64_vm2, %v460_v34 }
 0x581   :  { %788 = vmatpush.bf16.xpose.msra.mxu1 %v782_v17 }
 0x589   :  { %789 = vmatpush.bf16.xpose.msra.mxu1 %v779_v19 }
 0x590   :  { %4864 = vmatmul.msk.bf16.vlgmr.msrb.gmra.mxu1 %vm127_vm3, %v7016_v45 }
 0x591   :  { %790 = vmatpush.bf16.xpose.msra.mxu1 %v776_v21 }
 0x594   :  { %v701_v38 = vpop.f32.mrf.mxu2 }
 0x595   :  { %v706_v39 = vmul.f32 1.442695, %v701_v38 }
 0x597   :  { %6673 = vpow2.f32 %v706_v39 }
 0x599   :  { %791 = vmatpush.bf16.xpose.msra.mxu1 %v773_v23  ;;  %v1042_v23 = vsel %vm64_vm2, %v6434_v22, 0 }
 0x59c   :  { %v703_v42 = vpop.f32.mrf.mxu2 }
 0x59d   :  { %v6674_v46 = vpop.eup %6673  ;;  %v708_v47 = vmul.f32 1.442695, %v703_v42 }
 0x59e   :  { %v710_v49 = vsel %vm64_vm2, %v6674_v46, 0.0 }
 0x59f   :  { %6675 = vpow2.f32 %v708_v47  ;;  %711 = vadd.xlane.f32.xlu0 %v710_v49 }
 0x5a1   :  { %1100 = vmatpush.bf16.msrb.mxu1 %v6438_v27 }
 0x5a4   :  { %v892_v59 = vpop.f32.mrf.mxu2 }
 0x5a5   :  { %v6676_v51 = vpop.eup %6675  ;;  %1101 = vmatpush.bf16.msrb.mxu1 %v6437_v29 }
 0x5a6   :  { %v713_v55 = vsel %vm64_vm2, %v6676_v51, 0.0 }
 0x5a7   :  { %714 = vadd.xlane.f32.xlu1 %v713_v55 }
 0x5a9   :  { %1102 = vmatpush.bf16.msrb.mxu1 %v6436_v32 }
 0x5ac   :  { %v894_v61 = vpop.f32.mrf.mxu2 }
 0x5ad   :  { %v945_v62 = vpack.c.bf16 %v894_v61, %v892_v59  ;;  %1103 = vmatpush.bf16.msrb.mxu1 %v6435_v33 }
 0x5af   :  { %v950_v1 = vsel %vm64_vm2, %v945_v62, 0 }
 0x5fd   :  { %v474_v60 = vpop.f32.mrf.mxu1 }
 0x605   :  { %v476_v63 = vpop.f32.mrf.mxu1 }
 0x606   :  { %v479_v0 = vpack.c.bf16 %v476_v63, %v474_v60 }
 0x608   :  { %4787 = vmatmul.msk.bf16.vlgmr.msra.gmra.mxu3 %vm64_vm2, %v479_v0 }
 0x609   :  { %959 = vmatpush.bf16.xpose.msra.mxu3 %v950_v1 }
 0x60d   :  { %v679_v2 = vpop.f32.mrf.mxu1 }
 0x612   :  { %v712_v5 = vpop.xlane.xlu0 %711 }
 0x613   :  { %6677 = vrcp.f32 %v712_v5 }
 0x615   :  { %v681_v3 = vpop.f32.mrf.mxu1 }
 0x616   :  { %v721_v6 = vpack.c.bf16 %v681_v3, %v679_v2 }
 0x618   :  { %732 = vmatpush.bf16.msrb.mxu0 %v721_v6  ;;  %4918 = vmatmul.msk.bf16.vlgmr.msrb.gmra.mxu3 %vm127_vm3, %v7016_v45 }
 0x619   :  { %v6678_v10 = vpop.eup %6677  ;;  %1147 = vmatpush.bf16.msrb.mxu3 %v6442_v24  ;;  %v6433_v24 = vld [vmem:[%s8419_s3 + $0x1d0] sm:$0xff] }
 0x61a   :  { %v715_v8 = vpop.xlane.xlu1 %714  ;;  %v718_v13 = vmul.f32 %v6678_v10, %v6674_v46 }
 0x61b   :  { %6679 = vrcp.f32 %v715_v8 }
 0x61c   :  { %934 = vmatpush.bf16.msra.mxu0 %v6430_v4  ;;  %v5005_v4 = vld [vmem:[%s8420_s4 + $0x38] sm:$0xff] }
 0x61d   :  { %1148 = vmatpush.bf16.msrb.mxu3 %v6441_v26  ;;  %v6432_v26 = vld [vmem:[%s8419_s3 + $0x1c8] sm:$0xff] }
 0x61e   :  { %v1036_v29 = vsel %vm64_vm2, %v6432_v26, 0  ;;  %v6457_v26 = vld [vmem:[%s8421_s5 + $0x34] sm:$0xf] }
 0x620   :  { %935 = vmatpush.bf16.msra.mxu0 %v6429_v7  ;;  %v5004_v7 = vld [vmem:[%s8420_s4 + $0x30] sm:$0xff] }
 0x621   :  { %v6680_v11 = vpop.eup %6679  ;;  %1149 = vmatpush.bf16.msrb.mxu3 %v6440_v28 }
 0x622   :  { %v719_v14 = vmul.f32 %v6680_v11, %v6676_v51  ;;  %v6446_v11 = vld [vmem:[%s8419_s3 + $0x178] sm:$0xff] }
 0x624   :  { %936 = vmatpush.bf16.msra.mxu0 %v6428_v9  ;;  %v720_v15 = vpack.c.bf16 %v719_v14, %v718_v13  ;;  %v6444_v13 = vld [vmem:[%s8419_s3 + $0x168] sm:$0xff]  ;;  %v6443_v14 = vld [vmem:[%s8419_s3 + $0x160] sm:$0xff] }
 0x625   :  { %1150 = vmatpush.bf16.msrb.mxu3 %v6439_v31 }
 0x626   :  { %4866 = vmatmul.msk.bf16.vlgmr.msrb.gmra.mxu0 %vm64_vm2, %v720_v15 }
 0x628   :  { %937 = vmatpush.bf16.msra.mxu0 %v6427_v12  ;;  %v6445_v12 = vld [vmem:[%s8419_s3 + $0x170] sm:$0xff] }
 0x62c   :  { %1048 = vmatpush.bf16.xpose.msrb.mxu0 %v1042_v23 }
 0x636   :  { %4968 = vmatmul.msk.bf16.vlgmr.msra.gmra.mxu0 %vm127_vm3, %v7016_v45 }
 0x68b   :  { %v533_v25 = vpop.f32.mrf.mxu3 }
 0x68c   :  { %v538_v51 = vadd.f32 %v4692_v50, %v533_v25  ;;  %v1039_v25 = vsel %vm64_vm2, %v6433_v24, 0  ;;  %v5130_v24 = vld [vmem:[%s8421_s5 + $0x30] sm:$0xf] }
 0x68d   :  { %1049 = vmatpush.bf16.xpose.msrb.mxu0 %v1039_v25  ;;  %v6458_v25 = vld [vmem:[%s8421_s5 + $0x34] sm:$0xf0] }
 0x693   :  { %v7167_v30 = vpop.f32.mrf.mxu3 }
 0x695   :  { %1050 = vmatpush.bf16.xpose.msrb.mxu0 %v1036_v29 }
 0x69b   :  { %v845_v34 = vpop.f32.mrf.mxu3 }
 0x69c   :  { %v846_v39 = vadd.f32 %v4900_v35, %v845_v34 }
 0x6a3   :  { %v734_v37 = vpop.f32.mrf.mxu0  ;;  %v847_v38 = vpop.f32.mrf.mxu3 }
 0x6a4   :  { %v848_v40 = vadd.f32 %v4901_v36, %v847_v38 }
 0x6a6   :  { %v944_v41 = vpack.c.bf16 %v848_v40, %v846_v39 }
 0x6a8   :  { %4969 = vmatmul.msk.bf16.vlgmr.msra.gmra.mxu3 %vm64_vm2, %v944_v41 }
 0x6ab   :  { %v736_v42 = vpop.f32.mrf.mxu0 }
 0x6ac   :  { %v739_v46 = vpack.c.bf16 %v736_v42, %v734_v37  ;;  %v6431_v37 = vld [vmem:[%s8419_s3 + $0x1c0] sm:$0xff] }
 0x6ae   :  { %4891 = vmatmul.msk.bf16.vlgmr.msra.gmra.mxu1 %vm64_vm2, %v739_v46 }
 0x6b3   :  { %v939_v47 = vpop.f32.mrf.mxu0 }
 0x6b8   :  { %5047 = vmatmul.msk.bf16.vlgmr.msrb.gmra.mxu3 %vm127_vm3, %v7016_v45 }
 0x6bb   :  { %v941_v48 = vpop.f32.mrf.mxu0 }
 0x6bc   :  { %v981_v49 = vpack.c.bf16 %v941_v48, %v939_v47 }
 0x6be   :  { %992 = vmatpush.bf16.msra.mxu2 %v981_v49  ;;  %5022 = vmatmul.msk.bf16.vlgmr.msrb.gmra.mxu1 %vm127_vm3, %v7016_v45 }
 0x6c2   :  { %1194 = vmatpush.bf16.msrb.mxu2 %v6446_v11 }
 0x6c6   :  { %1195 = vmatpush.bf16.msrb.mxu2 %v6445_v12 }
 0x6ca   :  { %1196 = vmatpush.bf16.msrb.mxu2 %v6444_v13 }
 0x6ce   :  { %1197 = vmatpush.bf16.msrb.mxu2 %v6443_v14 }
 0x72b   :  { %v793_v53 = vpop.f32.mrf.mxu1  ;;  %v961_v54 = vpop.f32.mrf.mxu3 }
 0x72c   :  { %v7193_v55 = vadd.f32 %v793_v53, %v538_v51  ;;  %v966_v56 = vmul.f32 1.442695, %v961_v54 }
 0x72e   :  { %6681 = vpow2.f32 %v966_v56  ;;  %v6450_v56 = vld [vmem:[%s8419_s3 + $0x1f8] sm:$0xff] }
 0x733   :  { %v7195_v57 = vpop.f32.mrf.mxu1  ;;  %v963_v58 = vpop.f32.mrf.mxu3 }
 0x734   :  { %v6682_v59 = vpop.eup %6681  ;;  %v968_v60 = vmul.f32 1.442695, %v963_v58  ;;  %v1302_v58 = vsel %vm64_vm2, %v6450_v56, 0  ;;  %v6466_v56 = vld [vmem:[%s8422_s6 + $0x38] sm:$0xff] }
 0x735   :  { %v970_v61 = vsel %vm64_vm2, %v6682_v59, 0.0 }
 0x736   :  { %6683 = vpow2.f32 %v968_v60  ;;  %971 = vadd.xlane.f32.xlu2 %v970_v61  ;;  %v6448_v61 = vld [vmem:[%s8419_s3 + $0x1e8] sm:$0xff] }
 0x73b   :  { %v1105_v62 = vpop.f32.mrf.mxu1  ;;  %v1152_v63 = vpop.f32.mrf.mxu3 }
 0x73c   :  { %v6684_v0 = vpop.eup %6683  ;;  %v1106_v9 = vadd.f32 %v5004_v7, %v1105_v62  ;;  %v1296_v62 = vsel %vm64_vm2, %v6448_v61, 0  ;;  %v6465_v61 = vld [vmem:[%s8422_s6 + $0x30] sm:$0xff] }
 0x73d   :  { %v973_v1 = vsel %vm64_vm2, %v6684_v0, 0.0 }
 0x73e   :  { %974 = vadd.xlane.f32.xlu0 %v973_v1 }
 0x743   :  { %v1154_v2 = vpop.f32.mrf.mxu3  ;;  %v1107_v5 = vpop.f32.mrf.mxu1 }
 0x744   :  { %v1205_v3 = vpack.c.bf16 %v1154_v2, %v1152_v63  ;;  %v1108_v8 = vadd.f32 %v5005_v4, %v1107_v5  ;;  %v6447_v63 = vld [vmem:[%s8419_s3 + $0x1e0] sm:$0xff] }
 0x746   :  { %v1210_v6 = vsel %vm64_vm2, %v1205_v3, 0  ;;  %v1204_v10 = vpack.c.bf16 %v1108_v8, %v1106_v9 }
 0x747   :  { %1219 = vmatpush.bf16.xpose.msra.mxu1 %v1210_v6  ;;  %v4693_v6 = vld [vmem:[%s8424_s8 + $0x88] sm:$0xff] }
 0x748   :  { %v539_v9 = vadd.f32 %v4693_v6, %v7167_v30  ;;  %v6463_v6 = vld [vmem:[%s8422_s6 + $0x20] sm:$0xff] }
 0x74a   :  { %v799_v12 = vadd.f32 %v7195_v57, %v539_v9 }
 0x74e   :  { %5073 = vmatmul.msk.bf16.vlgmr.msra.gmra.mxu1 %vm64_vm2, %v1204_v10 }
 0x7a9   :  { %v972_v15 = vpop.xlane.xlu2 %971 }
 0x7aa   :  { %6685 = vrcp.f32 %v972_v15 }
 0x7b0   :  { %v6686_v17 = vpop.eup %6685 }
 0x7b1   :  { %v975_v16 = vpop.xlane.xlu0 %974  ;;  %v978_v19 = vmul.f32 %v6686_v17, %v6682_v59  ;;  %v6449_v59 = vld [vmem:[%s8419_s3 + $0x1f0] sm:$0xff] }
 0x7b2   :  { %6687 = vrcp.f32 %v975_v16  ;;  %v1299_v60 = vsel %vm64_vm2, %v6449_v59, 0 }
 0x7b8   :  { %v6688_v18 = vpop.eup %6687 }
 0x7b9   :  { %v979_v20 = vmul.f32 %v6688_v18, %v6684_v0  ;;  %v1293_v0 = vsel %vm64_vm2, %v6447_v63, 0 }
 0x7bb   :  { %v980_v21 = vpack.c.bf16 %v979_v20, %v978_v19 }
 0x7bd   :  { %4970 = vmatmul.msk.bf16.vlgmr.msra.gmra.mxu2 %vm64_vm2, %v980_v21 }
 0x7be   :  { %1308 = vmatpush.bf16.xpose.msra.mxu2 %v1302_v58  ;;  %v6474_v58 = vld [vmem:[%s8422_s6 + $0x78] sm:$0xff] }
 0x7c6   :  { %1309 = vmatpush.bf16.xpose.msra.mxu2 %v1299_v60 }
 0x7cb   :  { %v1221_v27 = vpop.f32.mrf.mxu1 }
 0x7cc   :  { %v1226_v28 = vmul.f32 1.442695, %v1221_v27  ;;  %v5131_v27 = vor.u32 %v6458_v25, %v5130_v24  ;;  %v6470_v25 = vld [vmem:[%s8422_s6 + $0x58] sm:$0xff] }
 0x7cd   :  { %5072 = vmatmul.msk.bf16.vlgmr.msrb.gmra.mxu2 %vm127_vm3, %v7016_v45  ;;  %v1033_v45 = vsel %vm64_vm2, %v6431_v37, 0  ;;  %v5114_v37 = vld [vmem:[%s8421_s5 + $0x10] sm:$0xf] }
 0x7ce   :  { %6689 = vpow2.f32 %v1226_v28  ;;  %1051 = vmatpush.bf16.xpose.msrb.mxu0 %v1033_v45  ;;  %1310 = vmatpush.bf16.xpose.msra.mxu2 %v1296_v62  ;;  %v5132_v28 = vld [vmem:[%s8421_s5 + $0x38] sm:$0xf0]  ;;  %v6454_v45 = vld [vmem:[%s8421_s5 + $0x14] sm:$0xf0]  ;;  %v6473_v62 = vld [vmem:[%s8422_s6 + $0x70] sm:$0xff] }
 0x7cf   :  { %v5135_v29 = vor.u32 %v6457_v26, %v5132_v28  ;;  %v6461_v26 = vld [vmem:[%s8422_s6 + $0x10] sm:$0xff]  ;;  %v6460_v28 = vld [vmem:[%s8422_s6 + $0x8] sm:$0xff] }
 0x7d1   :  { %1450 = vmatpush.bf16.msrb.mxu1 %v5135_v29  ;;  %v6468_v29 = vld [vmem:[%s8422_s6 + $0x48] sm:$0xff] }
 0x7d3   :  { %v1223_v31 = vpop.f32.mrf.mxu1 }
 0x7d4   :  { %v6690_v32 = vpop.eup %6689  ;;  %v1228_v33 = vmul.f32 1.442695, %v1223_v31  ;;  %v5122_v31 = vld [vmem:[%s8421_s5 + $0x20] sm:$0xf] }
 0x7d5   :  { %v1230_v34 = vsel %vm64_vm2, %v6690_v32, 0.0 }
 0x7d6   :  { %6691 = vpow2.f32 %v1228_v33  ;;  %1231 = vadd.xlane.f32.xlu1 %v1230_v34  ;;  %1311 = vmatpush.bf16.xpose.msra.mxu2 %v1293_v0  ;;  %v6455_v33 = vld [vmem:[%s8421_s5 + $0x24] sm:$0xf] }
 0x7d7   :  { %1436 = vmatpush.bf16.msra.mxu0 %v5131_v27  ;;  %v6469_v27 = vld [vmem:[%s8422_s6 + $0x50] sm:$0xff] }
 0x7dc   :  { %v6692_v35 = vpop.eup %6691 }
 0x7dd   :  { %v1233_v36 = vsel %vm64_vm2, %v6692_v35, 0.0 }
 0x7de   :  { %1234 = vadd.xlane.f32.xlu2 %v1233_v36 }
 0x840   :  { %v994_v38 = vpop.f32.mrf.mxu2 }
 0x848   :  { %v996_v39 = vpop.f32.mrf.mxu2 }
 0x849   :  { %v999_v40 = vpack.c.bf16 %v996_v39, %v994_v38  ;;  %v1232_v41 = vpop.xlane.xlu1 %1231  ;;  %v6453_v38 = vld [vmem:[%s8421_s5 + $0x14] sm:$0xf]  ;;  %v5115_v39 = vor.u32 %v6454_v45, %v5114_v37  ;;  %v1388_v45 = vld [vmem:[%s8423_s7 + $0x18] sm:$0xff] }
 0x84a   :  { %6693 = vrcp.f32 %v1232_v41  ;;  %v1387_v37 = vld [vmem:[%s8423_s7 + $0x10] sm:$0xff] }
 0x84b   :  { %4995 = vmatmul.msk.bf16.vlgmr.msrb.gmra.mxu0 %vm64_vm2, %v999_v40  ;;  %v5116_v40 = vld [vmem:[%s8421_s5 + $0x18] sm:$0xf0] }
 0x850   :  { %v1199_v42 = vpop.f32.mrf.mxu2  ;;  %v6694_v47 = vpop.eup %6693 }
 0x851   :  { %v1235_v46 = vpop.xlane.xlu2 %1234  ;;  %v1238_v50 = vmul.f32 %v6694_v47, %v6690_v32  ;;  %v6456_v32 = vld [vmem:[%s8421_s5 + $0x24] sm:$0xf0]  ;;  %v5106_v47 = vld [vmem:[%s8421_s5] sm:$0xf] }
 0x852   :  { %6695 = vrcp.f32 %v1235_v46  ;;  %v5123_v34 = vor.u32 %v6456_v32, %v5122_v31  ;;  %v6459_v31 = vld [vmem:[%s8422_s6] sm:$0xff] }
 0x853   :  { %v6467_v32 = vld [vmem:[%s8422_s6 + $0x40] sm:$0xff] }
 0x854   :  { %1437 = vmatpush.bf16.msra.mxu0 %v5123_v34 }
 0x858   :  { %v6696_v48 = vpop.eup %6695  ;;  %v1201_v49 = vpop.f32.mrf.mxu2  ;;  %1438 = vmatpush.bf16.msra.mxu0 %v5115_v39 }
 0x859   :  { %v1239_v51 = vmul.f32 %v6696_v48, %v6692_v35  ;;  %v1241_v53 = vpack.c.bf16 %v1201_v49, %v1199_v42  ;;  %v5124_v35 = vld [vmem:[%s8421_s5 + $0x28] sm:$0xf0]  ;;  %v5119_v42 = vor.u32 %v6453_v38, %v5116_v40  ;;  %v6452_v48 = vld [vmem:[%s8421_s5 + $0x4] sm:$0xf0]  ;;  %v6451_v49 = vld [vmem:[%s8421_s5 + $0x4] sm:$0xf] }
 0x85a   :  { %v5127_v36 = vor.u32 %v6455_v33, %v5124_v35  ;;  %v1385_v35 = vld [vmem:[%s8423_s7] sm:$0xff] }
 0x85b   :  { %v1240_v54 = vpack.c.bf16 %v1239_v51, %v1238_v50  ;;  %1252 = vmatpush.bf16.msra.mxu3 %v1241_v53  ;;  %v5107_v51 = vor.u32 %v6452_v48, %v5106_v47  ;;  %v5108_v53 = vld [vmem:[%s8421_s5 + $0x8] sm:$0xf0] }
 0x85c   :  { %1451 = vmatpush.bf16.msrb.mxu1 %v5127_v36  ;;  %v1386_v36 = vld [vmem:[%s8423_s7 + $0x8] sm:$0xff] }
 0x85d   :  { %1439 = vmatpush.bf16.msra.mxu0 %v5107_v51 }
 0x85e   :  { %5074 = vmatmul.msk.bf16.vlgmr.msra.gmra.mxu3 %vm64_vm2, %v1240_v54  ;;  %v5111_v54 = vor.u32 %v6451_v49, %v5108_v53 }
 0x85f   :  { %1597 = vmatpush.bf16.msrb.mxu3 %v6466_v56 }
 0x860   :  { %1452 = vmatpush.bf16.msrb.mxu1 %v5119_v42 }
 0x861   :  { %1611 = vmatpush.bf16.msrb.mxu0 %v6474_v58 }
 0x863   :  { %1598 = vmatpush.bf16.msrb.mxu3 %v6465_v61 }
 0x864   :  { %1453 = vmatpush.bf16.msrb.mxu1 %v5111_v54  ;;  %v5138_v54 = vld [vmem:[%s8424_s8 + $0xb0] sm:$0xff] }
 0x865   :  { %1612 = vmatpush.bf16.msrb.mxu0 %v6473_v62  ;;  %v5139_v62 = vld [vmem:[%s8424_s8 + $0xb8] sm:$0xff] }
 0x8c8   :  { %v1053_v4 = vpop.f32.mrf.mxu0 }
 0x8c9   :  { %v1058_v5 = vadd.f32 %v1053_v4, %v7193_v55 }
 0x8d0   :  { %v1055_v11 = vpop.f32.mrf.mxu0 }
 0x8d1   :  { %v1059_v14 = vadd.f32 %v1055_v11, %v799_v12 }
 0x8e1   :  { %v1254_v1 = vpop.f32.mrf.mxu3 }
 0x8e9   :  { %v1256_v2 = vpop.f32.mrf.mxu3 }
 0x8ea   :  { %v1259_v3 = vpack.c.bf16 %v1256_v2, %v1254_v1  ;;  %v6464_v2 = vld [vmem:[%s8422_s6 + $0x28] sm:$0xff] }
 0x8eb   :  { %1599 = vmatpush.bf16.msrb.mxu3 %v6464_v2 }
 0x8ec   :  { %5099 = vmatmul.msk.bf16.vlgmr.msra.gmra.mxu2 %vm64_vm2, %v1259_v3  ;;  %v6472_v3 = vld [vmem:[%s8422_s6 + $0x68] sm:$0xff] }
 0x8ed   :  { %1613 = vmatpush.bf16.msrb.mxu0 %v6472_v3 }
 0x8ef   :  { %1600 = vmatpush.bf16.msrb.mxu3 %v6463_v6 }
 0x96f   :  { %v1313_v7 = vpop.f32.mrf.mxu2 }
 0x970   :  { %v1318_v8 = vadd.f32 %v1313_v7, %v1058_v5  ;;  %v6471_v7 = vld [vmem:[%s8422_s6 + $0x60] sm:$0xff] }
 0x971   :  { %1614 = vmatpush.bf16.msrb.mxu0 %v6471_v7 }
 0x972   :  { %v1320_v10 = vadd.f32 %v1318_v8, %v7010_v43 }
 0x974   :  { %v1328_v13 = vsel %vm127_vm3, %v1320_v10, 0.0 }
 0x975   :  { %1329 = vadd.xlane.f32.xlu0 %v1328_v13  ;;  %1615 = vmatpush.bf16.msrb.mxu0 %v6470_v25  ;;  %v6485_v25 = vld [vmem:[%s8419_s3 + $0x310] sm:$0xff] }
 0x977   :  { %v1315_v15 = vpop.f32.mrf.mxu2 }
 0x978   :  { %v1319_v16 = vadd.f32 %v1315_v15, %v1059_v14 }
 0x979   :  { %1616 = vmatpush.bf16.msrb.mxu0 %v6469_v27 }
 0x97a   :  { %v1321_v55 = vadd.f32 %v1319_v16, %v7012_v44 }
 0x97c   :  { %v1331_v17 = vsel %vm127_vm3, %v1321_v55, 0.0 }
 0x97d   :  { %1332 = vadd.xlane.f32.xlu1 %v1331_v17  ;;  %1617 = vmatpush.bf16.msrb.mxu0 %v6468_v29  ;;  %v6484_v29 = vld [vmem:[%s8419_s3 + $0x308] sm:$0xff] }
 0x981   :  { %1618 = vmatpush.bf16.msrb.mxu0 %v6467_v32 }
 0x9e8   :  { %v1330_v18 = vpop.xlane.xlu0 %1329 }
 0x9e9   :  { %v1334_v19 = vmul.f32 %v1330_v18, %v6932_v52  ;;  %v5101_v18 = vld [vmem:[%s8424_s8 + $0x98] sm:$0xff] }
 0x9eb   :  { %v7270_v30 = vsub.f32 %v1320_v10, %v1334_v19 }
 0x9ed   :  { %v1338_v43 = vmul.f32 %v7270_v30, %v7270_v30 }
 0x9ef   :  { %v1340_v57 = vsel %vm127_vm3, %v1338_v43, 0.0 }
 0x9f0   :  { %1341 = vadd.xlane.f32.xlu2 %v1340_v57  ;;  %v1333_v20 = vpop.xlane.xlu1 %1332 }
 0x9f1   :  { %v1335_v21 = vmul.f32 %v1333_v20, %v6932_v52  ;;  %v5102_v20 = vld [vmem:[%s8424_s8 + $0xa0] sm:$0xff] }
 0x9f3   :  { %v7276_v22 = vsub.f32 %v1321_v55, %v1335_v21  ;;  %v5100_v55 = vld [vmem:[%s8424_s8 + $0x90] sm:$0xff] }
 0x9f5   :  { %v1339_v44 = vmul.f32 %v7276_v22, %v7276_v22 }
 0x9f7   :  { %v1343_v23 = vsel %vm127_vm3, %v1339_v44, 0.0 }
 0x9f8   :  { %1344 = vadd.xlane.f32.xlu0 %v1343_v23 }
 0xa63   :  { %v1342_v41 = vpop.xlane.xlu2 %1341 }
 0xa64   :  { %v1346_v46 = vmul.f32 %v1342_v41, %v6932_v52 }
 0xa66   :  { %v1348_v50 = vadd.f32 1e-05, %v1346_v46 }
 0xa68   :  { %6697 = vrsqrt.f32 %v1348_v50  ;;  %vm1356_vm12 = vweird.f32 %v1348_v50 }
 0xa6b   :  { %v1345_v59 = vpop.xlane.xlu0 %1344 }
 0xa6c   :  { %v1347_v60 = vmul.f32 %v1345_v59, %v6932_v52 }
 0xa6e   :  { %v6698_v63 = vpop.eup %6697  ;;  %v1349_v0 = vadd.f32 1e-05, %v1347_v60 }
 0xa6f   :  { %v1351_v1 = vmul.f32 %v6698_v63, %v1348_v50  ;;  %vm1357_vm11 = vweird.f32 %v6698_v63 }
 0xa70   :  { %6699 = vrsqrt.f32 %v1349_v0  ;;  %vm1358_vm13 = vmor %vm1356_vm12, %vm1357_vm11  ;;  %vm1366_vm15 = vweird.f32 %v1349_v0 }
 0xa71   :  { %v1352_v4 = vmul.f32 %v6698_v63, %v1351_v1 }
 0xa73   :  { %v1353_v5 = vmul.f32 0.5, %v1352_v4 }
 0xa75   :  { %v1354_v8 = vsub.f32 1.5, %v1353_v5 }
 0xa76   :  { %v6700_v9 = vpop.eup %6699 }
 0xa77   :  { %v1355_v10 = vmul.f32 %v6698_v63, %v1354_v8  ;;  %v1361_v11 = vmul.f32 %v6700_v9, %v1349_v0  ;;  %vm1367_vm14 = vweird.f32 %v6700_v9 }
 0xa78   :  { %vm1368_vm0 = vmor %vm1366_vm15, %vm1367_vm14 }
 0xa79   :  { %v1362_v12 = vmul.f32 %v6700_v9, %v1361_v11  ;;  %v1359_v13 = vsel %vm1358_vm13, %v6698_v63, %v1355_v10 }
 0xa7a   :  { %v1370_v16 = vmul.f32 %v1359_v13, %v7270_v30  ;;  %v5103_v30 = vld [vmem:[%s8424_s8 + $0xa8] sm:$0xff] }
 0xa7b   :  { %v1363_v14 = vmul.f32 0.5, %v1362_v12 }
 0xa7c   :  { %v1372_v43 = vmul.f32 %v5100_v55, %v1370_v16  ;;  %v6478_v16 = vld [vmem:[%s8419_s3 + $0x218] sm:$0xff] }
 0xa7d   :  { %v1364_v15 = vsub.f32 1.5, %v1363_v14  ;;  %v6482_v55 = vld [vmem:[%s8419_s3 + $0x298] sm:$0xff]  ;;  %1728 = vmatpush.bf16.msra.mxu1 %v6478_v16 }
 0xa7e   :  { %v1374_v44 = vadd.f32 %v5102_v20, %v1372_v43  ;;  %1775 = vmatpush.bf16.msrb.mxu2 %v6482_v55  ;;  %v6480_v43 = vld [vmem:[%s8419_s3 + $0x288] sm:$0xff]  ;;  %v6495_v55 = vld [vmem:[%s8419_s3 + $0x2a0] sm:$0xff] }
 0xa7f   :  { %v1365_v17 = vmul.f32 %v6700_v9, %v1364_v15 }
 0xa81   :  { %v1369_v19 = vsel %vm1368_vm0, %v6700_v9, %v1365_v17  ;;  %v6477_v17 = vld [vmem:[%s8419_s3 + $0x210] sm:$0xff] }
 0xa82   :  { %v1371_v57 = vmul.f32 %v1369_v19, %v7276_v22  ;;  %v6462_v22 = vld [vmem:[%s8422_s6 + $0x18] sm:$0xff]  ;;  %1729 = vmatpush.bf16.msra.mxu1 %v6477_v17  ;;  %v6476_v19 = vld [vmem:[%s8419_s3 + $0x208] sm:$0xff] }
 0xa83   :  { %1601 = vmatpush.bf16.msrb.mxu3 %v6462_v22 }
 0xa84   :  { %v1373_v21 = vmul.f32 %v5101_v18, %v1371_v57  ;;  %v6481_v18 = vld [vmem:[%s8419_s3 + $0x290] sm:$0xff] }
 0xa85   :  { %1776 = vmatpush.bf16.msrb.mxu2 %v6481_v18 }
 0xa86   :  { %v1375_v23 = vadd.f32 %v5103_v30, %v1373_v21  ;;  %1730 = vmatpush.bf16.msra.mxu1 %v6476_v19  ;;  %v6475_v21 = vld [vmem:[%s8419_s3 + $0x200] sm:$0xff] }
 0xa87   :  { %1602 = vmatpush.bf16.msrb.mxu3 %v6461_v26 }
 0xa88   :  { %v1376_v24 = vpack.c.bf16 %v1375_v23, %v1374_v44 }
 0xa89   :  { %1777 = vmatpush.bf16.msrb.mxu2 %v6480_v43 }
 0xa8a   :  { %5136 = vmatmul.msk.bf16.vlgmr.msra.gmra.mxu0 %vm127_vm3, %v1376_v24  ;;  %5137 = vmatmul.msk.bf16.vlgmr.msrb.gmra.mxu1 %vm127_vm3, %v1376_v24 }
 0xa8b   :  { %1603 = vmatpush.bf16.msrb.mxu3 %v6460_v28  ;;  %1731 = vmatpush.bf16.msra.mxu1 %v6475_v21 }
 0xa8f   :  { %1604 = vmatpush.bf16.msrb.mxu3 %v6459_v31 }
 0xb07   :  { %v1441_v33 = vpop.f32.mrf.mxu0  ;;  %v1455_v34 = vpop.f32.mrf.mxu1 }
 0xb08   :  { %v1442_v38 = vadd.f32 %v1441_v33, %v1385_v35  ;;  %v1456_v39 = vadd.f32 %v1455_v34, %v1386_v36  ;;  %v6483_v33 = vld [vmem:[%s8419_s3 + $0x300] sm:$0xff] }
 0xb0a   :  { %v1460_v47 = vmax.f32 %v1442_v38, 0.0  ;;  %v1461_v48 = vmax.f32 %v1456_v39, 0.0 }
 0xb0f   :  { %v1443_v40 = vpop.f32.mrf.mxu0  ;;  %v1457_v41 = vpop.f32.mrf.mxu1 }
 0xb10   :  { %v1444_v42 = vadd.f32 %v1443_v40, %v1387_v37  ;;  %v1458_v46 = vadd.f32 %v1457_v41, %v1388_v45 }
 0xb12   :  { %v1462_v49 = vmax.f32 %v1444_v42, 0.0  ;;  %v1463_v50 = vmax.f32 %v1458_v46, 0.0  ;;  %v5204_v42 = vld [vmem:[%s8424_s8 + $0xc0] sm:$0xff] }
 0xb14   :  { %v1464_v51 = vpack.c.bf16 %v1462_v49, %v1460_v47  ;;  %v1465_v53 = vpack.c.bf16 %v1463_v50, %v1461_v48  ;;  %v5205_v47 = vld [vmem:[%s8424_s8 + $0xc8] sm:$0xff] }
 0xb16   :  { %1605 = vmatmul.bf16.vlgmr.msrb.gmra.mxu3 %v1464_v51  ;;  %1619 = vmatmul.bf16.vlgmr.msrb.gmra.mxu0 %v1465_v53  ;;  %v5206_v51 = vld [vmem:[%s8424_s8 + $0xd0] sm:$0xff]  ;;  %v5207_v53 = vld [vmem:[%s8424_s8 + $0xd8] sm:$0xff] }
 0xb93   :  { %v1620_v56 = vpop.f32.mrf.mxu0 }
 0xb99   :  { %v1606_v58 = vpop.f32.mrf.mxu3 }
 0xb9a   :  { %v1607_v59 = vadd.f32 %v5138_v54, %v1606_v58 }
 0xb9b   :  { %v1622_v2 = vpop.f32.mrf.mxu0 }
 0xb9c   :  { %v1621_v60 = vadd.f32 %v1620_v56, %v1607_v59  ;;  %v6494_v59 = vld [vmem:[%s8419_s3 + $0x238] sm:$0xff] }
 0xb9e   :  { %v1625_v61 = vadd.f32 %v1621_v60, %v1374_v44  ;;  %v6479_v44 = vld [vmem:[%s8419_s3 + $0x280] sm:$0xff] }
 0xb9f   :  { %1778 = vmatpush.bf16.msrb.mxu2 %v6479_v44 }
 0xba0   :  { %v1633_v63 = vsel %vm127_vm3, %v1625_v61, 0.0 }
 0xba1   :  { %v1608_v0 = vpop.f32.mrf.mxu3  ;;  %1634 = vadd.xlane.f32.xlu1 %v1633_v63  ;;  %v6491_v63 = vld [vmem:[%s8419_s3 + $0x220] sm:$0xff] }
 0xba2   :  { %v1609_v1 = vadd.f32 %v5139_v62, %v1608_v0  ;;  %v6492_v62 = vld [vmem:[%s8419_s3 + $0x228] sm:$0xff] }
 0xba4   :  { %v1623_v3 = vadd.f32 %v1622_v2, %v1609_v1 }
 0xba6   :  { %v1626_v4 = vadd.f32 %v1623_v3, %v1375_v23  ;;  %v6486_v23 = vld [vmem:[%s8419_s3 + $0x318] sm:$0xff] }
 0xba7   :  { %1822 = vmatpush.bf16.msrb.mxu1 %v6486_v23 }
 0xba8   :  { %v1636_v5 = vsel %vm127_vm3, %v1626_v4, 0.0 }
 0xba9   :  { %1637 = vadd.xlane.f32.xlu2 %v1636_v5  ;;  %v6498_v5 = vld [vmem:[%s8419_s3 + $0x2b8] sm:$0xff] }
 0xbab   :  { %1823 = vmatpush.bf16.msrb.mxu1 %v6485_v25  ;;  %v6514_v25 = vld [vmem:[%s8419_s3 + $0x2d8] sm:$0xff] }
 0xbaf   :  { %1824 = vmatpush.bf16.msrb.mxu1 %v6484_v29  ;;  %v5322_v29 = vld [vmem:[%s8420_s4 + $0x50] sm:$0xff] }
 0xbb3   :  { %1825 = vmatpush.bf16.msrb.mxu1 %v6483_v33 }
 0xc14   :  { %v1635_v6 = vpop.xlane.xlu1 %1634 }
 0xc15   :  { %v1639_v7 = vmul.f32 %v1635_v6, %v6932_v52  ;;  %v5219_v6 = vld [vmem:[%s8420_s4 + $0x48] sm:$0xff] }
 0xc17   :  { %v1641_v8 = vsub.f32 %v1625_v61, %v1639_v7  ;;  %v6493_v61 = vld [vmem:[%s8419_s3 + $0x230] sm:$0xff] }
 0xc19   :  { %v1643_v9 = vmul.f32 %v1641_v8, %v1641_v8 }
 0xc1b   :  { %v1645_v10 = vsel %vm127_vm3, %v1643_v9, 0.0  ;;  %v5218_v9 = vld [vmem:[%s8420_s4 + $0x40] sm:$0xff] }
 0xc1c   :  { %v1638_v11 = vpop.xlane.xlu2 %1637  ;;  %1646 = vadd.xlane.f32.xlu0 %v1645_v10 }
 0xc1d   :  { %v1640_v12 = vmul.f32 %v1638_v11, %v6932_v52  ;;  %v6497_v11 = vld [vmem:[%s8419_s3 + $0x2b0] sm:$0xff] }
 0xc1f   :  { %v1642_v13 = vsub.f32 %v1626_v4, %v1640_v12 }
 0xc21   :  { %v1644_v14 = vmul.f32 %v1642_v13, %v1642_v13 }
 0xc23   :  { %v1648_v15 = vsel %vm127_vm3, %v1644_v14, 0.0  ;;  %v6496_v14 = vld [vmem:[%s8419_s3 + $0x2a8] sm:$0xff] }
 0xc24   :  { %1649 = vadd.xlane.f32.xlu1 %v1648_v15 }
 0xc8f   :  { %v1647_v57 = vpop.xlane.xlu0 %1646 }
 0xc90   :  { %v1651_v20 = vmul.f32 %v1647_v57, %v6932_v52 }
 0xc92   :  { %v1653_v30 = vadd.f32 1e-05, %v1651_v20 }
 0xc94   :  { %6701 = vrsqrt.f32 %v1653_v30  ;;  %vm1661_vm4 = vweird.f32 %v1653_v30 }
 0xc97   :  { %v1650_v24 = vpop.xlane.xlu1 %1649 }
 0xc98   :  { %v1652_v22 = vmul.f32 %v1650_v24, %v6932_v52 }
 0xc9a   :  { %v6702_v26 = vpop.eup %6701  ;;  %v1654_v27 = vadd.f32 1e-05, %v1652_v22 }
 0xc9b   :  { %v1656_v28 = vmul.f32 %v6702_v26, %v1653_v30  ;;  %vm1662_vm1 = vweird.f32 %v6702_v26 }
 0xc9c   :  { %6703 = vrsqrt.f32 %v1654_v27  ;;  %vm1663_vm5 = vmor %vm1661_vm4, %vm1662_vm1  ;;  %vm1671_vm7 = vweird.f32 %v1654_v27 }
 0xc9d   :  { %v1657_v31 = vmul.f32 %v6702_v26, %v1656_v28 }
 0xc9f   :  { %v1658_v32 = vmul.f32 0.5, %v1657_v31 }
 0xca1   :  { %v1659_v34 = vsub.f32 1.5, %v1658_v32  ;;  %v6513_v32 = vld [vmem:[%s8419_s3 + $0x2d0] sm:$0xff] }
 0xca2   :  { %v6704_v35 = vpop.eup %6703 }
 0xca3   :  { %v1660_v36 = vmul.f32 %v6702_v26, %v1659_v34  ;;  %v1666_v37 = vmul.f32 %v6704_v35, %v1654_v27  ;;  %vm1672_vm6 = vweird.f32 %v6704_v35 }
 0xca4   :  { %vm1673_vm8 = vmor %vm1671_vm7, %vm1672_vm6 }
 0xca5   :  { %v1667_v45 = vmul.f32 %v6704_v35, %v1666_v37  ;;  %v1664_v38 = vsel %vm1663_vm5, %v6702_v26, %v1660_v36  ;;  %v5323_v26 = vld [vmem:[%s8420_s4 + $0x58] sm:$0xff]  ;;  %v6511_v36 = vld [vmem:[%s8419_s3 + $0x2c0] sm:$0xff] }
 0xca6   :  { %v1675_v41 = vmul.f32 %v1664_v38, %v1641_v8  ;;  %v6502_v37 = vld [vmem:[%s8419_s3 + $0x338] sm:$0xff]  ;;  %v6500_v38 = vld [vmem:[%s8419_s3 + $0x328] sm:$0xff] }
 0xca7   :  { %v1668_v39 = vmul.f32 0.5, %v1667_v45  ;;  %v6501_v45 = vld [vmem:[%s8419_s3 + $0x330] sm:$0xff] }
 0xca8   :  { %v1677_v49 = vmul.f32 %v5204_v42, %v1675_v41 }
 0xca9   :  { %v1669_v40 = vsub.f32 1.5, %v1668_v39  ;;  %v6499_v39 = vld [vmem:[%s8419_s3 + $0x320] sm:$0xff] }
 0xcaa   :  { %v7469_v56 = vadd.f32 %v5206_v51, %v1677_v49 }
 0xcab   :  { %v1670_v46 = vmul.f32 %v6704_v35, %v1669_v40 }
 0xcad   :  { %v1674_v48 = vsel %vm1673_vm8, %v6704_v35, %v1670_v46  ;;  %v6512_v35 = vld [vmem:[%s8419_s3 + $0x2c8] sm:$0xff] }
 0xcae   :  { %v1676_v50 = vmul.f32 %v1674_v48, %v1642_v13 }
 0xcb0   :  { %v1678_v54 = vmul.f32 %v5205_v47, %v1676_v50  ;;  %v6490_v50 = vld [vmem:[%s8419_s3 + $0x398] sm:$0xff] }
 0xcb1   :  { %v1930_v51 = vsel %vm64_vm2, %v6490_v50, 0  ;;  %v5426_v50 = vld [vmem:[%s8420_s4 + $0x60] sm:$0xff] }
 0xcb2   :  { %v7471_v58 = vadd.f32 %v5207_v53, %v1678_v54  ;;  %1936 = vmatpush.bf16.xpose.msra.mxu0 %v1930_v51  ;;  %v6489_v53 = vld [vmem:[%s8419_s3 + $0x390] sm:$0xff]  ;;  %v5427_v51 = vld [vmem:[%s8420_s4 + $0x68] sm:$0xff] }
 0xcb4   :  { %v7478_v60 = vpack.c.bf16 %v7471_v58, %v7469_v56 }
 0xcb6   :  { %5236 = vmatmul.msk.bf16.vlgmr.msra.gmra.mxu1 %vm127_vm3, %v7478_v60  ;;  %5261 = vmatmul.msk.bf16.vlgmr.msrb.gmra.mxu2 %vm127_vm3, %v7478_v60 }
 0xcb7   :  { %1988 = vmatpush.bf16.msra.mxu1 %v6494_v59 }
 0xcbb   :  { %1989 = vmatpush.bf16.msra.mxu1 %v6493_v61  ;;  %v1927_v61 = vsel %vm64_vm2, %v6489_v53, 0 }
 0xcbc   :  { %1937 = vmatpush.bf16.xpose.msra.mxu0 %v1927_v61 }
 0xcbf   :  { %1990 = vmatpush.bf16.msra.mxu1 %v6492_v62  ;;  %v6488_v62 = vld [vmem:[%s8419_s3 + $0x388] sm:$0xff] }
 0xcc3   :  { %1991 = vmatpush.bf16.msra.mxu1 %v6491_v63 }
 0xcc6   :  { %5286 = vmatmul.msk.bf16.vlgmr.msrb.gmra.mxu1 %vm127_vm3, %v7478_v60 }
 0xcd6   :  { %5340 = vmatmul.msk.bf16.vlgmr.msra.gmra.mxu1 %vm127_vm3, %v7478_v60 }
 0xd33   :  { %v1733_v0 = vpop.f32.mrf.mxu1 }
 0xd34   :  { %v1734_v12 = vadd.f32 %v5218_v9, %v1733_v0  ;;  %v6509_v9 = vld [vmem:[%s8419_s3 + $0x250] sm:$0xff] }
 0xd39   :  { %v1780_v1 = vpop.f32.mrf.mxu2 }
 0xd3b   :  { %v1735_v2 = vpop.f32.mrf.mxu1 }
 0xd3c   :  { %v1736_v10 = vadd.f32 %v5219_v6, %v1735_v2 }
 0xd3e   :  { %v1832_v13 = vpack.c.bf16 %v1736_v10, %v1734_v12  ;;  %v6508_v10 = vld [vmem:[%s8419_s3 + $0x248] sm:$0xff] }
 0xd41   :  { %v1782_v3 = vpop.f32.mrf.mxu2 }
 0xd42   :  { %v1833_v4 = vpack.c.bf16 %v1782_v3, %v1780_v1  ;;  %v1924_v3 = vsel %vm64_vm2, %v6488_v62, 0 }
 0xd43   :  { %v1827_v7 = vpop.f32.mrf.mxu1  ;;  %1938 = vmatpush.bf16.xpose.msra.mxu0 %v1924_v3 }
 0xd44   :  { %v1838_v8 = vsel %vm64_vm2, %v1833_v4, 0  ;;  %v6487_v4 = vld [vmem:[%s8419_s3 + $0x380] sm:$0xff] }
 0xd45   :  { %1847 = vmatpush.bf16.xpose.msra.mxu3 %v1838_v8  ;;  %v6510_v8 = vld [vmem:[%s8419_s3 + $0x258] sm:$0xff] }
 0xd4b   :  { %v1829_v15 = vpop.f32.mrf.mxu1 }
 0xd4c   :  { %v1869_v16 = vpack.c.bf16 %v1829_v15, %v1827_v7  ;;  %5287 = vmatmul.msk.bf16.vlgmr.msra.gmra.mxu3 %vm64_vm2, %v1832_v13  ;;  %v1921_v7 = vsel %vm64_vm2, %v6487_v4, 0 }
 0xd4d   :  { %2035 = vmatpush.bf16.msrb.mxu3 %v6498_v5  ;;  %1939 = vmatpush.bf16.xpose.msra.mxu0 %v1921_v7 }
 0xd4e   :  { %1880 = vmatpush.bf16.msra.mxu2 %v1869_v16 }
 0xd51   :  { %2036 = vmatpush.bf16.msrb.mxu3 %v6497_v11  ;;  %v6507_v11 = vld [vmem:[%s8419_s3 + $0x240] sm:$0xff] }
 0xd52   :  { %2082 = vmatpush.bf16.msrb.mxu2 %v6502_v37  ;;  %v6530_v37 = vld [vmem:[%s8419_s3 + $0x2f8] sm:$0xff] }
 0xd53   :  { %v1993_v30 = vpop.f32.mrf.mxu1 }
 0xd54   :  { %v1994_v33 = vadd.f32 %v5322_v29, %v1993_v30 }
 0xd55   :  { %2037 = vmatpush.bf16.msrb.mxu3 %v6496_v14  ;;  %2248 = vmatpush.bf16.msrb.mxu0 %v6510_v8  ;;  %v5208_v8 = vld [vmem:[%s8424_s8 + $0xe0] sm:$0xff] }
 0xd56   :  { %2083 = vmatpush.bf16.msrb.mxu2 %v6501_v45 }
 0xd59   :  { %2038 = vmatpush.bf16.msrb.mxu3 %v6495_v55  ;;  %2249 = vmatpush.bf16.msrb.mxu0 %v6509_v9 }
 0xd5a   :  { %2084 = vmatpush.bf16.msrb.mxu2 %v6500_v38  ;;  %v6529_v38 = vld [vmem:[%s8419_s3 + $0x2f0] sm:$0xff] }
 0xd5b   :  { %v1995_v27 = vpop.f32.mrf.mxu1 }
 0xd5c   :  { %5365 = vmatmul.msk.bf16.vlgmr.msrb.gmra.mxu3 %vm127_vm3, %v7478_v60  ;;  %v1996_v31 = vadd.f32 %v5323_v26, %v1995_v27  ;;  %v6516_v26 = vld [vmem:[%s8419_s3 + $0x348] sm:$0xff]  ;;  %v6515_v27 = vld [vmem:[%s8419_s3 + $0x340] sm:$0xff] }
 0xd5d   :  { %2250 = vmatpush.bf16.msrb.mxu0 %v6508_v10 }
 0xd5e   :  { %v2092_v34 = vpack.c.bf16 %v1996_v31, %v1994_v33  ;;  %2085 = vmatpush.bf16.msrb.mxu2 %v6499_v39  ;;  %v6505_v31 = vld [vmem:[%s8419_s3 + $0x3b0] sm:$0xff]  ;;  %v6504_v33 = vld [vmem:[%s8419_s3 + $0x3a8] sm:$0xff]  ;;  %v6526_v39 = vld [vmem:[%s8419_s3 + $0x278] sm:$0xff] }
 0xd61   :  { %2251 = vmatpush.bf16.msrb.mxu0 %v6507_v11 }
 0xdcf   :  { %v1849_v17 = vpop.f32.mrf.mxu3 }
 0xdd0   :  { %v1854_v18 = vmul.f32 1.442695, %v1849_v17 }
 0xdd2   :  { %6705 = vpow2.f32 %v1854_v18 }
 0xdd7   :  { %v1851_v19 = vpop.f32.mrf.mxu3 }
 0xdd8   :  { %v6706_v43 = vpop.eup %6705  ;;  %v1856_v57 = vmul.f32 1.442695, %v1851_v19 }
 0xdd9   :  { %v1858_v20 = vsel %vm64_vm2, %v6706_v43, 0.0 }
 0xdda   :  { %6707 = vpow2.f32 %v1856_v57  ;;  %1859 = vadd.xlane.f32.xlu2 %v1858_v20 }
 0xddf   :  { %v2040_v21 = vpop.f32.mrf.mxu3 }
 0xde0   :  { %v6708_v44 = vpop.eup %6707 }
 0xde1   :  { %v1861_v23 = vsel %vm64_vm2, %v6708_v44, 0.0 }
 0xde2   :  { %1862 = vadd.xlane.f32.xlu0 %v1861_v23 }
 0xde7   :  { %v2042_v24 = vpop.f32.mrf.mxu3 }
 0xde8   :  { %v2093_v22 = vpack.c.bf16 %v2042_v24, %v2040_v21  ;;  %v6518_v21 = vld [vmem:[%s8419_s3 + $0x358] sm:$0xff] }
 0xdea   :  { %v2098_v28 = vsel %vm64_vm2, %v2093_v22, 0 }
 0xdeb   :  { %2107 = vmatpush.bf16.xpose.msrb.mxu1 %v2098_v28  ;;  %v6506_v28 = vld [vmem:[%s8419_s3 + $0x3b8] sm:$0xff] }
 0xdec   :  { %v2190_v29 = vsel %vm64_vm2, %v6506_v28, 0 }
 0xdf2   :  { %5391 = vmatmul.msk.bf16.vlgmr.msrb.gmra.mxu1 %vm64_vm2, %v2092_v34  ;;  %v2184_v34 = vsel %vm64_vm2, %v6504_v33, 0 }
 0xdf3   :  { %2295 = vmatpush.bf16.msra.mxu1 %v6514_v25  ;;  %v6517_v25 = vld [vmem:[%s8419_s3 + $0x350] sm:$0xff] }
 0xdf7   :  { %2296 = vmatpush.bf16.msra.mxu1 %v6513_v32  ;;  %v2187_v32 = vsel %vm64_vm2, %v6505_v31, 0 }
 0xdfb   :  { %2297 = vmatpush.bf16.msra.mxu1 %v6512_v35  ;;  %v6503_v35 = vld [vmem:[%s8419_s3 + $0x3a0] sm:$0xff] }
 0xdff   :  { %2298 = vmatpush.bf16.msra.mxu1 %v6511_v36  ;;  %v2181_v36 = vsel %vm64_vm2, %v6503_v35, 0  ;;  %v6522_v35 = vld [vmem:[%s8419_s3 + $0x3d8] sm:$0xff] }
 0xe02   :  { %5469 = vmatmul.msk.bf16.vlgmr.msra.gmra.mxu1 %vm127_vm3, %v7478_v60 }
 0xe4d   :  { %v1860_v40 = vpop.xlane.xlu2 %1859 }
 0xe4e   :  { %6709 = vrcp.f32 %v1860_v40  ;;  %v6528_v40 = vld [vmem:[%s8419_s3 + $0x2e8] sm:$0xff] }
 0xe54   :  { %v6710_v42 = vpop.eup %6709 }
 0xe55   :  { %v1863_v41 = vpop.xlane.xlu0 %1862  ;;  %v1866_v47 = vmul.f32 %v6710_v42, %v6706_v43  ;;  %v6525_v42 = vld [vmem:[%s8419_s3 + $0x270] sm:$0xff] }
 0xe56   :  { %6711 = vrcp.f32 %v1863_v41 }
 0xe5c   :  { %v6712_v46 = vpop.eup %6711 }
 0xe5d   :  { %v1867_v48 = vmul.f32 %v6712_v46, %v6708_v44  ;;  %v6527_v46 = vld [vmem:[%s8419_s3 + $0x2e0] sm:$0xff] }
 0xe5f   :  { %v1868_v49 = vpack.c.bf16 %v1867_v48, %v1866_v47  ;;  %v6524_v47 = vld [vmem:[%s8419_s3 + $0x268] sm:$0xff] }
 0xe61   :  { %5288 = vmatmul.msk.bf16.vlgmr.msra.gmra.mxu2 %vm64_vm2, %v1868_v49  ;;  %v6523_v49 = vld [vmem:[%s8419_s3 + $0x260] sm:$0xff] }
 0xe62   :  { %2196 = vmatpush.bf16.xpose.msra.mxu2 %v2190_v29 }
 0xe6a   :  { %2197 = vmatpush.bf16.xpose.msra.mxu2 %v2187_v32 }
 0xe6f   :  { %v2109_v54 = vpop.f32.mrf.mxu1 }
 0xe70   :  { %v2114_v59 = vmul.f32 1.442695, %v2109_v54 }
 0xe71   :  { %5390 = vmatmul.msk.bf16.vlgmr.msrb.gmra.mxu2 %vm127_vm3, %v7478_v60 }
 0xe72   :  { %6713 = vpow2.f32 %v2114_v59  ;;  %2198 = vmatpush.bf16.xpose.msra.mxu2 %v2184_v34 }
 0xe77   :  { %v2111_v63 = vpop.f32.mrf.mxu1 }
 0xe78   :  { %v6714_v0 = vpop.eup %6713  ;;  %v2116_v1 = vmul.f32 1.442695, %v2111_v63 }
 0xe79   :  { %v2118_v2 = vsel %vm64_vm2, %v6714_v0, 0.0 }
 0xe7a   :  { %6715 = vpow2.f32 %v2116_v1  ;;  %2119 = vadd.xlane.f32.xlu1 %v2118_v2  ;;  %2199 = vmatpush.bf16.xpose.msra.mxu2 %v2181_v36  ;;  %v2450_v36 = vsel %vm64_vm2, %v6522_v35, 0 }
 0xe7f   :  { %v2300_v12 = vpop.f32.mrf.mxu1 }
 0xe80   :  { %v6716_v5 = vpop.eup %6715 }
 0xe81   :  { %v2121_v6 = vsel %vm64_vm2, %v6716_v5, 0.0 }
 0xe82   :  { %2122 = vadd.xlane.f32.xlu2 %v2121_v6  ;;  %2508 = vmatpush.bf16.msrb.mxu2 %v6526_v39 }
 0xe86   :  { %2509 = vmatpush.bf16.msrb.mxu2 %v6525_v42 }
 0xe87   :  { %v2302_v14 = vpop.f32.mrf.mxu1 }
 0xe88   :  { %v2353_v15 = vpack.c.bf16 %v2302_v14, %v2300_v12 }
 0xe8a   :  { %v2358_v17 = vsel %vm64_vm2, %v2353_v15, 0  ;;  %2510 = vmatpush.bf16.msrb.mxu2 %v6524_v47 }
 0xe8e   :  { %2511 = vmatpush.bf16.msrb.mxu2 %v6523_v49 }
 0xee4   :  { %v1882_v13 = vpop.f32.mrf.mxu2 }
 0xeec   :  { %v1884_v16 = vpop.f32.mrf.mxu2 }
 0xeed   :  { %v1887_v55 = vpack.c.bf16 %v1884_v16, %v1882_v13  ;;  %v2120_v18 = vpop.xlane.xlu1 %2119 }
 0xeee   :  { %6717 = vrcp.f32 %v2120_v18 }
 0xeef   :  { %5313 = vmatmul.msk.bf16.vlgmr.msra.gmra.mxu0 %vm64_vm2, %v1887_v55 }
 0xef0   :  { %2367 = vmatpush.bf16.xpose.msra.mxu0 %v2358_v17 }
 0xef4   :  { %v2087_v19 = vpop.f32.mrf.mxu2  ;;  %v6718_v57 = vpop.eup %6717 }
 0xef5   :  { %v2123_v43 = vpop.xlane.xlu2 %2122  ;;  %v2126_v44 = vmul.f32 %v6718_v57, %v6714_v0  ;;  %v5530_v57 = vld [vmem:[%s8420_s4 + $0x70] sm:$0xff] }
 0xef6   :  { %6719 = vrcp.f32 %v2123_v43 }
 0xefc   :  { %v6720_v20 = vpop.eup %6719  ;;  %v2089_v30 = vpop.f32.mrf.mxu2 }
 0xefd   :  { %v2127_v23 = vmul.f32 %v6720_v20, %v6716_v5  ;;  %v2129_v24 = vpack.c.bf16 %v2089_v30, %v2087_v19  ;;  %v5531_v20 = vld [vmem:[%s8420_s4 + $0x78] sm:$0xff] }
 0xeff   :  { %v2128_v22 = vpack.c.bf16 %v2127_v23, %v2126_v44  ;;  %2140 = vmatpush.bf16.msra.mxu3 %v2129_v24  ;;  %5444 = vmatmul.msk.bf16.vlgmr.msrb.gmra.mxu0 %vm127_vm3, %v7478_v60  ;;  %v6534_v24 = vld [vmem:[%s8419_s3 + $0x378] sm:$0xff] }
 0xf00   :  { %2555 = vmatpush.bf16.msrb.mxu0 %v6530_v37  ;;  %v6521_v37 = vld [vmem:[%s8419_s3 + $0x3d0] sm:$0xff] }
 0xf02   :  { %5392 = vmatmul.msk.bf16.vlgmr.msra.gmra.mxu3 %vm64_vm2, %v2128_v22  ;;  %v6533_v22 = vld [vmem:[%s8419_s3 + $0x370] sm:$0xff] }
 0xf03   :  { %2342 = vmatpush.bf16.msrb.mxu3 %v6518_v21 }
 0xf04   :  { %2556 = vmatpush.bf16.msrb.mxu0 %v6529_v38  ;;  %v6520_v38 = vld [vmem:[%s8419_s3 + $0x3c8] sm:$0xff] }
 0xf05   :  { %v2444_v42 = vsel %vm64_vm2, %v6520_v38, 0  ;;  %v6545_v38 = vld [vmem:[%s8421_s5 + $0x74] sm:$0xf] }
 0xf07   :  { %2343 = vmatpush.bf16.msrb.mxu3 %v6517_v25  ;;  %v6532_v25 = vld [vmem:[%s8419_s3 + $0x368] sm:$0xff] }
 0xf08   :  { %2557 = vmatpush.bf16.msrb.mxu0 %v6528_v40 }
 0xf0b   :  { %2344 = vmatpush.bf16.msrb.mxu3 %v6516_v26  ;;  %v6531_v26 = vld [vmem:[%s8419_s3 + $0x360] sm:$0xff] }
 0xf0c   :  { %2558 = vmatpush.bf16.msrb.mxu0 %v6527_v46 }
 0xf0f   :  { %2345 = vmatpush.bf16.msrb.mxu3 %v6515_v27 }
 0xf12   :  { %5494 = vmatmul.msk.bf16.vlgmr.msrb.gmra.mxu3 %vm127_vm3, %v7478_v60 }
 0xf13   :  { %2456 = vmatpush.bf16.xpose.msra.mxu3 %v2450_v36 }
 0xf6c   :  { %v1941_v45 = vpop.f32.mrf.mxu0 }
 0xf6d   :  { %v1946_v11 = vadd.f32 %v5208_v8, %v1941_v45  ;;  %v2447_v45 = vsel %vm64_vm2, %v6521_v37, 0  ;;  %v6538_v8 = vld [vmem:[%s8419_s3 + $0x3f8] sm:$0xff]  ;;  %v5668_v37 = vld [vmem:[%s8421_s5 + $0x70] sm:$0xf] }
 0xf6e   :  { %2457 = vmatpush.bf16.xpose.msra.mxu3 %v2447_v45  ;;  %v6546_v45 = vld [vmem:[%s8421_s5 + $0x74] sm:$0xf0] }
 0xf74   :  { %v7635_v41 = vpop.f32.mrf.mxu0 }
 0xf76   :  { %2458 = vmatpush.bf16.xpose.msra.mxu3 %v2444_v42 }
 0xf7c   :  { %v2253_v48 = vpop.f32.mrf.mxu0 }
 0xf7d   :  { %v2254_v54 = vadd.f32 %v5426_v50, %v2253_v48 }
 0xf84   :  { %v2255_v53 = vpop.f32.mrf.mxu0 }
 0xf85   :  { %v2256_v59 = vadd.f32 %v5427_v51, %v2255_v53  ;;  %v2142_v61 = vpop.f32.mrf.mxu3  ;;  %v6519_v51 = vld [vmem:[%s8419_s3 + $0x3c0] sm:$0xff] }
 0xf86   :  { %v2441_v53 = vsel %vm64_vm2, %v6519_v51, 0  ;;  %v5652_v51 = vld [vmem:[%s8421_s5 + $0x50] sm:$0xf] }
 0xf87   :  { %v2352_v62 = vpack.c.bf16 %v2256_v59, %v2254_v54  ;;  %2459 = vmatpush.bf16.xpose.msra.mxu3 %v2441_v53  ;;  %v6542_v53 = vld [vmem:[%s8421_s5 + $0x54] sm:$0xf0] }
 0xf89   :  { %5495 = vmatmul.msk.bf16.vlgmr.msra.gmra.mxu0 %vm64_vm2, %v2352_v62 }
 0xf8d   :  { %v2144_v63 = vpop.f32.mrf.mxu3 }
 0xf8e   :  { %v2147_v0 = vpack.c.bf16 %v2144_v63, %v2142_v61 }
 0xf90   :  { %5417 = vmatmul.msk.bf16.vlgmr.msra.gmra.mxu2 %vm64_vm2, %v2147_v0 }
 0xf95   :  { %v2347_v1 = vpop.f32.mrf.mxu3 }
 0xf99   :  { %5573 = vmatmul.msk.bf16.vlgmr.msrb.gmra.mxu0 %vm127_vm3, %v7478_v60 }
 0xf9d   :  { %v2349_v2 = vpop.f32.mrf.mxu3 }
 0xf9e   :  { %v2389_v3 = vpack.c.bf16 %v2349_v2, %v2347_v1 }
 0xfa0   :  { %2400 = vmatpush.bf16.msrb.mxu1 %v2389_v3  ;;  %5548 = vmatmul.msk.bf16.vlgmr.msrb.gmra.mxu2 %vm127_vm3, %v7478_v60 }
 0xfa4   :  { %2602 = vmatpush.bf16.msra.mxu1 %v6534_v24 }
 0xfa8   :  { %2603 = vmatpush.bf16.msra.mxu1 %v6533_v22 }
 0xfac   :  { %2604 = vmatpush.bf16.msra.mxu1 %v6532_v25 }
 0xfb0   :  { %2605 = vmatpush.bf16.msra.mxu1 %v6531_v26 }
0x1006   :  { %v2369_v4 = vpop.f32.mrf.mxu0 }
0x1007   :  { %v2374_v5 = vmul.f32 1.442695, %v2369_v4 }
0x1009   :  { %6721 = vpow2.f32 %v2374_v5 }
0x100e   :  { %v2371_v6 = vpop.f32.mrf.mxu0 }
0x100f   :  { %v6722_v7 = vpop.eup %6721  ;;  %v2376_v9 = vmul.f32 1.442695, %v2371_v6 }
0x1010   :  { %v2378_v10 = vsel %vm64_vm2, %v6722_v7, 0.0 }
0x1011   :  { %6723 = vpow2.f32 %v2376_v9  ;;  %2379 = vadd.xlane.f32.xlu0 %v2378_v10  ;;  %v2710_v9 = vsel %vm64_vm2, %v6538_v8, 0  ;;  %v6537_v10 = vld [vmem:[%s8419_s3 + $0x3f0] sm:$0xff]  ;;  %v6554_v8 = vld [vmem:[%s8422_s6 + $0xb8] sm:$0xff] }
0x1013   :  { %v2201_v12 = vpop.f32.mrf.mxu2 }
0x1014   :  { %v7665_v13 = vadd.f32 %v2201_v12, %v1946_v11  ;;  %v2707_v11 = vsel %vm64_vm2, %v6537_v10, 0  ;;  %v6536_v12 = vld [vmem:[%s8419_s3 + $0x3e8] sm:$0xff] }
0x1016   :  { %v2560_v14 = vpop.f32.mrf.mxu0 }
0x1017   :  { %v6724_v15 = vpop.eup %6723 }
0x1018   :  { %v2381_v16 = vsel %vm64_vm2, %v6724_v15, 0.0 }
0x1019   :  { %2382 = vadd.xlane.f32.xlu1 %v2381_v16 }
0x101b   :  { %v7668_v55 = vpop.f32.mrf.mxu2 }
0x101e   :  { %v2562_v17 = vpop.f32.mrf.mxu0 }
0x101f   :  { %v2613_v18 = vpack.c.bf16 %v2562_v17, %v2560_v14  ;;  %v2704_v14 = vsel %vm64_vm2, %v6536_v12, 0  ;;  %v6553_v12 = vld [vmem:[%s8422_s6 + $0xb0] sm:$0xff] }
0x1021   :  { %v2618_v19 = vsel %vm64_vm2, %v2613_v18, 0 }
0x1022   :  { %2627 = vmatpush.bf16.xpose.msra.mxu2 %v2618_v19 }
0x1023   :  { %v2513_v43 = vpop.f32.mrf.mxu2 }
0x1024   :  { %v2514_v21 = vadd.f32 %v5530_v57, %v2513_v43 }
0x102b   :  { %v2515_v30 = vpop.f32.mrf.mxu2 }
0x102c   :  { %v2516_v44 = vadd.f32 %v5531_v20, %v2515_v30  ;;  %v5209_v20 = vld [vmem:[%s8424_s8 + $0xe8] sm:$0xff] }
0x102e   :  { %v2612_v23 = vpack.c.bf16 %v2516_v44, %v2514_v21  ;;  %v1947_v44 = vadd.f32 %v5209_v20, %v7635_v41  ;;  %v6551_v20 = vld [vmem:[%s8422_s6 + $0xa0] sm:$0xff] }
0x1030   :  { %5599 = vmatmul.msk.bf16.vlgmr.msra.gmra.mxu2 %vm64_vm2, %v2612_v23  ;;  %v2207_v22 = vadd.f32 %v7668_v55, %v1947_v44 }
0x1084   :  { %v2380_v27 = vpop.xlane.xlu0 %2379 }
0x1085   :  { %6725 = vrcp.f32 %v2380_v27 }
0x108b   :  { %v6726_v29 = vpop.eup %6725 }
0x108c   :  { %v2383_v28 = vpop.xlane.xlu1 %2382  ;;  %v2386_v32 = vmul.f32 %v6726_v29, %v6722_v7 }
0x108d   :  { %6727 = vrcp.f32 %v2383_v28 }
0x1093   :  { %v6728_v31 = vpop.eup %6727 }
0x1094   :  { %v2387_v33 = vmul.f32 %v6728_v31, %v6724_v15  ;;  %v6535_v15 = vld [vmem:[%s8419_s3 + $0x3e0] sm:$0xff] }
0x1095   :  { %v2701_v16 = vsel %vm64_vm2, %v6535_v15, 0 }
0x1096   :  { %v2388_v34 = vpack.c.bf16 %v2387_v33, %v2386_v32 }
0x1098   :  { %5496 = vmatmul.msk.bf16.vlgmr.msrb.gmra.mxu1 %vm64_vm2, %v2388_v34 }
0x1099   :  { %2716 = vmatpush.bf16.xpose.msrb.mxu1 %v2710_v9  ;;  %v6562_v9 = vld [vmem:[%s8422_s6 + $0xf8] sm:$0xff] }
0x10a1   :  { %2717 = vmatpush.bf16.xpose.msrb.mxu1 %v2707_v11 }
0x10a8   :  { %5598 = vmatmul.msk.bf16.vlgmr.msra.gmra.mxu1 %vm127_vm3, %v7478_v60 }
0x10a9   :  { %2718 = vmatpush.bf16.xpose.msrb.mxu1 %v2704_v14  ;;  %v6561_v14 = vld [vmem:[%s8422_s6 + $0xf0] sm:$0xff] }
0x10b1   :  { %2719 = vmatpush.bf16.xpose.msrb.mxu1 %v2701_v16 }
0x10b3   :  { %v2629_v39 = vpop.f32.mrf.mxu2 }
0x10b4   :  { %v2634_v40 = vmul.f32 1.442695, %v2629_v39  ;;  %v5669_v39 = vor.u32 %v6546_v45, %v5668_v37  ;;  %v6558_v45 = vld [vmem:[%s8422_s6 + $0xd8] sm:$0xff] }
0x10b6   :  { %6729 = vpow2.f32 %v2634_v40  ;;  %v5670_v40 = vld [vmem:[%s8421_s5 + $0x78] sm:$0xf0]  ;;  %2846 = vmatpush.bf16.msrb.mxu3 %v5669_v39  ;;  %v6557_v39 = vld [vmem:[%s8422_s6 + $0xd0] sm:$0xff] }
0x10b7   :  { %v5673_v42 = vor.u32 %v6545_v38, %v5670_v40  ;;  %v6549_v38 = vld [vmem:[%s8422_s6 + $0x90] sm:$0xff]  ;;  %v6548_v40 = vld [vmem:[%s8422_s6 + $0x88] sm:$0xff] }
0x10b9   :  { %2860 = vmatpush.bf16.msrb.mxu2 %v5673_v42  ;;  %v6556_v42 = vld [vmem:[%s8422_s6 + $0xc8] sm:$0xff] }
0x10bb   :  { %v2631_v60 = vpop.f32.mrf.mxu2 }
0x10bc   :  { %v6730_v46 = vpop.eup %6729  ;;  %v2636_v47 = vmul.f32 1.442695, %v2631_v60  ;;  %v5660_v60 = vld [vmem:[%s8421_s5 + $0x60] sm:$0xf] }
0x10bd   :  { %v2638_v48 = vsel %vm64_vm2, %v6730_v46, 0.0 }
0x10be   :  { %6731 = vpow2.f32 %v2636_v47  ;;  %2639 = vadd.xlane.f32.xlu2 %v2638_v48  ;;  %v6543_v47 = vld [vmem:[%s8421_s5 + $0x64] sm:$0xf] }
0x10c4   :  { %v6732_v49 = vpop.eup %6731 }
0x10c5   :  { %v2641_v50 = vsel %vm64_vm2, %v6732_v49, 0.0 }
0x10c6   :  { %2642 = vadd.xlane.f32.xlu0 %v2641_v50 }
0x1115   :  { %v2402_v54 = vpop.f32.mrf.mxu1 }
0x111d   :  { %v2404_v59 = vpop.f32.mrf.mxu1 }
0x111e   :  { %v2407_v61 = vpack.c.bf16 %v2404_v59, %v2402_v54  ;;  %v6541_v54 = vld [vmem:[%s8421_s5 + $0x54] sm:$0xf]  ;;  %v5653_v59 = vor.u32 %v6542_v53, %v5652_v51  ;;  %v5641_v53 = vld [vmem:[%s8423_s7 + $0x38] sm:$0xff] }
0x111f   :  { %v5640_v51 = vld [vmem:[%s8423_s7 + $0x30] sm:$0xff] }
0x1120   :  { %5521 = vmatmul.msk.bf16.vlgmr.msra.gmra.mxu3 %vm64_vm2, %v2407_v61  ;;  %v5654_v61 = vld [vmem:[%s8421_s5 + $0x58] sm:$0xf0] }
0x1125   :  { %v2607_v62 = vpop.f32.mrf.mxu1 }
0x112d   :  { %v2609_v63 = vpop.f32.mrf.mxu1 }
0x112e   :  { %v2649_v0 = vpack.c.bf16 %v2609_v63, %v2607_v62  ;;  %v5657_v63 = vor.u32 %v6541_v54, %v5654_v61 }
0x1130   :  { %2660 = vmatpush.bf16.msra.mxu0 %v2649_v0 }
0x1131   :  { %v2640_v1 = vpop.xlane.xlu2 %2639 }
0x1132   :  { %6733 = vrcp.f32 %v2640_v1  ;;  %v5644_v1 = vld [vmem:[%s8421_s5 + $0x40] sm:$0xf] }
0x1134   :  { %3008 = vmatpush.bf16.msrb.mxu0 %v6554_v8  ;;  %v5708_v8 = vld [vmem:[%s8424_s8 + $0x110] sm:$0xff] }
0x1138   :  { %v6734_v3 = vpop.eup %6733  ;;  %3009 = vmatpush.bf16.msrb.mxu0 %v6553_v12 }
0x1139   :  { %v2643_v2 = vpop.xlane.xlu0 %2642  ;;  %v2646_v5 = vmul.f32 %v6734_v3, %v6730_v46  ;;  %v6544_v46 = vld [vmem:[%s8421_s5 + $0x64] sm:$0xf0]  ;;  %v6539_v3 = vld [vmem:[%s8421_s5 + $0x44] sm:$0xf] }
0x113a   :  { %6735 = vrcp.f32 %v2643_v2  ;;  %v5661_v48 = vor.u32 %v6544_v46, %v5660_v60  ;;  %v6540_v2 = vld [vmem:[%s8421_s5 + $0x44] sm:$0xf0]  ;;  %v6547_v60 = vld [vmem:[%s8422_s6 + $0x80] sm:$0xff] }
0x113b   :  { %v6555_v46 = vld [vmem:[%s8422_s6 + $0xc0] sm:$0xff] }
0x113c   :  { %2847 = vmatpush.bf16.msrb.mxu3 %v5661_v48 }
0x1140   :  { %v6736_v4 = vpop.eup %6735  ;;  %2848 = vmatpush.bf16.msrb.mxu3 %v5653_v59 }
0x1141   :  { %v2647_v6 = vmul.f32 %v6736_v4, %v6732_v49  ;;  %v5662_v49 = vld [vmem:[%s8421_s5 + $0x68] sm:$0xf0] }
0x1142   :  { %v5665_v50 = vor.u32 %v6543_v47, %v5662_v49  ;;  %v5638_v49 = vld [vmem:[%s8423_s7 + $0x20] sm:$0xff] }
0x1143   :  { %v2648_v7 = vpack.c.bf16 %v2647_v6, %v2646_v5  ;;  %v5645_v5 = vor.u32 %v6540_v2, %v5644_v1  ;;  %v5646_v6 = vld [vmem:[%s8421_s5 + $0x48] sm:$0xf0] }
0x1144   :  { %2861 = vmatpush.bf16.msrb.mxu2 %v5665_v50  ;;  %v5639_v50 = vld [vmem:[%s8423_s7 + $0x28] sm:$0xff] }
0x1145   :  { %5600 = vmatmul.msk.bf16.vlgmr.msra.gmra.mxu0 %vm64_vm2, %v2648_v7  ;;  %v5649_v7 = vor.u32 %v6539_v3, %v5646_v6  ;;  %2849 = vmatpush.bf16.msrb.mxu3 %v5645_v5 }
0x1148   :  { %2862 = vmatpush.bf16.msrb.mxu2 %v5657_v63 }
0x1149   :  { %3022 = vmatpush.bf16.msra.mxu3 %v6562_v9 }
0x114c   :  { %2863 = vmatpush.bf16.msrb.mxu2 %v5649_v7 }
0x114d   :  { %3023 = vmatpush.bf16.msra.mxu3 %v6561_v14  ;;  %v5709_v14 = vld [vmem:[%s8424_s8 + $0x118] sm:$0xff] }
0x11a3   :  { %v2461_v43 = vpop.f32.mrf.mxu3 }
0x11a4   :  { %v2466_v57 = vadd.f32 %v2461_v43, %v7665_v13 }
0x11ab   :  { %v2463_v24 = vpop.f32.mrf.mxu3 }
0x11ac   :  { %v2467_v26 = vadd.f32 %v2463_v24, %v2207_v22 }
0x11c2   :  { %v2662_v17 = vpop.f32.mrf.mxu0 }
0x11ca   :  { %v2664_v18 = vpop.f32.mrf.mxu0 }
0x11cb   :  { %v2667_v19 = vpack.c.bf16 %v2664_v18, %v2662_v17  ;;  %v6552_v18 = vld [vmem:[%s8422_s6 + $0xa8] sm:$0xff] }
0x11cc   :  { %3010 = vmatpush.bf16.msrb.mxu0 %v6552_v18 }
0x11cd   :  { %5625 = vmatmul.msk.bf16.vlgmr.msrb.gmra.mxu1 %vm64_vm2, %v2667_v19  ;;  %v6560_v19 = vld [vmem:[%s8422_s6 + $0xe8] sm:$0xff] }
0x11ce   :  { %3024 = vmatpush.bf16.msra.mxu3 %v6560_v19 }
0x11d0   :  { %3011 = vmatpush.bf16.msrb.mxu0 %v6551_v20 }
0x124a   :  { %v2721_v30 = vpop.f32.mrf.mxu1 }
0x124b   :  { %v2726_v21 = vadd.f32 %v2721_v30, %v2466_v57  ;;  %v6559_v30 = vld [vmem:[%s8422_s6 + $0xe0] sm:$0xff] }
0x124c   :  { %3025 = vmatpush.bf16.msra.mxu3 %v6559_v30 }
0x124d   :  { %v2728_v23 = vadd.f32 %v2726_v21, %v7469_v56 }
0x124f   :  { %v2736_v25 = vsel %vm127_vm3, %v2728_v23, 0.0 }
0x1250   :  { %2737 = vadd.xlane.f32.xlu1 %v2736_v25  ;;  %3026 = vmatpush.bf16.msra.mxu3 %v6558_v45  ;;  %v6573_v45 = vld [vmem:[%s8419_s3 + $0x510] sm:$0xff] }
0x1252   :  { %v2723_v27 = vpop.f32.mrf.mxu1 }
0x1253   :  { %v2727_v28 = vadd.f32 %v2723_v27, %v2467_v26 }
0x1254   :  { %3027 = vmatpush.bf16.msra.mxu3 %v6557_v39 }
0x1255   :  { %v2729_v13 = vadd.f32 %v2727_v28, %v7471_v58 }
0x1257   :  { %v2739_v29 = vsel %vm127_vm3, %v2729_v13, 0.0 }
0x1258   :  { %2740 = vadd.xlane.f32.xlu2 %v2739_v29  ;;  %3028 = vmatpush.bf16.msra.mxu3 %v6556_v42  ;;  %v6572_v42 = vld [vmem:[%s8419_s3 + $0x508] sm:$0xff] }
0x125c   :  { %3029 = vmatpush.bf16.msra.mxu3 %v6555_v46 }
0x12c3   :  { %v2738_v31 = vpop.xlane.xlu1 %2737 }
0x12c4   :  { %v2742_v32 = vmul.f32 %v2738_v31, %v6932_v52  ;;  %v5627_v31 = vld [vmem:[%s8424_s8 + $0xf8] sm:$0xff] }
0x12c6   :  { %v7741_v41 = vsub.f32 %v2728_v23, %v2742_v32 }
0x12c8   :  { %v2746_v56 = vmul.f32 %v7741_v41, %v7741_v41 }
0x12ca   :  { %v2748_v55 = vsel %vm127_vm3, %v2746_v56, 0.0 }
0x12cb   :  { %2749 = vadd.xlane.f32.xlu0 %v2748_v55  ;;  %v2741_v33 = vpop.xlane.xlu2 %2740 }
0x12cc   :  { %v2743_v34 = vmul.f32 %v2741_v33, %v6932_v52  ;;  %v5628_v33 = vld [vmem:[%s8424_s8 + $0x100] sm:$0xff] }
0x12ce   :  { %v7747_v35 = vsub.f32 %v2729_v13, %v2743_v34  ;;  %v5626_v13 = vld [vmem:[%s8424_s8 + $0xf0] sm:$0xff] }
0x12d0   :  { %v2747_v58 = vmul.f32 %v7747_v35, %v7747_v35 }
0x12d2   :  { %v2751_v36 = vsel %vm127_vm3, %v2747_v58, 0.0 }
0x12d3   :  { %2752 = vadd.xlane.f32.xlu1 %v2751_v36 }
0x133e   :  { %v2750_v62 = vpop.xlane.xlu0 %2749 }
0x133f   :  { %v2754_v0 = vmul.f32 %v2750_v62, %v6932_v52 }
0x1341   :  { %v2756_v4 = vadd.f32 1e-05, %v2754_v0 }
0x1343   :  { %6737 = vrsqrt.f32 %v2756_v4  ;;  %vm2764_vm10 = vweird.f32 %v2756_v4 }
0x1346   :  { %v2753_v10 = vpop.xlane.xlu1 %2752 }
0x1347   :  { %v2755_v11 = vmul.f32 %v2753_v10, %v6932_v52 }
0x1349   :  { %v6738_v15 = vpop.eup %6737  ;;  %v2757_v16 = vadd.f32 1e-05, %v2755_v11 }
0x134a   :  { %v2759_v17 = vmul.f32 %v6738_v15, %v2756_v4  ;;  %vm2765_vm9 = vweird.f32 %v6738_v15 }
0x134b   :  { %6739 = vrsqrt.f32 %v2757_v16  ;;  %vm2766_vm11 = vmor %vm2764_vm10, %vm2765_vm9  ;;  %vm2774_vm13 = vweird.f32 %v2757_v16 }
0x134c   :  { %v2760_v43 = vmul.f32 %v6738_v15, %v2759_v17 }
0x134e   :  { %v2761_v57 = vmul.f32 0.5, %v2760_v43 }
0x1350   :  { %v2762_v21 = vsub.f32 1.5, %v2761_v57 }
0x1351   :  { %v6740_v44 = vpop.eup %6739 }
0x1352   :  { %v2763_v23 = vmul.f32 %v6738_v15, %v2762_v21  ;;  %v2769_v24 = vmul.f32 %v6740_v44, %v2757_v16  ;;  %vm2775_vm12 = vweird.f32 %v6740_v44 }
0x1353   :  { %vm2776_vm14 = vmor %vm2774_vm13, %vm2775_vm12 }
0x1354   :  { %v2770_v22 = vmul.f32 %v6740_v44, %v2769_v24  ;;  %v2767_v25 = vsel %vm2766_vm11, %v6738_v15, %v2763_v23 }
0x1355   :  { %v2778_v28 = vmul.f32 %v2767_v25, %v7741_v41  ;;  %v5629_v41 = vld [vmem:[%s8424_s8 + $0x108] sm:$0xff] }
0x1356   :  { %v2771_v26 = vmul.f32 0.5, %v2770_v22 }
0x1357   :  { %v2780_v56 = vmul.f32 %v5626_v13, %v2778_v28  ;;  %v6566_v28 = vld [vmem:[%s8419_s3 + $0x418] sm:$0xff] }
0x1358   :  { %v2772_v27 = vsub.f32 1.5, %v2771_v26  ;;  %v6570_v13 = vld [vmem:[%s8419_s3 + $0x498] sm:$0xff]  ;;  %3139 = vmatpush.bf16.msra.mxu2 %v6566_v28 }
0x1359   :  { %v2782_v58 = vadd.f32 %v5628_v33, %v2780_v56  ;;  %3186 = vmatpush.bf16.msra.mxu1 %v6570_v13  ;;  %v6568_v56 = vld [vmem:[%s8419_s3 + $0x488] sm:$0xff] }
0x135a   :  { %v2773_v29 = vmul.f32 %v6740_v44, %v2772_v27 }
0x135c   :  { %v2777_v32 = vsel %vm2776_vm14, %v6740_v44, %v2773_v29  ;;  %v6565_v29 = vld [vmem:[%s8419_s3 + $0x410] sm:$0xff] }
0x135d   :  { %v2779_v55 = vmul.f32 %v2777_v32, %v7747_v35  ;;  %v6550_v35 = vld [vmem:[%s8422_s6 + $0x98] sm:$0xff]  ;;  %3140 = vmatpush.bf16.msra.mxu2 %v6565_v29  ;;  %v6564_v32 = vld [vmem:[%s8419_s3 + $0x408] sm:$0xff] }
0x135e   :  { %3012 = vmatpush.bf16.msrb.mxu0 %v6550_v35 }
0x135f   :  { %v2781_v34 = vmul.f32 %v5627_v31, %v2779_v55  ;;  %v6569_v31 = vld [vmem:[%s8419_s3 + $0x490] sm:$0xff] }
0x1360   :  { %3187 = vmatpush.bf16.msra.mxu1 %v6569_v31 }
0x1361   :  { %v2783_v36 = vadd.f32 %v5629_v41, %v2781_v34  ;;  %3141 = vmatpush.bf16.msra.mxu2 %v6564_v32  ;;  %v6563_v34 = vld [vmem:[%s8419_s3 + $0x400] sm:$0xff] }
0x1362   :  { %3013 = vmatpush.bf16.msrb.mxu0 %v6549_v38 }
0x1363   :  { %v2784_v37 = vpack.c.bf16 %v2783_v36, %v2782_v58 }
0x1364   :  { %3188 = vmatpush.bf16.msra.mxu1 %v6568_v56 }
0x1365   :  { %5674 = vmatmul.msk.bf16.vlgmr.msrb.gmra.mxu3 %vm127_vm3, %v2784_v37  ;;  %5675 = vmatmul.msk.bf16.vlgmr.msrb.gmra.mxu2 %vm127_vm3, %v2784_v37 }
0x1366   :  { %3014 = vmatpush.bf16.msrb.mxu0 %v6548_v40  ;;  %3142 = vmatpush.bf16.msra.mxu2 %v6563_v34 }
0x136a   :  { %3015 = vmatpush.bf16.msrb.mxu0 %v6547_v60 }
0x13e8   :  { %v2851_v47 = vpop.f32.mrf.mxu3  ;;  %v2865_v48 = vpop.f32.mrf.mxu2 }
0x13e9   :  { %v2852_v54 = vadd.f32 %v5638_v49, %v2851_v47  ;;  %v2866_v59 = vadd.f32 %v5639_v50, %v2865_v48  ;;  %v6571_v47 = vld [vmem:[%s8419_s3 + $0x500] sm:$0xff] }
0x13eb   :  { %v2870_v1 = vmax.f32 %v2852_v54, 0.0  ;;  %v2871_v2 = vmax.f32 %v2866_v59, 0.0 }
0x13f0   :  { %v2853_v61 = vpop.f32.mrf.mxu3  ;;  %v2867_v62 = vpop.f32.mrf.mxu2 }
0x13f1   :  { %v2854_v63 = vadd.f32 %v5640_v51, %v2853_v61  ;;  %v2868_v0 = vadd.f32 %v5641_v53, %v2867_v62 }
0x13f3   :  { %v2872_v3 = vmax.f32 %v2854_v63, 0.0  ;;  %v2873_v4 = vmax.f32 %v2868_v0, 0.0  ;;  %v5774_v63 = vld [vmem:[%s8424_s8 + $0x120] sm:$0xff] }
0x13f5   :  { %v2874_v5 = vpack.c.bf16 %v2872_v3, %v2870_v1  ;;  %v2875_v6 = vpack.c.bf16 %v2873_v4, %v2871_v2  ;;  %v5775_v1 = vld [vmem:[%s8424_s8 + $0x128] sm:$0xff] }
0x13f7   :  { %3016 = vmatmul.bf16.vlgmr.msrb.gmra.mxu0 %v2874_v5  ;;  %3030 = vmatmul.bf16.vlgmr.msra.gmra.mxu3 %v2875_v6  ;;  %v5776_v5 = vld [vmem:[%s8424_s8 + $0x130] sm:$0xff]  ;;  %v5777_v6 = vld [vmem:[%s8424_s8 + $0x138] sm:$0xff] }
0x1474   :  { %v3017_v7 = vpop.f32.mrf.mxu0 }
0x1475   :  { %v3018_v9 = vadd.f32 %v5708_v8, %v3017_v7 }
0x147a   :  { %v3031_v10 = vpop.f32.mrf.mxu3 }
0x147b   :  { %v3032_v11 = vadd.f32 %v3031_v10, %v3018_v9  ;;  %v6582_v10 = vld [vmem:[%s8419_s3 + $0x438] sm:$0xff] }
0x147c   :  { %v3019_v15 = vpop.f32.mrf.mxu0 }
0x147d   :  { %v3036_v12 = vadd.f32 %v3032_v11, %v2782_v58  ;;  %v3020_v17 = vadd.f32 %v5709_v14, %v3019_v15  ;;  %v6567_v58 = vld [vmem:[%s8419_s3 + $0x480] sm:$0xff]  ;;  %v6580_v14 = vld [vmem:[%s8419_s3 + $0x428] sm:$0xff] }
0x147e   :  { %3189 = vmatpush.bf16.msra.mxu1 %v6567_v58  ;;  %v6579_v15 = vld [vmem:[%s8419_s3 + $0x420] sm:$0xff] }
0x147f   :  { %v3044_v16 = vsel %vm127_vm3, %v3036_v12, 0.0 }
0x1480   :  { %3045 = vadd.xlane.f32.xlu2 %v3044_v16 }
0x1482   :  { %v3033_v18 = vpop.f32.mrf.mxu3 }
0x1483   :  { %v3034_v19 = vadd.f32 %v3033_v18, %v3020_v17 }
0x1485   :  { %v3037_v43 = vadd.f32 %v3034_v19, %v2783_v36  ;;  %v6574_v36 = vld [vmem:[%s8419_s3 + $0x518] sm:$0xff] }
0x1486   :  { %3233 = vmatpush.bf16.msrb.mxu2 %v6574_v36 }
0x1487   :  { %v3047_v57 = vsel %vm127_vm3, %v3037_v43, 0.0 }
0x1488   :  { %3048 = vadd.xlane.f32.xlu0 %v3047_v57 }
0x148a   :  { %3234 = vmatpush.bf16.msrb.mxu2 %v6573_v45  ;;  %v6602_v45 = vld [vmem:[%s8419_s3 + $0x4d8] sm:$0xff] }
0x148e   :  { %3235 = vmatpush.bf16.msrb.mxu2 %v6572_v42  ;;  %v5892_v42 = vld [vmem:[%s8420_s4 + $0x90] sm:$0xff] }
0x1492   :  { %3236 = vmatpush.bf16.msrb.mxu2 %v6571_v47 }
0x14f3   :  { %v3046_v20 = vpop.xlane.xlu2 %3045 }
0x14f4   :  { %v3050_v30 = vmul.f32 %v3046_v20, %v6932_v52  ;;  %v5788_v20 = vld [vmem:[%s8420_s4 + $0x80] sm:$0xff] }
0x14f6   :  { %v3052_v21 = vsub.f32 %v3036_v12, %v3050_v30  ;;  %v6581_v12 = vld [vmem:[%s8419_s3 + $0x430] sm:$0xff]  ;;  %v5789_v30 = vld [vmem:[%s8420_s4 + $0x88] sm:$0xff] }
0x14f8   :  { %v3054_v44 = vmul.f32 %v3052_v21, %v3052_v21 }
0x14fa   :  { %v3056_v23 = vsel %vm127_vm3, %v3054_v44, 0.0 }
0x14fb   :  { %v3049_v24 = vpop.xlane.xlu0 %3048  ;;  %3057 = vadd.xlane.f32.xlu1 %v3056_v23 }
0x14fc   :  { %v3051_v22 = vmul.f32 %v3049_v24, %v6932_v52 }
0x14fe   :  { %v3053_v25 = vsub.f32 %v3037_v43, %v3051_v22  ;;  %v6586_v43 = vld [vmem:[%s8419_s3 + $0x4b8] sm:$0xff] }
0x1500   :  { %v3055_v26 = vmul.f32 %v3053_v25, %v3053_v25 }
0x1502   :  { %v3059_v27 = vsel %vm127_vm3, %v3055_v26, 0.0  ;;  %v6583_v26 = vld [vmem:[%s8419_s3 + $0x4a0] sm:$0xff] }
0x1503   :  { %3060 = vadd.xlane.f32.xlu2 %v3059_v27 }
0x156e   :  { %v3058_v55 = vpop.xlane.xlu1 %3057 }
0x156f   :  { %v3062_v33 = vmul.f32 %v3058_v55, %v6932_v52 }
0x1571   :  { %v3064_v41 = vadd.f32 1e-05, %v3062_v33 }
0x1573   :  { %6741 = vrsqrt.f32 %v3064_v41  ;;  %vm3072_vm0 = vweird.f32 %v3064_v41 }
0x1576   :  { %v3061_v37 = vpop.xlane.xlu2 %3060 }
0x1577   :  { %v3063_v35 = vmul.f32 %v3061_v37, %v6932_v52 }
0x1579   :  { %v6742_v38 = vpop.eup %6741  ;;  %v3065_v39 = vadd.f32 1e-05, %v3063_v35 }
0x157a   :  { %v3067_v40 = vmul.f32 %v6742_v38, %v3064_v41  ;;  %vm3073_vm15 = vweird.f32 %v6742_v38 }
0x157b   :  { %6743 = vrsqrt.f32 %v3065_v39  ;;  %vm3074_vm1 = vmor %vm3072_vm0, %vm3073_vm15  ;;  %vm3082_vm5 = vweird.f32 %v3065_v39 }
0x157c   :  { %v3068_v60 = vmul.f32 %v6742_v38, %v3067_v40 }
0x157e   :  { %v3069_v46 = vmul.f32 0.5, %v3068_v60 }
0x1580   :  { %v3070_v48 = vsub.f32 1.5, %v3069_v46  ;;  %v6601_v46 = vld [vmem:[%s8419_s3 + $0x4d0] sm:$0xff] }
0x1581   :  { %v6744_v49 = vpop.eup %6743 }
0x1582   :  { %v3071_v50 = vmul.f32 %v6742_v38, %v3070_v48  ;;  %v3077_v51 = vmul.f32 %v6744_v49, %v3065_v39  ;;  %vm3083_vm4 = vweird.f32 %v6744_v49 }
0x1583   :  { %vm3084_vm6 = vmor %vm3082_vm5, %vm3083_vm4 }
0x1584   :  { %v3078_v53 = vmul.f32 %v6744_v49, %v3077_v51  ;;  %v3075_v54 = vsel %vm3074_vm1, %v6742_v38, %v3071_v50  ;;  %v5893_v38 = vld [vmem:[%s8420_s4 + $0x98] sm:$0xff]  ;;  %v6599_v50 = vld [vmem:[%s8419_s3 + $0x4c0] sm:$0xff] }
0x1585   :  { %v3086_v62 = vmul.f32 %v3075_v54, %v3052_v21  ;;  %v6585_v21 = vld [vmem:[%s8419_s3 + $0x4b0] sm:$0xff]  ;;  %v6590_v51 = vld [vmem:[%s8419_s3 + $0x538] sm:$0xff]  ;;  %v6588_v54 = vld [vmem:[%s8419_s3 + $0x528] sm:$0xff] }
0x1586   :  { %v3079_v59 = vmul.f32 0.5, %v3078_v53  ;;  %v6589_v53 = vld [vmem:[%s8419_s3 + $0x530] sm:$0xff] }
0x1587   :  { %v3088_v3 = vmul.f32 %v5774_v63, %v3086_v62 }
0x1588   :  { %v3080_v61 = vsub.f32 1.5, %v3079_v59  ;;  %v6587_v59 = vld [vmem:[%s8419_s3 + $0x520] sm:$0xff] }
0x1589   :  { %v7940_v8 = vadd.f32 %v5776_v5, %v3088_v3 }
0x158a   :  { %v3081_v0 = vmul.f32 %v6744_v49, %v3080_v61 }
0x158c   :  { %v3085_v2 = vsel %vm3084_vm6, %v6744_v49, %v3081_v0  ;;  %v6600_v49 = vld [vmem:[%s8419_s3 + $0x4c8] sm:$0xff] }
0x158d   :  { %v3087_v4 = vmul.f32 %v3085_v2, %v3053_v25  ;;  %v6584_v25 = vld [vmem:[%s8419_s3 + $0x4a8] sm:$0xff] }
0x158f   :  { %v3089_v7 = vmul.f32 %v5775_v1, %v3087_v4  ;;  %v6578_v4 = vld [vmem:[%s8419_s3 + $0x598] sm:$0xff] }
0x1590   :  { %v3341_v5 = vsel %vm64_vm2, %v6578_v4, 0  ;;  %v5996_v4 = vld [vmem:[%s8420_s4 + $0xa0] sm:$0xff] }
0x1591   :  { %v7942_v9 = vadd.f32 %v5777_v6, %v3089_v7  ;;  %3347 = vmatpush.bf16.xpose.msrb.mxu3 %v3341_v5  ;;  %v6577_v6 = vld [vmem:[%s8419_s3 + $0x590] sm:$0xff]  ;;  %v5997_v5 = vld [vmem:[%s8420_s4 + $0xa8] sm:$0xff] }
0x1593   :  { %v7949_v11 = vpack.c.bf16 %v7942_v9, %v7940_v8 }
0x1595   :  { %5806 = vmatmul.msk.bf16.vlgmr.msra.gmra.mxu2 %vm127_vm3, %v7949_v11  ;;  %5831 = vmatmul.msk.bf16.vlgmr.msra.gmra.mxu1 %vm127_vm3, %v7949_v11 }
0x1596   :  { %3399 = vmatpush.bf16.msra.mxu2 %v6582_v10 }
0x159a   :  { %3400 = vmatpush.bf16.msra.mxu2 %v6581_v12  ;;  %v3338_v12 = vsel %vm64_vm2, %v6577_v6, 0 }
0x159b   :  { %3348 = vmatpush.bf16.xpose.msrb.mxu3 %v3338_v12 }
0x159e   :  { %3401 = vmatpush.bf16.msra.mxu2 %v6580_v14  ;;  %v6576_v14 = vld [vmem:[%s8419_s3 + $0x588] sm:$0xff] }
0x15a2   :  { %3402 = vmatpush.bf16.msra.mxu2 %v6579_v15 }
0x15a5   :  { %5856 = vmatmul.msk.bf16.vlgmr.msrb.gmra.mxu2 %vm127_vm3, %v7949_v11 }
0x15b5   :  { %5910 = vmatmul.msk.bf16.vlgmr.msra.gmra.mxu2 %vm127_vm3, %v7949_v11 }
0x1612   :  { %v3191_v16 = vpop.f32.mrf.mxu1 }
0x1618   :  { %v3144_v17 = vpop.f32.mrf.mxu2 }
0x1619   :  { %v3145_v23 = vadd.f32 %v5788_v20, %v3144_v17 }
0x161a   :  { %v3193_v18 = vpop.f32.mrf.mxu1 }
0x161b   :  { %v3244_v19 = vpack.c.bf16 %v3193_v18, %v3191_v16 }
0x161d   :  { %v3249_v57 = vsel %vm64_vm2, %v3244_v19, 0  ;;  %v3335_v19 = vsel %vm64_vm2, %v6576_v14, 0 }
0x161e   :  { %3258 = vmatpush.bf16.xpose.msra.mxu0 %v3249_v57  ;;  %3349 = vmatpush.bf16.xpose.msrb.mxu3 %v3335_v19 }
0x1620   :  { %v3146_v44 = vpop.f32.mrf.mxu2 }
0x1621   :  { %v3147_v24 = vadd.f32 %v5789_v30, %v3146_v44  ;;  %v6597_v44 = vld [vmem:[%s8419_s3 + $0x450] sm:$0xff] }
0x1623   :  { %v3243_v22 = vpack.c.bf16 %v3147_v24, %v3145_v23  ;;  %v6596_v23 = vld [vmem:[%s8419_s3 + $0x448] sm:$0xff]  ;;  %v6595_v24 = vld [vmem:[%s8419_s3 + $0x440] sm:$0xff] }
0x1625   :  { %5857 = vmatmul.msk.bf16.vlgmr.msra.gmra.mxu0 %vm64_vm2, %v3243_v22 }
0x1626   :  { %3446 = vmatpush.bf16.msrb.mxu0 %v6586_v43  ;;  %v6575_v43 = vld [vmem:[%s8419_s3 + $0x580] sm:$0xff] }
0x1627   :  { %v3332_v30 = vsel %vm64_vm2, %v6575_v43, 0  ;;  %v5778_v43 = vld [vmem:[%s8424_s8 + $0x140] sm:$0xff] }
0x1628   :  { %v3238_v27 = vpop.f32.mrf.mxu2  ;;  %3350 = vmatpush.bf16.xpose.msrb.mxu3 %v3332_v30 }
0x162a   :  { %3447 = vmatpush.bf16.msrb.mxu0 %v6585_v21  ;;  %v6598_v21 = vld [vmem:[%s8419_s3 + $0x458] sm:$0xff] }
0x162e   :  { %3448 = vmatpush.bf16.msrb.mxu0 %v6584_v25 }
0x1630   :  { %v3240_v28 = vpop.f32.mrf.mxu2  ;;  %3659 = vmatpush.bf16.msra.mxu3 %v6598_v21 }
0x1631   :  { %v3280_v13 = vpack.c.bf16 %v3240_v28, %v3238_v27 }
0x1632   :  { %3449 = vmatpush.bf16.msrb.mxu0 %v6583_v26 }
0x1633   :  { %3291 = vmatpush.bf16.msrb.mxu1 %v3280_v13 }
0x1634   :  { %3660 = vmatpush.bf16.msra.mxu3 %v6597_v44 }
0x1635   :  { %5935 = vmatmul.msk.bf16.vlgmr.msrb.gmra.mxu0 %vm127_vm3, %v7949_v11 }
0x1637   :  { %3493 = vmatpush.bf16.msra.mxu1 %v6590_v51  ;;  %v6618_v51 = vld [vmem:[%s8419_s3 + $0x4f8] sm:$0xff] }
0x1638   :  { %v3404_v41 = vpop.f32.mrf.mxu2  ;;  %3661 = vmatpush.bf16.msra.mxu3 %v6596_v23  ;;  %v5779_v23 = vld [vmem:[%s8424_s8 + $0x148] sm:$0xff] }
0x1639   :  { %v3405_v47 = vadd.f32 %v5892_v42, %v3404_v41  ;;  %v6605_v41 = vld [vmem:[%s8419_s3 + $0x550] sm:$0xff] }
0x163b   :  { %3494 = vmatpush.bf16.msra.mxu1 %v6589_v53 }
0x163c   :  { %3662 = vmatpush.bf16.msra.mxu3 %v6595_v24 }
0x163f   :  { %3495 = vmatpush.bf16.msra.mxu1 %v6588_v54  ;;  %v6617_v54 = vld [vmem:[%s8419_s3 + $0x4f0] sm:$0xff] }
0x1640   :  { %v3406_v39 = vpop.f32.mrf.mxu2 }
0x1641   :  { %v3407_v60 = vadd.f32 %v5893_v38, %v3406_v39 }
0x1643   :  { %v3503_v48 = vpack.c.bf16 %v3407_v60, %v3405_v47  ;;  %3496 = vmatpush.bf16.msra.mxu1 %v6587_v59  ;;  %v6593_v60 = vld [vmem:[%s8419_s3 + $0x5b0] sm:$0xff]  ;;  %v6592_v47 = vld [vmem:[%s8419_s3 + $0x5a8] sm:$0xff]  ;;  %v6614_v59 = vld [vmem:[%s8419_s3 + $0x478] sm:$0xff] }
0x16a2   :  { %v3260_v29 = vpop.f32.mrf.mxu0 }
0x16a3   :  { %v3265_v31 = vmul.f32 1.442695, %v3260_v29 }
0x16a5   :  { %6745 = vpow2.f32 %v3265_v31 }
0x16aa   :  { %v3262_v32 = vpop.f32.mrf.mxu0 }
0x16ab   :  { %v6746_v56 = vpop.eup %6745  ;;  %v3267_v55 = vmul.f32 1.442695, %v3262_v32 }
0x16ac   :  { %v3269_v33 = vsel %vm64_vm2, %v6746_v56, 0.0 }
0x16ad   :  { %6747 = vpow2.f32 %v3267_v55  ;;  %3270 = vadd.xlane.f32.xlu0 %v3269_v33 }
0x16b2   :  { %v3451_v34 = vpop.f32.mrf.mxu0 }
0x16b3   :  { %v6748_v58 = vpop.eup %6747 }
0x16b4   :  { %v3272_v36 = vsel %vm64_vm2, %v6748_v58, 0.0 }
0x16b5   :  { %3273 = vadd.xlane.f32.xlu1 %v3272_v36 }
0x16ba   :  { %v3453_v37 = vpop.f32.mrf.mxu0 }
0x16bb   :  { %v3504_v35 = vpack.c.bf16 %v3453_v37, %v3451_v34 }
0x16bd   :  { %v3509_v40 = vsel %vm64_vm2, %v3504_v35, 0  ;;  %v6603_v35 = vld [vmem:[%s8419_s3 + $0x540] sm:$0xff] }
0x16be   :  { %3518 = vmatpush.bf16.xpose.msrb.mxu2 %v3509_v40  ;;  %v6594_v40 = vld [vmem:[%s8419_s3 + $0x5b8] sm:$0xff] }
0x16bf   :  { %v3601_v42 = vsel %vm64_vm2, %v6594_v40, 0  ;;  %v6620_v40 = vld [vmem:[%s8419_s3 + $0x568] sm:$0xff] }
0x16c5   :  { %5961 = vmatmul.msk.bf16.vlgmr.msrb.gmra.mxu2 %vm64_vm2, %v3503_v48  ;;  %v3595_v48 = vsel %vm64_vm2, %v6592_v47, 0 }
0x16c6   :  { %3706 = vmatpush.bf16.msra.mxu2 %v6602_v45 }
0x16ca   :  { %3707 = vmatpush.bf16.msra.mxu2 %v6601_v46  ;;  %v3598_v46 = vsel %vm64_vm2, %v6593_v60, 0 }
0x16ce   :  { %3708 = vmatpush.bf16.msra.mxu2 %v6600_v49  ;;  %v6591_v49 = vld [vmem:[%s8419_s3 + $0x5a0] sm:$0xff] }
0x16d2   :  { %3709 = vmatpush.bf16.msra.mxu2 %v6599_v50  ;;  %v3592_v50 = vsel %vm64_vm2, %v6591_v49, 0 }
0x16d5   :  { %6039 = vmatmul.msk.bf16.vlgmr.msra.gmra.mxu2 %vm127_vm3, %v7949_v11 }
0x1720   :  { %v3271_v61 = vpop.xlane.xlu0 %3270 }
0x1721   :  { %6749 = vrcp.f32 %v3271_v61  ;;  %v6616_v61 = vld [vmem:[%s8419_s3 + $0x4e8] sm:$0xff] }
0x1727   :  { %v6750_v63 = vpop.eup %6749 }
0x1728   :  { %v3274_v62 = vpop.xlane.xlu1 %3273  ;;  %v3277_v1 = vmul.f32 %v6750_v63, %v6746_v56  ;;  %v6606_v56 = vld [vmem:[%s8419_s3 + $0x558] sm:$0xff] }
0x1729   :  { %6751 = vrcp.f32 %v3274_v62  ;;  %v6613_v62 = vld [vmem:[%s8419_s3 + $0x470] sm:$0xff] }
0x172f   :  { %v6752_v0 = vpop.eup %6751 }
0x1730   :  { %v3278_v2 = vmul.f32 %v6752_v0, %v6748_v58  ;;  %v6604_v58 = vld [vmem:[%s8419_s3 + $0x548] sm:$0xff]  ;;  %v6615_v0 = vld [vmem:[%s8419_s3 + $0x4e0] sm:$0xff] }
0x1732   :  { %v3279_v3 = vpack.c.bf16 %v3278_v2, %v3277_v1  ;;  %v6612_v1 = vld [vmem:[%s8419_s3 + $0x468] sm:$0xff]  ;;  %v6611_v2 = vld [vmem:[%s8419_s3 + $0x460] sm:$0xff] }
0x1734   :  { %5858 = vmatmul.msk.bf16.vlgmr.msrb.gmra.mxu1 %vm64_vm2, %v3279_v3 }
0x1735   :  { %3607 = vmatpush.bf16.xpose.msrb.mxu1 %v3601_v42  ;;  %v6619_v42 = vld [vmem:[%s8419_s3 + $0x560] sm:$0xff] }
0x173d   :  { %3608 = vmatpush.bf16.xpose.msrb.mxu1 %v3598_v46 }
0x1744   :  { %5960 = vmatmul.msk.bf16.vlgmr.msra.gmra.mxu1 %vm127_vm3, %v7949_v11 }
0x1745   :  { %3609 = vmatpush.bf16.xpose.msrb.mxu1 %v3595_v48 }
0x1748   :  { %v3520_v7 = vpop.f32.mrf.mxu2 }
0x1749   :  { %v3525_v10 = vmul.f32 1.442695, %v3520_v7 }
0x174b   :  { %6753 = vpow2.f32 %v3525_v10 }
0x174d   :  { %3610 = vmatpush.bf16.xpose.msrb.mxu1 %v3592_v50 }
0x1750   :  { %v3522_v15 = vpop.f32.mrf.mxu2 }
0x1751   :  { %v6754_v16 = vpop.eup %6753  ;;  %v3527_v17 = vmul.f32 1.442695, %v3522_v15 }
0x1752   :  { %v3529_v18 = vsel %vm64_vm2, %v6754_v16, 0.0 }
0x1753   :  { %6755 = vpow2.f32 %v3527_v17  ;;  %3530 = vadd.xlane.f32.xlu2 %v3529_v18 }
0x1755   :  { %3919 = vmatpush.bf16.msra.mxu1 %v6614_v59  ;;  %v6609_v59 = vld [vmem:[%s8419_s3 + $0x5d0] sm:$0xff] }
0x1758   :  { %v3711_v22 = vpop.f32.mrf.mxu2 }
0x1759   :  { %v6756_v57 = vpop.eup %6755  ;;  %3920 = vmatpush.bf16.msra.mxu1 %v6613_v62  ;;  %v6608_v62 = vld [vmem:[%s8419_s3 + $0x5c8] sm:$0xff] }
0x175a   :  { %v3532_v20 = vsel %vm64_vm2, %v6756_v57, 0.0 }
0x175b   :  { %3533 = vadd.xlane.f32.xlu0 %v3532_v20 }
0x175d   :  { %3921 = vmatpush.bf16.msra.mxu1 %v6612_v1  ;;  %v3855_v1 = vsel %vm64_vm2, %v6608_v62, 0 }
0x1760   :  { %v3713_v26 = vpop.f32.mrf.mxu2 }
0x1761   :  { %v3764_v27 = vpack.c.bf16 %v3713_v26, %v3711_v22  ;;  %3922 = vmatpush.bf16.msra.mxu1 %v6611_v2 }
0x1763   :  { %v3769_v29 = vsel %vm64_vm2, %v3764_v27, 0 }
0x17b1   :  { %v3293_v25 = vpop.f32.mrf.mxu1 }
0x17b9   :  { %v3295_v28 = vpop.f32.mrf.mxu1 }
0x17ba   :  { %v3298_v13 = vpack.c.bf16 %v3295_v28, %v3293_v25 }
0x17bc   :  { %5883 = vmatmul.msk.bf16.vlgmr.msrb.gmra.mxu3 %vm64_vm2, %v3298_v13 }
0x17bd   :  { %3778 = vmatpush.bf16.xpose.msrb.mxu3 %v3769_v29 }
0x17c1   :  { %v3498_v31 = vpop.f32.mrf.mxu1 }
0x17c6   :  { %v3531_v55 = vpop.xlane.xlu2 %3530 }
0x17c7   :  { %6757 = vrcp.f32 %v3531_v55 }
0x17c9   :  { %v3500_v32 = vpop.f32.mrf.mxu1 }
0x17ca   :  { %v3540_v33 = vpack.c.bf16 %v3500_v32, %v3498_v31 }
0x17cc   :  { %3551 = vmatpush.bf16.msra.mxu0 %v3540_v33  ;;  %6014 = vmatmul.msk.bf16.vlgmr.msra.gmra.mxu3 %vm127_vm3, %v7949_v11 }
0x17cd   :  { %v6758_v36 = vpop.eup %6757  ;;  %3966 = vmatpush.bf16.msra.mxu3 %v6618_v51 }
0x17ce   :  { %v3534_v34 = vpop.xlane.xlu0 %3533  ;;  %v3537_v45 = vmul.f32 %v6758_v36, %v6754_v16  ;;  %v6100_v36 = vld [vmem:[%s8420_s4 + $0xb0] sm:$0xff] }
0x17cf   :  { %6759 = vrcp.f32 %v3534_v34 }
0x17d0   :  { %3753 = vmatpush.bf16.msrb.mxu0 %v6606_v56 }
0x17d1   :  { %3967 = vmatpush.bf16.msra.mxu3 %v6617_v54 }
0x17d4   :  { %3754 = vmatpush.bf16.msrb.mxu0 %v6605_v41  ;;  %v6101_v41 = vld [vmem:[%s8420_s4 + $0xb8] sm:$0xff] }
0x17d5   :  { %v6760_v37 = vpop.eup %6759  ;;  %3968 = vmatpush.bf16.msra.mxu3 %v6616_v61  ;;  %v3858_v61 = vsel %vm64_vm2, %v6609_v59, 0 }
0x17d6   :  { %v3538_v38 = vmul.f32 %v6760_v37, %v6756_v57 }
0x17d8   :  { %3755 = vmatpush.bf16.msrb.mxu0 %v6604_v58  ;;  %v3539_v39 = vpack.c.bf16 %v3538_v38, %v3537_v45  ;;  %v6622_v38 = vld [vmem:[%s8419_s3 + $0x578] sm:$0xff] }
0x17d9   :  { %3969 = vmatpush.bf16.msra.mxu3 %v6615_v0 }
0x17da   :  { %5962 = vmatmul.msk.bf16.vlgmr.msra.gmra.mxu0 %vm64_vm2, %v3539_v39  ;;  %v6621_v39 = vld [vmem:[%s8419_s3 + $0x570] sm:$0xff] }
0x17dc   :  { %3756 = vmatpush.bf16.msrb.mxu0 %v6603_v35 }
0x17ea   :  { %6064 = vmatmul.msk.bf16.vlgmr.msrb.gmra.mxu0 %vm127_vm3, %v7949_v11 }
0x183f   :  { %v3352_v53 = vpop.f32.mrf.mxu3 }
0x1840   :  { %v3357_v57 = vadd.f32 %v5778_v43, %v3352_v53  ;;  %v6610_v53 = vld [vmem:[%s8419_s3 + $0x5d8] sm:$0xff] }
0x1841   :  { %v3861_v54 = vsel %vm64_vm2, %v6610_v53, 0  ;;  %v6634_v53 = vld [vmem:[%s8421_s5 + $0xb4] sm:$0xf0] }
0x1842   :  { %3867 = vmatpush.bf16.xpose.msra.mxu0 %v3861_v54  ;;  %v6633_v54 = vld [vmem:[%s8421_s5 + $0xb4] sm:$0xf] }
0x1847   :  { %v3354_v63 = vpop.f32.mrf.mxu3 }
0x1848   :  { %v3358_v24 = vadd.f32 %v5779_v23, %v3354_v63 }
0x184a   :  { %3868 = vmatpush.bf16.xpose.msra.mxu0 %v3858_v61  ;;  %v6240_v61 = vld [vmem:[%s8421_s5 + $0xb8] sm:$0xf0] }
0x184b   :  { %v6243_v62 = vor.u32 %v6633_v54, %v6240_v61  ;;  %v6637_v54 = vld [vmem:[%s8422_s6 + $0x110] sm:$0xff]  ;;  %v6636_v61 = vld [vmem:[%s8422_s6 + $0x108] sm:$0xff] }
0x184f   :  { %v3664_v3 = vpop.f32.mrf.mxu3 }
0x1850   :  { %v3665_v10 = vadd.f32 %v5996_v4, %v3664_v3 }
0x1852   :  { %3869 = vmatpush.bf16.xpose.msra.mxu0 %v3855_v1  ;;  %v6631_v1 = vld [vmem:[%s8421_s5 + $0xa4] sm:$0xf] }
0x1857   :  { %v3553_v6 = vpop.f32.mrf.mxu0  ;;  %v3666_v7 = vpop.f32.mrf.mxu3 }
0x1858   :  { %v3667_v12 = vadd.f32 %v5997_v5, %v3666_v7 }
0x185a   :  { %v3763_v14 = vpack.c.bf16 %v3667_v12, %v3665_v10  ;;  %v6607_v10 = vld [vmem:[%s8419_s3 + $0x5c0] sm:$0xff] }
0x185c   :  { %6065 = vmatmul.msk.bf16.vlgmr.msrb.gmra.mxu3 %vm64_vm2, %v3763_v14 }
0x185f   :  { %v3555_v15 = vpop.f32.mrf.mxu0 }
0x1860   :  { %v3558_v16 = vpack.c.bf16 %v3555_v15, %v3553_v6 }
0x1862   :  { %5987 = vmatmul.msk.bf16.vlgmr.msrb.gmra.mxu1 %vm64_vm2, %v3558_v16 }
0x1867   :  { %v3758_v17 = vpop.f32.mrf.mxu0 }
0x186c   :  { %6143 = vmatmul.msk.bf16.vlgmr.msra.gmra.mxu3 %vm127_vm3, %v7949_v11 }
0x186f   :  { %v3760_v18 = vpop.f32.mrf.mxu0 }
0x1870   :  { %v3800_v19 = vpack.c.bf16 %v3760_v18, %v3758_v17 }
0x1872   :  { %3811 = vmatpush.bf16.msrb.mxu2 %v3800_v19  ;;  %6118 = vmatmul.msk.bf16.vlgmr.msra.gmra.mxu1 %vm127_vm3, %v7949_v11 }
0x1876   :  { %4013 = vmatpush.bf16.msra.mxu2 %v6622_v38 }
0x187a   :  { %4014 = vmatpush.bf16.msra.mxu2 %v6621_v39 }
0x187e   :  { %4015 = vmatpush.bf16.msra.mxu2 %v6620_v40 }
0x1882   :  { %4016 = vmatpush.bf16.msra.mxu2 %v6619_v42 }
0x18df   :  { %v3612_v20 = vpop.f32.mrf.mxu1  ;;  %v3780_v30 = vpop.f32.mrf.mxu3 }
0x18e0   :  { %v8133_v21 = vadd.f32 %v3612_v20, %v3357_v57  ;;  %v3785_v44 = vmul.f32 1.442695, %v3780_v30 }
0x18e2   :  { %6761 = vpow2.f32 %v3785_v44 }
0x18e7   :  { %v3614_v22 = vpop.f32.mrf.mxu1  ;;  %v3782_v25 = vpop.f32.mrf.mxu3 }
0x18e8   :  { %v6762_v26 = vpop.eup %6761  ;;  %v8138_v27 = vadd.f32 %v3614_v22, %v3358_v24  ;;  %v3787_v28 = vmul.f32 1.442695, %v3782_v25  ;;  %v6626_v24 = vld [vmem:[%s8419_s3 + $0x5f8] sm:$0xff]  ;;  %v6625_v25 = vld [vmem:[%s8419_s3 + $0x5f0] sm:$0xff] }
0x18e9   :  { %v3789_v13 = vsel %vm64_vm2, %v6762_v26, 0.0  ;;  %v4121_v22 = vsel %vm64_vm2, %v6626_v24, 0 }
0x18ea   :  { %6763 = vpow2.f32 %v3787_v28  ;;  %3790 = vadd.xlane.f32.xlu1 %v3789_v13  ;;  %v6624_v28 = vld [vmem:[%s8419_s3 + $0x5e8] sm:$0xff] }
0x18eb   :  { %v4115_v13 = vsel %vm64_vm2, %v6624_v28, 0 }
0x18ef   :  { %v3924_v29 = vpop.f32.mrf.mxu1  ;;  %v3971_v31 = vpop.f32.mrf.mxu3 }
0x18f0   :  { %v6764_v32 = vpop.eup %6763  ;;  %v3925_v35 = vadd.f32 %v6100_v36, %v3924_v29  ;;  %v6623_v29 = vld [vmem:[%s8419_s3 + $0x5e0] sm:$0xff] }
0x18f1   :  { %v3792_v56 = vsel %vm64_vm2, %v6764_v32, 0.0 }
0x18f2   :  { %3793 = vadd.xlane.f32.xlu2 %v3792_v56 }
0x18f7   :  { %v3973_v55 = vpop.f32.mrf.mxu3  ;;  %v3926_v34 = vpop.f32.mrf.mxu1 }
0x18f8   :  { %v4024_v33 = vpack.c.bf16 %v3973_v55, %v3971_v31  ;;  %v3927_v37 = vadd.f32 %v6101_v41, %v3926_v34  ;;  %v4112_v31 = vsel %vm64_vm2, %v6623_v29, 0  ;;  %v6640_v29 = vld [vmem:[%s8422_s6 + $0x128] sm:$0xff] }
0x18fa   :  { %v4029_v58 = vsel %vm64_vm2, %v4024_v33, 0  ;;  %v4023_v45 = vpack.c.bf16 %v3927_v37, %v3925_v35 }
0x18fb   :  { %4038 = vmatpush.bf16.xpose.msrb.mxu1 %v4029_v58 }
0x1902   :  { %6169 = vmatmul.msk.bf16.vlgmr.msrb.gmra.mxu1 %vm64_vm2, %v4023_v45 }
0x1903   :  { %4271 = vmatpush.bf16.msra.mxu1 %v6243_v62  ;;  %v6644_v62 = vld [vmem:[%s8422_s6 + $0x148] sm:$0xff] }
0x195d   :  { %v3791_v60 = vpop.xlane.xlu1 %3790 }
0x195e   :  { %6765 = vrcp.f32 %v3791_v60 }
0x1964   :  { %v6766_v47 = vpop.eup %6765 }
0x1965   :  { %v3794_v46 = vpop.xlane.xlu2 %3793  ;;  %v3797_v49 = vmul.f32 %v6766_v47, %v6762_v26  ;;  %v4118_v26 = vsel %vm64_vm2, %v6625_v25, 0  ;;  %v6649_v25 = vld [vmem:[%s8422_s6 + $0x170] sm:$0xff] }
0x1966   :  { %6767 = vrcp.f32 %v3794_v46 }
0x196c   :  { %v6768_v48 = vpop.eup %6767 }
0x196d   :  { %v3798_v50 = vmul.f32 %v6768_v48, %v6764_v32 }
0x196f   :  { %v3799_v51 = vpack.c.bf16 %v3798_v50, %v3797_v49 }
0x1971   :  { %6066 = vmatmul.msk.bf16.vlgmr.msrb.gmra.mxu2 %vm64_vm2, %v3799_v51  ;;  %v6238_v51 = vld [vmem:[%s8421_s5 + $0xb0] sm:$0xf] }
0x1972   :  { %4127 = vmatpush.bf16.xpose.msrb.mxu2 %v4121_v22  ;;  %v6239_v59 = vor.u32 %v6634_v53, %v6238_v51  ;;  %v6641_v22 = vld [vmem:[%s8422_s6 + $0x130] sm:$0xff]  ;;  %v6646_v53 = vld [vmem:[%s8422_s6 + $0x158] sm:$0xff] }
0x197a   :  { %4128 = vmatpush.bf16.xpose.msrb.mxu2 %v4118_v26 }
0x197f   :  { %v4040_v63 = vpop.f32.mrf.mxu1 }
0x1980   :  { %v4045_v0 = vmul.f32 1.442695, %v4040_v63  ;;  %v6230_v63 = vld [vmem:[%s8421_s5 + $0xa0] sm:$0xf] }
0x1981   :  { %6168 = vmatmul.msk.bf16.vlgmr.msra.gmra.mxu2 %vm127_vm3, %v7949_v11  ;;  %v3852_v11 = vsel %vm64_vm2, %v6607_v10, 0 }
0x1982   :  { %6769 = vpow2.f32 %v4045_v0  ;;  %3870 = vmatpush.bf16.xpose.msra.mxu0 %v3852_v11  ;;  %4129 = vmatpush.bf16.xpose.msrb.mxu2 %v4115_v13  ;;  %v6632_v0 = vld [vmem:[%s8421_s5 + $0xa4] sm:$0xf0]  ;;  %v6224_v11 = vld [vmem:[%s8421_s5 + $0x98] sm:$0xf0] }
0x1987   :  { %v4042_v2 = vpop.f32.mrf.mxu1 }
0x1988   :  { %v6770_v3 = vpop.eup %6769  ;;  %v4047_v4 = vmul.f32 1.442695, %v4042_v2  ;;  %v6231_v2 = vor.u32 %v6632_v0, %v6230_v63  ;;  %v6635_v63 = vld [vmem:[%s8422_s6 + $0x100] sm:$0xff] }
0x1989   :  { %v4049_v5 = vsel %vm64_vm2, %v6770_v3, 0.0  ;;  %v6643_v0 = vld [vmem:[%s8422_s6 + $0x140] sm:$0xff] }
0x198a   :  { %6771 = vpow2.f32 %v4047_v4  ;;  %4050 = vadd.xlane.f32.xlu0 %v4049_v5  ;;  %4130 = vmatpush.bf16.xpose.msrb.mxu2 %v4112_v31  ;;  %v6222_v5 = vld [vmem:[%s8421_s5 + $0x90] sm:$0xf]  ;;  %v6648_v31 = vld [vmem:[%s8422_s6 + $0x168] sm:$0xff] }
0x198b   :  { %4257 = vmatpush.bf16.msrb.mxu0 %v6239_v59  ;;  %v6645_v59 = vld [vmem:[%s8422_s6 + $0x150] sm:$0xff] }
0x198f   :  { %4258 = vmatpush.bf16.msrb.mxu0 %v6231_v2 }
0x1990   :  { %v6772_v6 = vpop.eup %6771 }
0x1991   :  { %v4052_v7 = vsel %vm64_vm2, %v6772_v6, 0.0 }
0x1992   :  { %4053 = vadd.xlane.f32.xlu1 %v4052_v7  ;;  %v6629_v7 = vld [vmem:[%s8421_s5 + $0x94] sm:$0xf] }
0x19f4   :  { %v3813_v12 = vpop.f32.mrf.mxu2 }
0x19fc   :  { %v3815_v14 = vpop.f32.mrf.mxu2 }
0x19fd   :  { %v3818_v15 = vpack.c.bf16 %v3815_v14, %v3813_v12  ;;  %v4051_v16 = vpop.xlane.xlu0 %4050  ;;  %v6227_v14 = vor.u32 %v6629_v7, %v6224_v11 }
0x19fe   :  { %6773 = vrcp.f32 %v4051_v16  ;;  %v6214_v16 = vld [vmem:[%s8421_s5 + $0x80] sm:$0xf] }
0x19ff   :  { %6091 = vmatmul.msk.bf16.vlgmr.msra.gmra.mxu0 %vm64_vm2, %v3818_v15 }
0x1a04   :  { %v4018_v17 = vpop.f32.mrf.mxu2  ;;  %v6774_v19 = vpop.eup %6773 }
0x1a05   :  { %v4054_v18 = vpop.xlane.xlu1 %4053  ;;  %v4057_v20 = vmul.f32 %v6774_v19, %v6770_v3  ;;  %v6232_v3 = vld [vmem:[%s8421_s5 + $0xa8] sm:$0xf0] }
0x1a06   :  { %6775 = vrcp.f32 %v4054_v18  ;;  %v6235_v4 = vor.u32 %v6631_v1, %v6232_v3  ;;  %v6627_v18 = vld [vmem:[%s8421_s5 + $0x84] sm:$0xf] }
0x1a07   :  { %v6208_v3 = vld [vmem:[%s8423_s7 + $0x40] sm:$0xff] }
0x1a08   :  { %4272 = vmatpush.bf16.msra.mxu1 %v6235_v4  ;;  %v6209_v4 = vld [vmem:[%s8423_s7 + $0x48] sm:$0xff] }
0x1a0c   :  { %v6776_v43 = vpop.eup %6775  ;;  %v4020_v57 = vpop.f32.mrf.mxu2  ;;  %4273 = vmatpush.bf16.msra.mxu1 %v6227_v14 }
0x1a0d   :  { %v4058_v30 = vmul.f32 %v6776_v43, %v6772_v6  ;;  %v4060_v44 = vpack.c.bf16 %v4020_v57, %v4018_v17  ;;  %v6630_v6 = vld [vmem:[%s8421_s5 + $0x94] sm:$0xf0]  ;;  %v6628_v17 = vld [vmem:[%s8421_s5 + $0x84] sm:$0xf0]  ;;  %v6216_v57 = vld [vmem:[%s8421_s5 + $0x88] sm:$0xf0] }
0x1a0e   :  { %v6223_v10 = vor.u32 %v6630_v6, %v6222_v5  ;;  %v6215_v43 = vor.u32 %v6628_v17, %v6214_v16  ;;  %v6210_v5 = vld [vmem:[%s8423_s7 + $0x50] sm:$0xff]  ;;  %v6211_v6 = vld [vmem:[%s8423_s7 + $0x58] sm:$0xff]  ;;  %s4617_s7 = sshll.u32 %s6816_s17, 4  ;;  %s4618_s7 = int_to_ptr.vmem [resolvable:$true] %s4617_s7 }
0x1a0f   :  { %v4059_v23 = vpack.c.bf16 %v4058_v30, %v4057_v20  ;;  %4071 = vmatpush.bf16.msrb.mxu3 %v4060_v44  ;;  %v6219_v20 = vor.u32 %v6627_v18, %v6216_v57  ;;  %v6642_v30 = vld [vmem:[%s8422_s6 + $0x138] sm:$0xff] }
0x1a10   :  { %4259 = vmatpush.bf16.msrb.mxu0 %v6223_v10  ;;  %v6650_v44 = vld [vmem:[%s8422_s6 + $0x178] sm:$0xff] }
0x1a11   :  { %4274 = vmatpush.bf16.msra.mxu1 %v6219_v20  ;;  %v6278_v20 = vld [vmem:[%s8424_s8 + $0x170] sm:$0xff] }
0x1a12   :  { %6170 = vmatmul.msk.bf16.vlgmr.msrb.gmra.mxu3 %vm64_vm2, %v4059_v23 }
0x1a13   :  { %4419 = vmatpush.bf16.msra.mxu3 %v6642_v30 }
0x1a14   :  { %4260 = vmatpush.bf16.msrb.mxu0 %v6215_v43 }
0x1a17   :  { %4420 = vmatpush.bf16.msra.mxu3 %v6641_v22 }
0x1a18   :  { %4433 = vmatpush.bf16.msra.mxu0 %v6650_v44 }
0x1a1b   :  { %4421 = vmatpush.bf16.msra.mxu3 %v6640_v29 }
0x1a1c   :  { %4434 = vmatpush.bf16.msra.mxu0 %v6649_v25  ;;  %v6279_v25 = vld [vmem:[%s8424_s8 + $0x178] sm:$0xff] }
0x1a20   :  { %4435 = vmatpush.bf16.msra.mxu0 %v6648_v31 }
0x1a7c   :  { %v3872_v33 = vpop.f32.mrf.mxu0 }
0x1a7d   :  { %v3877_v41 = vadd.f32 %v3872_v33, %v8133_v21  ;;  %v6647_v33 = vld [vmem:[%s8422_s6 + $0x160] sm:$0xff] }
0x1a7e   :  { %4436 = vmatpush.bf16.msra.mxu0 %v6647_v33 }
0x1a82   :  { %4437 = vmatpush.bf16.msra.mxu0 %v6646_v53 }
0x1a84   :  { %v3874_v37 = vpop.f32.mrf.mxu0 }
0x1a85   :  { %v3878_v45 = vadd.f32 %v3874_v37, %v8138_v27 }
0x1a86   :  { %4438 = vmatpush.bf16.msra.mxu0 %v6645_v59 }
0x1a8a   :  { %4439 = vmatpush.bf16.msra.mxu0 %v6644_v62 }
0x1a8e   :  { %4440 = vmatpush.bf16.msra.mxu0 %v6643_v0 }
0x1a95   :  { %v4073_v32 = vpop.f32.mrf.mxu3 }
0x1a9d   :  { %v4075_v56 = vpop.f32.mrf.mxu3 }
0x1a9e   :  { %v4078_v55 = vpack.c.bf16 %v4075_v56, %v4073_v32 }
0x1aa0   :  { %6195 = vmatmul.msk.bf16.vlgmr.msrb.gmra.mxu2 %vm64_vm2, %v4078_v55  ;;  %v6639_v55 = vld [vmem:[%s8422_s6 + $0x120] sm:$0xff] }
0x1aa1   :  { %4422 = vmatpush.bf16.msra.mxu3 %v6639_v55 }
0x1b23   :  { %v4132_v34 = vpop.f32.mrf.mxu2 }
0x1b24   :  { %v4137_v58 = vadd.f32 %v4132_v34, %v3877_v41 }
0x1b26   :  { %v4139_v36 = vadd.f32 %v4137_v58, %v7940_v8 }
0x1b28   :  { %v4147_v35 = vsel %vm127_vm3, %v4139_v36, 0.0 }
0x1b29   :  { %4148 = vadd.xlane.f32.xlu2 %v4147_v35 }
0x1b2b   :  { %v4134_v38 = vpop.f32.mrf.mxu2 }
0x1b2c   :  { %v4138_v39 = vadd.f32 %v4134_v38, %v3878_v45 }
0x1b2e   :  { %v4140_v40 = vadd.f32 %v4138_v39, %v7942_v9 }
0x1b30   :  { %v4150_v42 = vsel %vm127_vm3, %v4140_v40, 0.0 }
0x1b31   :  { %4151 = vadd.xlane.f32.xlu0 %v4150_v42 }
0x1b9c   :  { %v4149_v60 = vpop.xlane.xlu2 %4148 }
0x1b9d   :  { %v4153_v21 = vmul.f32 %v4149_v60, %v6932_v52  ;;  %v6197_v60 = vld [vmem:[%s8424_s8 + $0x158] sm:$0xff] }
0x1b9f   :  { %v8209_v46 = vsub.f32 %v4139_v36, %v4153_v21 }
0x1ba1   :  { %v4157_v8 = vmul.f32 %v8209_v46, %v8209_v46 }
0x1ba3   :  { %v4159_v47 = vsel %vm127_vm3, %v4157_v8, 0.0 }
0x1ba4   :  { %4160 = vadd.xlane.f32.xlu1 %v4159_v47  ;;  %v4152_v48 = vpop.xlane.xlu0 %4151 }
0x1ba5   :  { %v4154_v27 = vmul.f32 %v4152_v48, %v6932_v52  ;;  %v6198_v48 = vld [vmem:[%s8424_s8 + $0x160] sm:$0xff] }
0x1ba7   :  { %v8215_v49 = vsub.f32 %v4140_v40, %v4154_v27  ;;  %v6196_v40 = vld [vmem:[%s8424_s8 + $0x150] sm:$0xff] }
0x1ba9   :  { %v4158_v9 = vmul.f32 %v8215_v49, %v8215_v49 }
0x1bab   :  { %v4162_v50 = vsel %vm127_vm3, %v4158_v9, 0.0 }
0x1bac   :  { %4163 = vadd.xlane.f32.xlu2 %v4162_v50 }
0x1c17   :  { %v4161_v12 = vpop.xlane.xlu1 %4160 }
0x1c18   :  { %v4165_v15 = vmul.f32 %v4161_v12, %v6932_v52 }
0x1c1a   :  { %v4167_v19 = vadd.f32 1e-05, %v4165_v15 }
0x1c1c   :  { %6777 = vrsqrt.f32 %v4167_v19  ;;  %vm4175_vm8 = vweird.f32 %v4167_v19 }
0x1c1f   :  { %v4164_v23 = vpop.xlane.xlu2 %4163 }
0x1c20   :  { %v4166_v24 = vmul.f32 %v4164_v23, %v6932_v52 }
0x1c22   :  { %v6778_v26 = vpop.eup %6777  ;;  %v4168_v28 = vadd.f32 1e-05, %v4166_v24 }
0x1c23   :  { %v4170_v13 = vmul.f32 %v6778_v26, %v4167_v19  ;;  %vm4176_vm7 = vweird.f32 %v6778_v26 }
0x1c24   :  { %6779 = vrsqrt.f32 %v4168_v28  ;;  %vm4177_vm9 = vmor %vm4175_vm8, %vm4176_vm7  ;;  %vm4185_vm11 = vweird.f32 %v4168_v28 }
0x1c25   :  { %v4171_v32 = vmul.f32 %v6778_v26, %v4170_v13 }
0x1c27   :  { %v4172_v56 = vmul.f32 0.5, %v4171_v32 }
0x1c29   :  { %v4173_v41 = vsub.f32 1.5, %v4172_v56 }
0x1c2a   :  { %v6780_v34 = vpop.eup %6779 }
0x1c2b   :  { %v4174_v58 = vmul.f32 %v6778_v26, %v4173_v41  ;;  %v4180_v36 = vmul.f32 %v6780_v34, %v4168_v28  ;;  %vm4186_vm10 = vweird.f32 %v6780_v34 }
0x1c2c   :  { %vm4187_vm12 = vmor %vm4185_vm11, %vm4186_vm10 }
0x1c2d   :  { %v4181_v37 = vmul.f32 %v6780_v34, %v4180_v36  ;;  %v4178_v35 = vsel %vm4177_vm9, %v6778_v26, %v4174_v58 }
0x1c2e   :  { %v4189_v39 = vmul.f32 %v4178_v35, %v8209_v46  ;;  %v6199_v46 = vld [vmem:[%s8424_s8 + $0x168] sm:$0xff] }
0x1c2f   :  { %v4182_v45 = vmul.f32 0.5, %v4181_v37 }
0x1c30   :  { %v4191_v8 = vmul.f32 %v6196_v40, %v4189_v39 }
0x1c31   :  { %v4183_v38 = vsub.f32 1.5, %v4182_v45 }
0x1c32   :  { %v4193_v9 = vadd.f32 %v6198_v48, %v4191_v8 }
0x1c33   :  { %v4184_v42 = vmul.f32 %v6780_v34, %v4183_v38 }
0x1c35   :  { %v4188_v21 = vsel %vm4187_vm12, %v6780_v34, %v4184_v42 }
0x1c36   :  { %v4190_v47 = vmul.f32 %v4188_v21, %v8215_v49  ;;  %v6638_v49 = vld [vmem:[%s8422_s6 + $0x118] sm:$0xff] }
0x1c37   :  { %4423 = vmatpush.bf16.msra.mxu3 %v6638_v49 }
0x1c38   :  { %v4192_v27 = vmul.f32 %v6197_v60, %v4190_v47 }
0x1c3a   :  { %v4194_v50 = vadd.f32 %v6199_v46, %v4192_v27 }
0x1c3b   :  { %4424 = vmatpush.bf16.msra.mxu3 %v6637_v54  ;;  %v6344_v54 = vld [vmem:[%s8424_s8 + $0x180] sm:$0xff] }
0x1c3c   :  { %v4195_v51 = vpack.c.bf16 %v4194_v50, %v4193_v9 }
0x1c3e   :  { %6244 = vmatmul.msk.bf16.vlgmr.msrb.gmra.mxu0 %vm127_vm3, %v4195_v51  ;;  %6245 = vmatmul.msk.bf16.vlgmr.msra.gmra.mxu1 %vm127_vm3, %v4195_v51 }
0x1c3f   :  { %4425 = vmatpush.bf16.msra.mxu3 %v6636_v61 }
0x1c43   :  { %4426 = vmatpush.bf16.msra.mxu3 %v6635_v63  ;;  %v6346_v63 = vld [vmem:[%s8424_s8 + $0x190] sm:$0xff] }
0x1cbb   :  { %v4262_v1 = vpop.f32.mrf.mxu0  ;;  %v4276_v2 = vpop.f32.mrf.mxu1 }
0x1cbc   :  { %v4263_v7 = vadd.f32 %v6208_v3, %v4262_v1  ;;  %v4277_v10 = vadd.f32 %v6209_v4, %v4276_v2 }
0x1cbe   :  { %v4281_v16 = vmax.f32 %v4263_v7, 0.0  ;;  %v4282_v17 = vmax.f32 %v4277_v10, 0.0  ;;  %v6347_v10 = vld [vmem:[%s8424_s8 + $0x198] sm:$0xff] }
0x1cc3   :  { %v4264_v11 = vpop.f32.mrf.mxu0  ;;  %v4278_v12 = vpop.f32.mrf.mxu1 }
0x1cc4   :  { %v4265_v14 = vadd.f32 %v6210_v5, %v4264_v11  ;;  %v4279_v15 = vadd.f32 %v6211_v6, %v4278_v12  ;;  %v6345_v5 = vld [vmem:[%s8424_s8 + $0x188] sm:$0xff] }
0x1cc6   :  { %v4283_v18 = vmax.f32 %v4265_v14, 0.0  ;;  %v4284_v19 = vmax.f32 %v4279_v15, 0.0 }
0x1cc8   :  { %v4285_v43 = vpack.c.bf16 %v4283_v18, %v4281_v16  ;;  %v4286_v57 = vpack.c.bf16 %v4284_v19, %v4282_v17 }
0x1cca   :  { %4427 = vmatmul.bf16.vlgmr.msra.gmra.mxu3 %v4285_v43  ;;  %4441 = vmatmul.bf16.vlgmr.msra.gmra.mxu0 %v4286_v57 }
0x1d47   :  { %v4442_v30 = vpop.f32.mrf.mxu0 }
0x1d4d   :  { %v4428_v44 = vpop.f32.mrf.mxu3 }
0x1d4e   :  { %v4429_v23 = vadd.f32 %v6278_v20, %v4428_v44 }
0x1d4f   :  { %v4444_v29 = vpop.f32.mrf.mxu0 }
0x1d50   :  { %v4443_v24 = vadd.f32 %v4442_v30, %v4429_v23  ;;  %v6654_v23 = vld [vmem:[%s8418_s2 + $0x78] sm:$0xff] }
0x1d51   :  { %4601 = vmatpush.bf16.msrb.mxu1 %v6654_v23 }
0x1d52   :  { %v4447_v22 = vadd.f32 %v4443_v24, %v4193_v9  ;;  %v6653_v24 = vld [vmem:[%s8418_s2 + $0x70] sm:$0xff] }
0x1d54   :  { %v4455_v26 = vsel %vm127_vm3, %v4447_v22, 0.0 }
0x1d55   :  { %v4430_v28 = vpop.f32.mrf.mxu3  ;;  %4456 = vadd.xlane.f32.xlu0 %v4455_v26  ;;  %4602 = vmatpush.bf16.msrb.mxu1 %v6653_v24 }
0x1d56   :  { %v4431_v13 = vadd.f32 %v6279_v25, %v4430_v28 }
0x1d58   :  { %v4445_v31 = vadd.f32 %v4444_v29, %v4431_v13  ;;  %v6651_v13 = vld [vmem:[%s8418_s2 + $0x60] sm:$0xff] }
0x1d5a   :  { %v4448_v32 = vadd.f32 %v4445_v31, %v4194_v50 }
0x1d5c   :  { %v4458_v56 = vsel %vm127_vm3, %v4448_v32, 0.0 }
0x1d5d   :  { %4459 = vadd.xlane.f32.xlu1 %v4458_v56 }
0x1dc8   :  { %v4457_v55 = vpop.xlane.xlu0 %4456 }
0x1dc9   :  { %v4461_v33 = vmul.f32 %v4457_v55, %v6932_v52 }
0x1dcb   :  { %v4463_v41 = vsub.f32 %v4447_v22, %v4461_v33  ;;  %v6652_v22 = vld [vmem:[%s8418_s2 + $0x68] sm:$0xff] }
0x1dcc   :  { %4603 = vmatpush.bf16.msrb.mxu1 %v6652_v22 }
0x1dcd   :  { %v4465_v34 = vmul.f32 %v4463_v41, %v4463_v41 }
0x1dcf   :  { %v4467_v58 = vsel %vm127_vm3, %v4465_v34, 0.0 }
0x1dd0   :  { %v4460_v36 = vpop.xlane.xlu1 %4459  ;;  %4468 = vadd.xlane.f32.xlu2 %v4467_v58  ;;  %4604 = vmatpush.bf16.msrb.mxu1 %v6651_v13 }
0x1dd1   :  { %v4462_v37 = vmul.f32 %v4460_v36, %v6932_v52 }
0x1dd3   :  { %v4464_v35 = vsub.f32 %v4448_v32, %v4462_v37 }
0x1dd5   :  { %v4466_v45 = vmul.f32 %v4464_v35, %v4464_v35 }
0x1dd7   :  { %v4470_v38 = vsel %vm127_vm3, %v4466_v45, 0.0 }
0x1dd8   :  { %4471 = vadd.xlane.f32.xlu0 %v4470_v38 }
0x1e43   :  { %v4469_v39 = vpop.xlane.xlu2 %4468 }
0x1e44   :  { %v4473_v40 = vmul.f32 %v4469_v39, %v6932_v52 }
0x1e46   :  { %v4475_v42 = vadd.f32 1e-05, %v4473_v40 }
0x1e48   :  { %6781 = vrsqrt.f32 %v4475_v42  ;;  %vm4483_vm14 = vweird.f32 %v4475_v42 }
0x1e4b   :  { %v4472_v60 = vpop.xlane.xlu0 %4471 }
0x1e4c   :  { %v4474_v21 = vmul.f32 %v4472_v60, %v6932_v52  ;;  %v6349_v60 = vld [vmem:[%s8424_s8 + $0x58] sm:$0xff] }
0x1e4e   :  { %v6782_v8 = vpop.eup %6781  ;;  %v4476_v47 = vadd.f32 1e-05, %v4474_v21 }
0x1e4f   :  { %v4478_v48 = vmul.f32 %v6782_v8, %v4475_v42  ;;  %vm4484_vm13 = vweird.f32 %v6782_v8 }
0x1e50   :  { %6783 = vrsqrt.f32 %v4476_v47  ;;  %vm4485_vm15 = vmor %vm4483_vm14, %vm4484_vm13  ;;  %vm4493_vm1 = vweird.f32 %v4476_v47 }
0x1e51   :  { %v4479_v46 = vmul.f32 %v6782_v8, %v4478_v48  ;;  %v6350_v48 = vld [vmem:[%s8424_s8 + $0x60] sm:$0xff] }
0x1e53   :  { %v4480_v27 = vmul.f32 0.5, %v4479_v46  ;;  %v6351_v46 = vld [vmem:[%s8424_s8 + $0x68] sm:$0xff] }
0x1e55   :  { %v4481_v9 = vsub.f32 1.5, %v4480_v27 }
0x1e56   :  { %v6784_v50 = vpop.eup %6783 }
0x1e57   :  { %v4482_v51 = vmul.f32 %v6782_v8, %v4481_v9  ;;  %v4488_v49 = vmul.f32 %v6784_v50, %v4476_v47  ;;  %vm4494_vm0 = vweird.f32 %v6784_v50 }
0x1e58   :  { %vm4495_vm4 = vmor %vm4493_vm1, %vm4494_vm0 }
0x1e59   :  { %v4489_v53 = vmul.f32 %v6784_v50, %v4488_v49  ;;  %v4486_v59 = vsel %vm4485_vm15, %v6782_v8, %v4482_v51  ;;  %v6360_v49 = vld [vmem:[%s8424_s8 + $0x70] sm:$0xff] }
0x1e5a   :  { %v4497_v61 = vmul.f32 %v4486_v59, %v4463_v41  ;;  %v6361_v59 = vld [vmem:[%s8424_s8 + $0x78] sm:$0xff] }
0x1e5b   :  { %v4490_v62 = vmul.f32 0.5, %v4489_v53 }
0x1e5c   :  { %v4499_v0 = vmul.f32 %v6344_v54, %v4497_v61 }
0x1e5d   :  { %v4491_v1 = vsub.f32 1.5, %v4490_v62 }
0x1e5e   :  { %v4501_v2 = vadd.f32 %v6346_v63, %v4499_v0 }
0x1e5f   :  { %v4492_v3 = vmul.f32 %v6784_v50, %v4491_v1 }
0x1e60   :  { %v4509_v4 = vsel %vm127_vm3, %v4501_v2, 0.0 }
0x1e61   :  { %4510 = vadd.xlane.f32.xlu1 %v4509_v4  ;;  %v4496_v6 = vsel %vm4495_vm4, %v6784_v50, %v4492_v3 }
0x1e62   :  { %v4498_v7 = vmul.f32 %v4496_v6, %v4464_v35 }
0x1e64   :  { %v4500_v11 = vmul.f32 %v6345_v5, %v4498_v7 }
0x1e66   :  { %v4502_v12 = vadd.f32 %v6347_v10, %v4500_v11 }
0x1e68   :  { %v4512_v14 = vsel %vm127_vm3, %v4502_v12, 0.0 }
0x1e69   :  { %4513 = vadd.xlane.f32.xlu2 %v4512_v14 }
0x1ed4   :  { %v4511_v15 = vpop.xlane.xlu1 %4510 }
0x1ed5   :  { %v4515_v16 = vmul.f32 %v4511_v15, %v6932_v52 }
0x1ed7   :  { %v4517_v17 = vsub.f32 %v4501_v2, %v4515_v16 }
0x1ed9   :  { %v4519_v18 = vmul.f32 %v4517_v17, %v4517_v17 }
0x1edb   :  { %v4521_v19 = vsel %vm127_vm3, %v4519_v18, 0.0 }
0x1edc   :  { %4522 = vadd.xlane.f32.xlu0 %v4521_v19  ;;  %v4514_v43 = vpop.xlane.xlu2 %4513 }
0x1edd   :  { %v4516_v57 = vmul.f32 %v4514_v43, %v6932_v52 }
0x1edf   :  { %v4518_v20 = vsub.f32 %v4502_v12, %v4516_v57 }
0x1ee1   :  { %v4520_v30 = vmul.f32 %v4518_v20, %v4518_v20 }
0x1ee3   :  { %v4524_v44 = vsel %vm127_vm3, %v4520_v30, 0.0 }
0x1ee4   :  { %4525 = vadd.xlane.f32.xlu1 %v4524_v44 }
0x1f4f   :  { %v4523_v25 = vpop.xlane.xlu0 %4522 }
0x1f50   :  { %v4527_v26 = vmul.f32 %v4523_v25, %v6932_v52 }
0x1f52   :  { %v4529_v28 = vadd.f32 1e-05, %v4527_v26 }
0x1f54   :  { %6785 = vrsqrt.f32 %v4529_v28  ;;  %vm4537_vm6 = vweird.f32 %v4529_v28 }
0x1f57   :  { %v4526_v29 = vpop.xlane.xlu1 %4525 }
0x1f58   :  { %v4528_v31 = vmul.f32 %v4526_v29, %v6932_v52  ;;  %v6348_v52 = vld [vmem:[%s8424_s8 + $0x50] sm:$0xff] }
0x1f5a   :  { %v6786_v32 = vpop.eup %6785  ;;  %v4530_v56 = vadd.f32 1e-05, %v4528_v31 }
0x1f5b   :  { %v4532_v55 = vmul.f32 %v6786_v32, %v4529_v28  ;;  %vm4538_vm5 = vweird.f32 %v6786_v32 }
0x1f5c   :  { %6787 = vrsqrt.f32 %v4530_v56  ;;  %vm4539_vm7 = vmor %vm4537_vm6, %vm4538_vm5  ;;  %vm4547_vm9 = vweird.f32 %v4530_v56 }
0x1f5d   :  { %v4533_v33 = vmul.f32 %v6786_v32, %v4532_v55 }
0x1f5f   :  { %v4534_v41 = vmul.f32 0.5, %v4533_v33 }
0x1f61   :  { %v4535_v34 = vsub.f32 1.5, %v4534_v41 }
0x1f62   :  { %v6788_v58 = vpop.eup %6787 }
0x1f63   :  { %v4536_v36 = vmul.f32 %v6786_v32, %v4535_v34  ;;  %v4542_v37 = vmul.f32 %v6788_v58, %v4530_v56  ;;  %vm4548_vm8 = vweird.f32 %v6788_v58 }
0x1f64   :  { %vm4549_vm10 = vmor %vm4547_vm9, %vm4548_vm8 }
0x1f65   :  { %v4543_v35 = vmul.f32 %v6788_v58, %v4542_v37  ;;  %v4540_v45 = vsel %vm4539_vm7, %v6786_v32, %v4536_v36 }
0x1f66   :  { %v4551_v40 = vmul.f32 %v4540_v45, %v4517_v17 }
0x1f67   :  { %v4544_v38 = vmul.f32 0.5, %v4543_v35 }
0x1f68   :  { %v4553_v8 = vmul.f32 %v6348_v52, %v4551_v40 }
0x1f69   :  { %v4545_v39 = vsub.f32 1.5, %v4544_v38 }
0x1f6a   :  { %v4555_v9 = vadd.f32 %v6350_v48, %v4553_v8 }
0x1f6b   :  { %v4546_v42 = vmul.f32 %v6788_v58, %v4545_v39 }
0x1f6d   :  { %v4550_v21 = vsel %vm4549_vm10, %v6788_v58, %v4546_v42 }
0x1f6e   :  { %v4552_v47 = vmul.f32 %v4550_v21, %v4518_v20 }
0x1f70   :  { %v4554_v27 = vmul.f32 %v6349_v60, %v4552_v47 }
0x1f72   :  { %v4556_v50 = vadd.f32 %v6351_v46, %v4554_v27 }
0x1f74   :  { %v4566_v51 = vpack.c.bf16 %v4556_v50, %v4555_v9 }
0x1f76   :  { %6378 = vmatmul.msk.bf16.vlgmr.msrb.gmra.mxu1 %vm127_vm3, %v4566_v51 }
0x1ff3   :  { %v4606_v53 = vpop.f32.mrf.mxu1 }
0x1ff4   :  { %v4607_v54 = vadd.f32 %v6360_v49, %v4606_v53 }
0x1ff6   :  { %4611 = vst.msk [vmem:[#allocation2] sm:$0xff] %vm64_vm2, %v4607_v54 }
0x1ffb   :  { %v4608_v61 = vpop.f32.mrf.mxu1 }
0x1ffc   :  { %v4609_v62 = vadd.f32 %v6361_v59, %v4608_v61 }
0x1ffe   :  { %4612 = vst.msk [vmem:[#allocation2 + $0x8] sm:$0xff] %vm64_vm2, %v4609_v62 }
0x1fff   :  { %4625 = dma.vmem_to_hbm [thread:$0]  %s4618_s7, 256, %s4620_s19, [#allocation3], %s6817_s21, %s6817_s21, %s6818_s22  }
0x2000   :  { %6813 = dma.done.wait [#allocation3], 256  }
0x2001   :  { %6814 = vsyncadd [#allocation3], 4294967040 }
0x2002   :  { %4630 = vsyncpa [#allocation3], 1 }

</bundles_post_ra>
